<compile_context>
chip_gen: v7x
topology: tpu7x:2x2x1
jax: 0.10.0
libtpu: 0.0.40
codegen_flags: <defaults>
</compile_context>

<pallas_src>
import functools

import jax
import jax.numpy as jnp
from jax import lax
from jax.experimental import pallas as pl
from jax.experimental.pallas import tpu as pltpu


def _round_up(x, m):
    return ((x + m - 1) // m) * m


# ---------------------------- fused LSTM + FC kernel ----------------------------
def fused_lstm_fc_kernel(*refs, num_layers, hidden_size, batch_pad, seq_len):
    """refs = (x, [w_ih_t, w_hh_t] * L, fc_w_pad, fc_b_pad, out).

    Weight columns are packed in gate order (i | f | o | g) by prepare_params so
    the recurrence needs one full-vreg sigmoid + one H-lane tanh per step.
    """
    H, Bp, S = hidden_size, batch_pad, seq_len
    HP = lax.Precision.HIGHEST   # MXU ~idle at these shapes; extra passes are free.

    x_ref = refs[0]
    w_refs = refs[1:1 + 2 * num_layers]
    fc_w_ref = refs[1 + 2 * num_layers]
    fc_b_ref = refs[2 + 2 * num_layers]
    out_ref = refs[3 + 2 * num_layers]

    def matmul(a, b):
        return jnp.dot(a, b, preferred_element_type=jnp.float32, precision=HP)

    # Layer-0 input projection hoisted off the recurrence: one (S*Bp, D)@(D, 4H)
    # matmul, then static 8-row (tile-aligned) slices per step.  Lives in vregs.
    gx = matmul(x_ref[...], w_refs[0][...])                       # (S*Bp, 4H)
    gx_steps = [gx[t * Bp:(t + 1) * Bp, :] for t in range(S)]     # S x (Bp, 4H)

    fc_w = fc_w_ref[...]                                          # (H, O_pad)
    fc_b = fc_b_ref[...]                                          # (1, O_pad)

    for layer in range(num_layers):
        w_hh_t = w_refs[2 * layer + 1][...]                       # (H, 4H)
        is_last = layer == num_layers - 1
        w_ih_next = None if is_last else w_refs[2 * (layer + 1)][...]   # (H, 4H)

        # The PyTorch module's forward explicitly passes h0 = c0 = torch.ones.
        h = jnp.ones((Bp, H), jnp.float32)
        c = jnp.ones((Bp, H), jnp.float32)

        next_gx_steps = []
        for t in range(S):   # fully unrolled (S=8): LLO overlaps work across steps
            # Only this matmul sits on the serial per-step path.
            gates = gx_steps[t] + matmul(h, w_hh_t)               # (Bp, 4H) = 1 vreg
            sg = jax.nn.sigmoid(gates)                            # 1 full-vreg EUP pass
            g_g = jnp.tanh(gates[:, 3 * H:4 * H])                 # H-lane EUP pass (g)
            i_g = sg[:, 0 * H:1 * H]
            f_g = sg[:, 1 * H:2 * H]
            o_g = sg[:, 2 * H:3 * H]
            c = f_g * c + i_g * g_g
            h = o_g * jnp.tanh(c)
            if is_last:
                # FC head per step: full (8, 128) lane-dense tile store.
                out_ref[t * Bp:(t + 1) * Bp, :] = (
                    matmul(h, fc_w) + fc_b).astype(out_ref.dtype)
            else:
                # Next layer's input projection, issued as soon as h_t exists;
                # off this layer's serial chain, overlaps with the recurrence.
                next_gx_steps.append(matmul(h, w_ih_next))
        gx_steps = next_gx_steps


# --------------------------------- parameters -----------------------------------
def init_params(key, input_size, hidden_size, num_layers, output_size):
    """Random params in PyTorch layouts (uniform(-1/sqrt(H), 1/sqrt(H))).

    w_ih: (4H, D_in), w_hh: (4H, H), gate rows in PyTorch order (i, f, g, o)."""
    H = hidden_size
    bound = 1.0 / float(H) ** 0.5
    lstm = []
    for layer in range(num_layers):
        in_dim = input_size if layer == 0 else H
        key, k1, k2 = jax.random.split(key, 3)
        lstm.append({
            "w_ih": jax.random.uniform(k1, (4 * H, in_dim), jnp.float32, -bound, bound),
            "w_hh": jax.random.uniform(k2, (4 * H, H), jnp.float32, -bound, bound),
        })
    key, k3, k4 = jax.random.split(key, 3)
    fc_w = jax.random.uniform(k3, (output_size, H), jnp.float32, -bound, bound)
    fc_b = jax.random.uniform(k4, (output_size,), jnp.float32, -bound, bound)
    return {"lstm": lstm, "fc_w": fc_w, "fc_b": fc_b}


def _reorder_gate_rows(w):
    """(4H, ...) rows in PyTorch order (i, f, g, o) -> kernel order (i, f, o, g)."""
    H = w.shape[0] // 4
    return jnp.concatenate([w[0 * H:1 * H], w[1 * H:2 * H],
                            w[3 * H:4 * H], w[2 * H:3 * H]], axis=0)


def prepare_params(params):
    """Pre-transpose / pre-pad / gate-reorder weights into kernel layout ONCE."""
    fc_w = params["fc_w"]                       # (O, H)
    fc_b = params["fc_b"]                       # (O,)
    O, H = fc_w.shape
    O_pad = _round_up(O, 128)                   # lane-dense output slab
    fc_w_pad = jnp.zeros((H, O_pad), jnp.float32).at[:, :O].set(fc_w.T)
    fc_b_pad = jnp.zeros((1, O_pad), jnp.float32).at[:, :O].set(fc_b[None, :])
    return {
        "lstm": [{"w_ih_t": _reorder_gate_rows(l["w_ih"]).T,     # (D_in, 4H)
                  "w_hh_t": _reorder_gate_rows(l["w_hh"]).T}     # (H, 4H)
                 for l in params["lstm"]],
        "fc_w_pad": fc_w_pad,
        "fc_b_pad": fc_b_pad,
    }


# ---------------------------------- forward --------------------------------------
def lstm_model_forward(x, prepared, *, hidden_size, num_layers, output_size):
    """x: (B, input_size, S)  ->  (B, output_size, S)."""
    B, D, S = x.shape
    H = hidden_size
    O_pad = prepared["fc_w_pad"].shape[1]
    Bp = _round_up(B, 8)    # pad batch to the f32 sublane count: every per-step
                            # slice starts on an (8,128) tile boundary.

    # torch.swapaxes(x, 1, 2) -> (B, S, D); time-major rows (t*Bp + b), batch
    # zero-padded.  Padding rows run a harmless LSTM over a zero sequence and are
    # sliced off after the call.
    x_bt = jnp.transpose(x, (2, 0, 1)).astype(jnp.float32)        # (S, B, D)
    x_tm = jnp.zeros((S, Bp, D), jnp.float32).at[:, :B, :].set(x_bt)
    x_tm = x_tm.reshape(S * Bp, D)

    args = [x_tm]
    in_specs = [pl.BlockSpec((S * Bp, D), lambda i: (0, 0))]
    for layer in range(num_layers):
        w_ih_t = prepared["lstm"][layer]["w_ih_t"]
        w_hh_t = prepared["lstm"][layer]["w_hh_t"]
        args += [w_ih_t, w_hh_t]
        # NOTE: weights are grid-invariant; at production H add
        # pipeline_mode=pl.Buffered(1) here to single-buffer them (v7x, 64 MiB VMEM).
        in_specs += [pl.BlockSpec(w_ih_t.shape, lambda i: (0, 0)),
                     pl.BlockSpec(w_hh_t.shape, lambda i: (0, 0))]
    args += [prepared["fc_w_pad"], prepared["fc_b_pad"]]
    in_specs += [pl.BlockSpec(prepared["fc_w_pad"].shape, lambda i: (0, 0)),
                 pl.BlockSpec(prepared["fc_b_pad"].shape, lambda i: (0, 0))]

    kernel = functools.partial(fused_lstm_fc_kernel, num_layers=num_layers,
                               hidden_size=H, batch_pad=Bp, seq_len=S)

    out_flat = pl.pallas_call(
        kernel,
        out_shape=jax.ShapeDtypeStruct((S * Bp, O_pad), jnp.float32),
        grid=(1,),
        in_specs=in_specs,
        out_specs=pl.BlockSpec((S * Bp, O_pad), lambda i: (0, 0)),
        compiler_params=pltpu.CompilerParams(
            dimension_semantics=("arbitrary",),
            # Explicit VMEM budget (v5e's default scoped limit is only 16 MiB);
            # plenty of headroom here, re-derive against v7x's 64 MiB when scaling.
            vmem_limit_bytes=32 * 1024 * 1024),
    )(*args)

    out = out_flat.reshape(S, Bp, O_pad)[:, :B, :output_size]     # (S, B, O)
    return jnp.transpose(out, (1, 2, 0))                          # (B, O, S)


# ------------------------------ pure-JAX reference --------------------------------
def lstm_model_reference(x, params, *, hidden_size, num_layers):
    """Straight-line JAX implementation of the PyTorch module's forward."""
    B, D, S = x.shape
    H = hidden_size
    hp = jax.lax.Precision.HIGHEST
    seq = jnp.swapaxes(x, 1, 2)                                # (B, S, D)
    for layer in range(num_layers):
        w_ih = params["lstm"][layer]["w_ih"]                   # (4H, D_in)
        w_hh = params["lstm"][layer]["w_hh"]                   # (4H, H)
        h = jnp.ones((B, H), jnp.float32)
        c = jnp.ones((B, H), jnp.float32)
        outs = []
        for t in range(S):
            g = (jnp.dot(seq[:, t, :], w_ih.T, precision=hp)
                 + jnp.dot(h, w_hh.T, precision=hp))
            i = jax.nn.sigmoid(g[:, 0 * H:1 * H])
            f = jax.nn.sigmoid(g[:, 1 * H:2 * H])
            gg = jnp.tanh(g[:, 2 * H:3 * H])
            o = jax.nn.sigmoid(g[:, 3 * H:4 * H])
            c = f * c + i * gg
            h = o * jnp.tanh(c)
            outs.append(h)
        seq = jnp.stack(outs, axis=1)                          # (B, S, H)
    out = jnp.dot(seq, params["fc_w"].T, precision=hp) + params["fc_b"]
    return jnp.swapaxes(out, 1, 2)                             # (B, O, S)


if __name__ == "__main__":
    INPUT_SIZE = 4
    OUTPUT_SIZE = 3
    HIDDEN_SIZE = 32
    NUM_LAYERS = 2
    BATCH = 2       # padded to 8 inside the wrapper to fill f32 sublanes
    SEQ = 8

    key = jax.random.PRNGKey(0)
    key, xkey = jax.random.split(key)
    x = jax.random.normal(xkey, (BATCH, INPUT_SIZE, SEQ), jnp.float32)

    params = init_params(key, INPUT_SIZE, HIDDEN_SIZE, NUM_LAYERS, OUTPUT_SIZE)
    prepared = prepare_params(params)

    fwd = jax.jit(functools.partial(
        lstm_model_forward, hidden_size=HIDDEN_SIZE, num_layers=NUM_LAYERS,
        output_size=OUTPUT_SIZE))
    out = fwd(x, prepared)
    jax.block_until_ready(out)

    assert out.shape == (BATCH, OUTPUT_SIZE, SEQ), out.shape
    assert bool(jnp.all(jnp.isfinite(out)))

    # Structural-correctness check against the pure-JAX reference (both sides use
    # Precision.HIGHEST, so the actual error is far below this guard tolerance).
    ref = lstm_model_reference(x, params, hidden_size=HIDDEN_SIZE,
                               num_layers=NUM_LAYERS)
    max_err = float(jnp.max(jnp.abs(out - ref)))
    assert max_err < 2e-2, f"kernel/reference mismatch: max |err| = {max_err}"

    print("KERNEL_OK")
</pallas_src>

<mosaic_0001>
module attributes {stable_mosaic.version = 11 : i64} {
  func.func @fused_lstm_fc_kernel(%arg0: i32, %arg1: memref<64x4xf32, #tpu.memory_space<vmem>>, %arg2: memref<4x128xf32, #tpu.memory_space<vmem>>, %arg3: memref<32x128xf32, #tpu.memory_space<vmem>>, %arg4: memref<32x128xf32, #tpu.memory_space<vmem>>, %arg5: memref<32x128xf32, #tpu.memory_space<vmem>>, %arg6: memref<32x128xf32, #tpu.memory_space<vmem>>, %arg7: memref<1x128xf32, #tpu.memory_space<vmem>>, %arg8: memref<64x128xf32, #tpu.memory_space<vmem>>) attributes {dimension_semantics = [#tpu.dimension_semantics<arbitrary>], iteration_bounds = array<i64: 1>, scalar_prefetch = 0 : i64, scratch_operands = 0 : i64, tpu.core_type = #tpu.core_type<tc>, window_params = [{pipeline_mode = #tpu.pipeline_mode<synchronous>, transform_indices = @transform_0, window_bounds = array<i64: 64, 4>}, {pipeline_mode = #tpu.pipeline_mode<synchronous>, transform_indices = @transform_1, window_bounds = array<i64: 4, 128>}, {pipeline_mode = #tpu.pipeline_mode<synchronous>, transform_indices = @transform_2, window_bounds = array<i64: 32, 128>}, {pipeline_mode = #tpu.pipeline_mode<synchronous>, transform_indices = @transform_3, window_bounds = array<i64: 32, 128>}, {pipeline_mode = #tpu.pipeline_mode<synchronous>, transform_indices = @transform_4, window_bounds = array<i64: 32, 128>}, {pipeline_mode = #tpu.pipeline_mode<synchronous>, transform_indices = @transform_5, window_bounds = array<i64: 32, 128>}, {pipeline_mode = #tpu.pipeline_mode<synchronous>, transform_indices = @transform_6, window_bounds = array<i64: 1, 128>}, {pipeline_mode = #tpu.pipeline_mode<synchronous>, transform_indices = @transform_7, window_bounds = array<i64: 64, 128>}]} {
    %c0 = arith.constant 0 : index
    %c0_0 = arith.constant 0 : index
    %0 = vector.load %arg1[%c0, %c0_0] : memref<64x4xf32, #tpu.memory_space<vmem>>, vector<64x4xf32>
    %c0_1 = arith.constant 0 : index
    %c0_2 = arith.constant 0 : index
    %1 = vector.load %arg2[%c0_1, %c0_2] : memref<4x128xf32, #tpu.memory_space<vmem>>, vector<4x128xf32>
    %cst = arith.constant dense<0.000000e+00> : vector<64x128xf32>
    %2 = tpu.matmul %0, %1, %cst {dimension_numbers = #tpu.dot_dimension_numbers<[1], [0], [0], [1], [0, 0, 1, 1], [], []>, precision = #tpu.contract_precision<fp32>} : vector<64x4xf32>, vector<4x128xf32>, vector<64x128xf32> -> vector<64x128xf32>
    %3 = vector.extract_strided_slice %2 {offsets = [0, 0], sizes = [8, 128], strides = [1, 1]} : vector<64x128xf32> to vector<8x128xf32>
    %4 = vector.extract_strided_slice %2 {offsets = [8, 0], sizes = [8, 128], strides = [1, 1]} : vector<64x128xf32> to vector<8x128xf32>
    %5 = vector.extract_strided_slice %2 {offsets = [16, 0], sizes = [8, 128], strides = [1, 1]} : vector<64x128xf32> to vector<8x128xf32>
    %6 = vector.extract_strided_slice %2 {offsets = [24, 0], sizes = [8, 128], strides = [1, 1]} : vector<64x128xf32> to vector<8x128xf32>
    %7 = vector.extract_strided_slice %2 {offsets = [32, 0], sizes = [8, 128], strides = [1, 1]} : vector<64x128xf32> to vector<8x128xf32>
    %8 = vector.extract_strided_slice %2 {offsets = [40, 0], sizes = [8, 128], strides = [1, 1]} : vector<64x128xf32> to vector<8x128xf32>
    %9 = vector.extract_strided_slice %2 {offsets = [48, 0], sizes = [8, 128], strides = [1, 1]} : vector<64x128xf32> to vector<8x128xf32>
    %10 = vector.extract_strided_slice %2 {offsets = [56, 0], sizes = [8, 128], strides = [1, 1]} : vector<64x128xf32> to vector<8x128xf32>
    %c0_3 = arith.constant 0 : index
    %c0_4 = arith.constant 0 : index
    %11 = vector.load %arg6[%c0_3, %c0_4] : memref<32x128xf32, #tpu.memory_space<vmem>>, vector<32x128xf32>
    %c0_5 = arith.constant 0 : index
    %c0_6 = arith.constant 0 : index
    %12 = vector.load %arg7[%c0_5, %c0_6] : memref<1x128xf32, #tpu.memory_space<vmem>>, vector<1x128xf32>
    %c0_7 = arith.constant 0 : index
    %c0_8 = arith.constant 0 : index
    %13 = vector.load %arg3[%c0_7, %c0_8] : memref<32x128xf32, #tpu.memory_space<vmem>>, vector<32x128xf32>
    %c0_9 = arith.constant 0 : index
    %c0_10 = arith.constant 0 : index
    %14 = vector.load %arg4[%c0_9, %c0_10] : memref<32x128xf32, #tpu.memory_space<vmem>>, vector<32x128xf32>
    %cst_11 = arith.constant 1.000000e+00 : f32
    %15 = vector.broadcast %cst_11 : f32 to vector<8x32xf32>
    %cst_12 = arith.constant 1.000000e+00 : f32
    %16 = vector.broadcast %cst_12 : f32 to vector<8x32xf32>
    %cst_13 = arith.constant dense<0.000000e+00> : vector<8x128xf32>
    %17 = tpu.matmul %15, %13, %cst_13 {dimension_numbers = #tpu.dot_dimension_numbers<[1], [0], [0], [1], [0, 0, 1, 1], [], []>, precision = #tpu.contract_precision<fp32>} : vector<8x32xf32>, vector<32x128xf32>, vector<8x128xf32> -> vector<8x128xf32>
    %18 = arith.addf %3, %17 : vector<8x128xf32>
    %19 = arith.negf %18 : vector<8x128xf32>
    %20 = math.exp %19 : vector<8x128xf32>
    %cst_14 = arith.constant 1.000000e+00 : f32
    %21 = vector.broadcast %cst_14 : f32 to vector<8x128xf32>
    %22 = arith.addf %21, %20 : vector<8x128xf32>
    %23 = arith.divf %21, %22 : vector<8x128xf32>
    %24 = vector.extract_strided_slice %18 {offsets = [0, 96], sizes = [8, 32], strides = [1, 1]} : vector<8x128xf32> to vector<8x32xf32>
    %25 = math.tanh %24 : vector<8x32xf32>
    %26 = vector.extract_strided_slice %23 {offsets = [0, 0], sizes = [8, 32], strides = [1, 1]} : vector<8x128xf32> to vector<8x32xf32>
    %27 = vector.extract_strided_slice %23 {offsets = [0, 32], sizes = [8, 32], strides = [1, 1]} : vector<8x128xf32> to vector<8x32xf32>
    %28 = vector.extract_strided_slice %23 {offsets = [0, 64], sizes = [8, 32], strides = [1, 1]} : vector<8x128xf32> to vector<8x32xf32>
    %29 = arith.mulf %27, %16 : vector<8x32xf32>
    %30 = arith.mulf %26, %25 : vector<8x32xf32>
    %31 = arith.addf %29, %30 : vector<8x32xf32>
    %32 = math.tanh %31 : vector<8x32xf32>
    %33 = arith.mulf %28, %32 : vector<8x32xf32>
    %cst_15 = arith.constant dense<0.000000e+00> : vector<8x128xf32>
    %34 = tpu.matmul %33, %14, %cst_15 {dimension_numbers = #tpu.dot_dimension_numbers<[1], [0], [0], [1], [0, 0, 1, 1], [], []>, precision = #tpu.contract_precision<fp32>} : vector<8x32xf32>, vector<32x128xf32>, vector<8x128xf32> -> vector<8x128xf32>
    %cst_16 = arith.constant dense<0.000000e+00> : vector<8x128xf32>
    %35 = tpu.matmul %33, %13, %cst_16 {dimension_numbers = #tpu.dot_dimension_numbers<[1], [0], [0], [1], [0, 0, 1, 1], [], []>, precision = #tpu.contract_precision<fp32>} : vector<8x32xf32>, vector<32x128xf32>, vector<8x128xf32> -> vector<8x128xf32>
    %36 = arith.addf %4, %35 : vector<8x128xf32>
    %37 = arith.negf %36 : vector<8x128xf32>
    %38 = math.exp %37 : vector<8x128xf32>
    %cst_17 = arith.constant 1.000000e+00 : f32
    %39 = vector.broadcast %cst_17 : f32 to vector<8x128xf32>
    %40 = arith.addf %39, %38 : vector<8x128xf32>
    %41 = arith.divf %39, %40 : vector<8x128xf32>
    %42 = vector.extract_strided_slice %36 {offsets = [0, 96], sizes = [8, 32], strides = [1, 1]} : vector<8x128xf32> to vector<8x32xf32>
    %43 = math.tanh %42 : vector<8x32xf32>
    %44 = vector.extract_strided_slice %41 {offsets = [0, 0], sizes = [8, 32], strides = [1, 1]} : vector<8x128xf32> to vector<8x32xf32>
    %45 = vector.extract_strided_slice %41 {offsets = [0, 32], sizes = [8, 32], strides = [1, 1]} : vector<8x128xf32> to vector<8x32xf32>
    %46 = vector.extract_strided_slice %41 {offsets = [0, 64], sizes = [8, 32], strides = [1, 1]} : vector<8x128xf32> to vector<8x32xf32>
    %47 = arith.mulf %45, %31 : vector<8x32xf32>
    %48 = arith.mulf %44, %43 : vector<8x32xf32>
    %49 = arith.addf %47, %48 : vector<8x32xf32>
    %50 = math.tanh %49 : vector<8x32xf32>
    %51 = arith.mulf %46, %50 : vector<8x32xf32>
    %cst_18 = arith.constant dense<0.000000e+00> : vector<8x128xf32>
    %52 = tpu.matmul %51, %14, %cst_18 {dimension_numbers = #tpu.dot_dimension_numbers<[1], [0], [0], [1], [0, 0, 1, 1], [], []>, precision = #tpu.contract_precision<fp32>} : vector<8x32xf32>, vector<32x128xf32>, vector<8x128xf32> -> vector<8x128xf32>
    %cst_19 = arith.constant dense<0.000000e+00> : vector<8x128xf32>
    %53 = tpu.matmul %51, %13, %cst_19 {dimension_numbers = #tpu.dot_dimension_numbers<[1], [0], [0], [1], [0, 0, 1, 1], [], []>, precision = #tpu.contract_precision<fp32>} : vector<8x32xf32>, vector<32x128xf32>, vector<8x128xf32> -> vector<8x128xf32>
    %54 = arith.addf %5, %53 : vector<8x128xf32>
    %55 = arith.negf %54 : vector<8x128xf32>
    %56 = math.exp %55 : vector<8x128xf32>
    %cst_20 = arith.constant 1.000000e+00 : f32
    %57 = vector.broadcast %cst_20 : f32 to vector<8x128xf32>
    %58 = arith.addf %57, %56 : vector<8x128xf32>
    %59 = arith.divf %57, %58 : vector<8x128xf32>
    %60 = vector.extract_strided_slice %54 {offsets = [0, 96], sizes = [8, 32], strides = [1, 1]} : vector<8x128xf32> to vector<8x32xf32>
    %61 = math.tanh %60 : vector<8x32xf32>
    %62 = vector.extract_strided_slice %59 {offsets = [0, 0], sizes = [8, 32], strides = [1, 1]} : vector<8x128xf32> to vector<8x32xf32>
    %63 = vector.extract_strided_slice %59 {offsets = [0, 32], sizes = [8, 32], strides = [1, 1]} : vector<8x128xf32> to vector<8x32xf32>
    %64 = vector.extract_strided_slice %59 {offsets = [0, 64], sizes = [8, 32], strides = [1, 1]} : vector<8x128xf32> to vector<8x32xf32>
    %65 = arith.mulf %63, %49 : vector<8x32xf32>
    %66 = arith.mulf %62, %61 : vector<8x32xf32>
    %67 = arith.addf %65, %66 : vector<8x32xf32>
    %68 = math.tanh %67 : vector<8x32xf32>
    %69 = arith.mulf %64, %68 : vector<8x32xf32>
    %cst_21 = arith.constant dense<0.000000e+00> : vector<8x128xf32>
    %70 = tpu.matmul %69, %14, %cst_21 {dimension_numbers = #tpu.dot_dimension_numbers<[1], [0], [0], [1], [0, 0, 1, 1], [], []>, precision = #tpu.contract_precision<fp32>} : vector<8x32xf32>, vector<32x128xf32>, vector<8x128xf32> -> vector<8x128xf32>
    %cst_22 = arith.constant dense<0.000000e+00> : vector<8x128xf32>
    %71 = tpu.matmul %69, %13, %cst_22 {dimension_numbers = #tpu.dot_dimension_numbers<[1], [0], [0], [1], [0, 0, 1, 1], [], []>, precision = #tpu.contract_precision<fp32>} : vector<8x32xf32>, vector<32x128xf32>, vector<8x128xf32> -> vector<8x128xf32>
    %72 = arith.addf %6, %71 : vector<8x128xf32>
    %73 = arith.negf %72 : vector<8x128xf32>
    %74 = math.exp %73 : vector<8x128xf32>
    %cst_23 = arith.constant 1.000000e+00 : f32
    %75 = vector.broadcast %cst_23 : f32 to vector<8x128xf32>
    %76 = arith.addf %75, %74 : vector<8x128xf32>
    %77 = arith.divf %75, %76 : vector<8x128xf32>
    %78 = vector.extract_strided_slice %72 {offsets = [0, 96], sizes = [8, 32], strides = [1, 1]} : vector<8x128xf32> to vector<8x32xf32>
    %79 = math.tanh %78 : vector<8x32xf32>
    %80 = vector.extract_strided_slice %77 {offsets = [0, 0], sizes = [8, 32], strides = [1, 1]} : vector<8x128xf32> to vector<8x32xf32>
    %81 = vector.extract_strided_slice %77 {offsets = [0, 32], sizes = [8, 32], strides = [1, 1]} : vector<8x128xf32> to vector<8x32xf32>
    %82 = vector.extract_strided_slice %77 {offsets = [0, 64], sizes = [8, 32], strides = [1, 1]} : vector<8x128xf32> to vector<8x32xf32>
    %83 = arith.mulf %81, %67 : vector<8x32xf32>
    %84 = arith.mulf %80, %79 : vector<8x32xf32>
    %85 = arith.addf %83, %84 : vector<8x32xf32>
    %86 = math.tanh %85 : vector<8x32xf32>
    %87 = arith.mulf %82, %86 : vector<8x32xf32>
    %cst_24 = arith.constant dense<0.000000e+00> : vector<8x128xf32>
    %88 = tpu.matmul %87, %14, %cst_24 {dimension_numbers = #tpu.dot_dimension_numbers<[1], [0], [0], [1], [0, 0, 1, 1], [], []>, precision = #tpu.contract_precision<fp32>} : vector<8x32xf32>, vector<32x128xf32>, vector<8x128xf32> -> vector<8x128xf32>
    %cst_25 = arith.constant dense<0.000000e+00> : vector<8x128xf32>
    %89 = tpu.matmul %87, %13, %cst_25 {dimension_numbers = #tpu.dot_dimension_numbers<[1], [0], [0], [1], [0, 0, 1, 1], [], []>, precision = #tpu.contract_precision<fp32>} : vector<8x32xf32>, vector<32x128xf32>, vector<8x128xf32> -> vector<8x128xf32>
    %90 = arith.addf %7, %89 : vector<8x128xf32>
    %91 = arith.negf %90 : vector<8x128xf32>
    %92 = math.exp %91 : vector<8x128xf32>
    %cst_26 = arith.constant 1.000000e+00 : f32
    %93 = vector.broadcast %cst_26 : f32 to vector<8x128xf32>
    %94 = arith.addf %93, %92 : vector<8x128xf32>
    %95 = arith.divf %93, %94 : vector<8x128xf32>
    %96 = vector.extract_strided_slice %90 {offsets = [0, 96], sizes = [8, 32], strides = [1, 1]} : vector<8x128xf32> to vector<8x32xf32>
    %97 = math.tanh %96 : vector<8x32xf32>
    %98 = vector.extract_strided_slice %95 {offsets = [0, 0], sizes = [8, 32], strides = [1, 1]} : vector<8x128xf32> to vector<8x32xf32>
    %99 = vector.extract_strided_slice %95 {offsets = [0, 32], sizes = [8, 32], strides = [1, 1]} : vector<8x128xf32> to vector<8x32xf32>
    %100 = vector.extract_strided_slice %95 {offsets = [0, 64], sizes = [8, 32], strides = [1, 1]} : vector<8x128xf32> to vector<8x32xf32>
    %101 = arith.mulf %99, %85 : vector<8x32xf32>
    %102 = arith.mulf %98, %97 : vector<8x32xf32>
    %103 = arith.addf %101, %102 : vector<8x32xf32>
    %104 = math.tanh %103 : vector<8x32xf32>
    %105 = arith.mulf %100, %104 : vector<8x32xf32>
    %cst_27 = arith.constant dense<0.000000e+00> : vector<8x128xf32>
    %106 = tpu.matmul %105, %14, %cst_27 {dimension_numbers = #tpu.dot_dimension_numbers<[1], [0], [0], [1], [0, 0, 1, 1], [], []>, precision = #tpu.contract_precision<fp32>} : vector<8x32xf32>, vector<32x128xf32>, vector<8x128xf32> -> vector<8x128xf32>
    %cst_28 = arith.constant dense<0.000000e+00> : vector<8x128xf32>
    %107 = tpu.matmul %105, %13, %cst_28 {dimension_numbers = #tpu.dot_dimension_numbers<[1], [0], [0], [1], [0, 0, 1, 1], [], []>, precision = #tpu.contract_precision<fp32>} : vector<8x32xf32>, vector<32x128xf32>, vector<8x128xf32> -> vector<8x128xf32>
    %108 = arith.addf %8, %107 : vector<8x128xf32>
    %109 = arith.negf %108 : vector<8x128xf32>
    %110 = math.exp %109 : vector<8x128xf32>
    %cst_29 = arith.constant 1.000000e+00 : f32
    %111 = vector.broadcast %cst_29 : f32 to vector<8x128xf32>
    %112 = arith.addf %111, %110 : vector<8x128xf32>
    %113 = arith.divf %111, %112 : vector<8x128xf32>
    %114 = vector.extract_strided_slice %108 {offsets = [0, 96], sizes = [8, 32], strides = [1, 1]} : vector<8x128xf32> to vector<8x32xf32>
    %115 = math.tanh %114 : vector<8x32xf32>
    %116 = vector.extract_strided_slice %113 {offsets = [0, 0], sizes = [8, 32], strides = [1, 1]} : vector<8x128xf32> to vector<8x32xf32>
    %117 = vector.extract_strided_slice %113 {offsets = [0, 32], sizes = [8, 32], strides = [1, 1]} : vector<8x128xf32> to vector<8x32xf32>
    %118 = vector.extract_strided_slice %113 {offsets = [0, 64], sizes = [8, 32], strides = [1, 1]} : vector<8x128xf32> to vector<8x32xf32>
    %119 = arith.mulf %117, %103 : vector<8x32xf32>
    %120 = arith.mulf %116, %115 : vector<8x32xf32>
    %121 = arith.addf %119, %120 : vector<8x32xf32>
    %122 = math.tanh %121 : vector<8x32xf32>
    %123 = arith.mulf %118, %122 : vector<8x32xf32>
    %cst_30 = arith.constant dense<0.000000e+00> : vector<8x128xf32>
    %124 = tpu.matmul %123, %14, %cst_30 {dimension_numbers = #tpu.dot_dimension_numbers<[1], [0], [0], [1], [0, 0, 1, 1], [], []>, precision = #tpu.contract_precision<fp32>} : vector<8x32xf32>, vector<32x128xf32>, vector<8x128xf32> -> vector<8x128xf32>
    %cst_31 = arith.constant dense<0.000000e+00> : vector<8x128xf32>
    %125 = tpu.matmul %123, %13, %cst_31 {dimension_numbers = #tpu.dot_dimension_numbers<[1], [0], [0], [1], [0, 0, 1, 1], [], []>, precision = #tpu.contract_precision<fp32>} : vector<8x32xf32>, vector<32x128xf32>, vector<8x128xf32> -> vector<8x128xf32>
    %126 = arith.addf %9, %125 : vector<8x128xf32>
    %127 = arith.negf %126 : vector<8x128xf32>
    %128 = math.exp %127 : vector<8x128xf32>
    %cst_32 = arith.constant 1.000000e+00 : f32
    %129 = vector.broadcast %cst_32 : f32 to vector<8x128xf32>
    %130 = arith.addf %129, %128 : vector<8x128xf32>
    %131 = arith.divf %129, %130 : vector<8x128xf32>
    %132 = vector.extract_strided_slice %126 {offsets = [0, 96], sizes = [8, 32], strides = [1, 1]} : vector<8x128xf32> to vector<8x32xf32>
    %133 = math.tanh %132 : vector<8x32xf32>
    %134 = vector.extract_strided_slice %131 {offsets = [0, 0], sizes = [8, 32], strides = [1, 1]} : vector<8x128xf32> to vector<8x32xf32>
    %135 = vector.extract_strided_slice %131 {offsets = [0, 32], sizes = [8, 32], strides = [1, 1]} : vector<8x128xf32> to vector<8x32xf32>
    %136 = vector.extract_strided_slice %131 {offsets = [0, 64], sizes = [8, 32], strides = [1, 1]} : vector<8x128xf32> to vector<8x32xf32>
    %137 = arith.mulf %135, %121 : vector<8x32xf32>
    %138 = arith.mulf %134, %133 : vector<8x32xf32>
    %139 = arith.addf %137, %138 : vector<8x32xf32>
    %140 = math.tanh %139 : vector<8x32xf32>
    %141 = arith.mulf %136, %140 : vector<8x32xf32>
    %cst_33 = arith.constant dense<0.000000e+00> : vector<8x128xf32>
    %142 = tpu.matmul %141, %14, %cst_33 {dimension_numbers = #tpu.dot_dimension_numbers<[1], [0], [0], [1], [0, 0, 1, 1], [], []>, precision = #tpu.contract_precision<fp32>} : vector<8x32xf32>, vector<32x128xf32>, vector<8x128xf32> -> vector<8x128xf32>
    %cst_34 = arith.constant dense<0.000000e+00> : vector<8x128xf32>
    %143 = tpu.matmul %141, %13, %cst_34 {dimension_numbers = #tpu.dot_dimension_numbers<[1], [0], [0], [1], [0, 0, 1, 1], [], []>, precision = #tpu.contract_precision<fp32>} : vector<8x32xf32>, vector<32x128xf32>, vector<8x128xf32> -> vector<8x128xf32>
    %144 = arith.addf %10, %143 : vector<8x128xf32>
    %145 = arith.negf %144 : vector<8x128xf32>
    %146 = math.exp %145 : vector<8x128xf32>
    %cst_35 = arith.constant 1.000000e+00 : f32
    %147 = vector.broadcast %cst_35 : f32 to vector<8x128xf32>
    %148 = arith.addf %147, %146 : vector<8x128xf32>
    %149 = arith.divf %147, %148 : vector<8x128xf32>
    %150 = vector.extract_strided_slice %144 {offsets = [0, 96], sizes = [8, 32], strides = [1, 1]} : vector<8x128xf32> to vector<8x32xf32>
    %151 = math.tanh %150 : vector<8x32xf32>
    %152 = vector.extract_strided_slice %149 {offsets = [0, 0], sizes = [8, 32], strides = [1, 1]} : vector<8x128xf32> to vector<8x32xf32>
    %153 = vector.extract_strided_slice %149 {offsets = [0, 32], sizes = [8, 32], strides = [1, 1]} : vector<8x128xf32> to vector<8x32xf32>
    %154 = vector.extract_strided_slice %149 {offsets = [0, 64], sizes = [8, 32], strides = [1, 1]} : vector<8x128xf32> to vector<8x32xf32>
    %155 = arith.mulf %153, %139 : vector<8x32xf32>
    %156 = arith.mulf %152, %151 : vector<8x32xf32>
    %157 = arith.addf %155, %156 : vector<8x32xf32>
    %158 = math.tanh %157 : vector<8x32xf32>
    %159 = arith.mulf %154, %158 : vector<8x32xf32>
    %cst_36 = arith.constant dense<0.000000e+00> : vector<8x128xf32>
    %160 = tpu.matmul %159, %14, %cst_36 {dimension_numbers = #tpu.dot_dimension_numbers<[1], [0], [0], [1], [0, 0, 1, 1], [], []>, precision = #tpu.contract_precision<fp32>} : vector<8x32xf32>, vector<32x128xf32>, vector<8x128xf32> -> vector<8x128xf32>
    %c0_37 = arith.constant 0 : index
    %c0_38 = arith.constant 0 : index
    %161 = vector.load %arg5[%c0_37, %c0_38] : memref<32x128xf32, #tpu.memory_space<vmem>>, vector<32x128xf32>
    %cst_39 = arith.constant 1.000000e+00 : f32
    %162 = vector.broadcast %cst_39 : f32 to vector<8x32xf32>
    %cst_40 = arith.constant 1.000000e+00 : f32
    %163 = vector.broadcast %cst_40 : f32 to vector<8x32xf32>
    %cst_41 = arith.constant dense<0.000000e+00> : vector<8x128xf32>
    %164 = tpu.matmul %162, %161, %cst_41 {dimension_numbers = #tpu.dot_dimension_numbers<[1], [0], [0], [1], [0, 0, 1, 1], [], []>, precision = #tpu.contract_precision<fp32>} : vector<8x32xf32>, vector<32x128xf32>, vector<8x128xf32> -> vector<8x128xf32>
    %165 = arith.addf %34, %164 : vector<8x128xf32>
    %166 = arith.negf %165 : vector<8x128xf32>
    %167 = math.exp %166 : vector<8x128xf32>
    %cst_42 = arith.constant 1.000000e+00 : f32
    %168 = vector.broadcast %cst_42 : f32 to vector<8x128xf32>
    %169 = arith.addf %168, %167 : vector<8x128xf32>
    %170 = arith.divf %168, %169 : vector<8x128xf32>
    %171 = vector.extract_strided_slice %165 {offsets = [0, 96], sizes = [8, 32], strides = [1, 1]} : vector<8x128xf32> to vector<8x32xf32>
    %172 = math.tanh %171 : vector<8x32xf32>
    %173 = vector.extract_strided_slice %170 {offsets = [0, 0], sizes = [8, 32], strides = [1, 1]} : vector<8x128xf32> to vector<8x32xf32>
    %174 = vector.extract_strided_slice %170 {offsets = [0, 32], sizes = [8, 32], strides = [1, 1]} : vector<8x128xf32> to vector<8x32xf32>
    %175 = vector.extract_strided_slice %170 {offsets = [0, 64], sizes = [8, 32], strides = [1, 1]} : vector<8x128xf32> to vector<8x32xf32>
    %176 = arith.mulf %174, %163 : vector<8x32xf32>
    %177 = arith.mulf %173, %172 : vector<8x32xf32>
    %178 = arith.addf %176, %177 : vector<8x32xf32>
    %179 = math.tanh %178 : vector<8x32xf32>
    %180 = arith.mulf %175, %179 : vector<8x32xf32>
    %cst_43 = arith.constant dense<0.000000e+00> : vector<8x128xf32>
    %181 = tpu.matmul %180, %11, %cst_43 {dimension_numbers = #tpu.dot_dimension_numbers<[1], [0], [0], [1], [0, 0, 1, 1], [], []>, precision = #tpu.contract_precision<fp32>} : vector<8x32xf32>, vector<32x128xf32>, vector<8x128xf32> -> vector<8x128xf32>
    %182 = vector.broadcast %12 : vector<1x128xf32> to vector<8x128xf32>
    %183 = arith.addf %181, %182 : vector<8x128xf32>
    %c0_44 = arith.constant 0 : index
    %c0_45 = arith.constant 0 : index
    %184 = vector.load %arg8[%c0_44, %c0_45] : memref<64x128xf32, #tpu.memory_space<vmem>>, vector<8x128xf32>
    tpu.vector_store %arg8[%c0_44, %c0_45], %183 {strides = array<i32>} : memref<64x128xf32, #tpu.memory_space<vmem>>, vector<8x128xf32>,
    %cst_46 = arith.constant dense<0.000000e+00> : vector<8x128xf32>
    %185 = tpu.matmul %180, %161, %cst_46 {dimension_numbers = #tpu.dot_dimension_numbers<[1], [0], [0], [1], [0, 0, 1, 1], [], []>, precision = #tpu.contract_precision<fp32>} : vector<8x32xf32>, vector<32x128xf32>, vector<8x128xf32> -> vector<8x128xf32>
    %186 = arith.addf %52, %185 : vector<8x128xf32>
    %187 = arith.negf %186 : vector<8x128xf32>
    %188 = math.exp %187 : vector<8x128xf32>
    %cst_47 = arith.constant 1.000000e+00 : f32
    %189 = vector.broadcast %cst_47 : f32 to vector<8x128xf32>
    %190 = arith.addf %189, %188 : vector<8x128xf32>
    %191 = arith.divf %189, %190 : vector<8x128xf32>
    %192 = vector.extract_strided_slice %186 {offsets = [0, 96], sizes = [8, 32], strides = [1, 1]} : vector<8x128xf32> to vector<8x32xf32>
    %193 = math.tanh %192 : vector<8x32xf32>
    %194 = vector.extract_strided_slice %191 {offsets = [0, 0], sizes = [8, 32], strides = [1, 1]} : vector<8x128xf32> to vector<8x32xf32>
    %195 = vector.extract_strided_slice %191 {offsets = [0, 32], sizes = [8, 32], strides = [1, 1]} : vector<8x128xf32> to vector<8x32xf32>
    %196 = vector.extract_strided_slice %191 {offsets = [0, 64], sizes = [8, 32], strides = [1, 1]} : vector<8x128xf32> to vector<8x32xf32>
    %197 = arith.mulf %195, %178 : vector<8x32xf32>
    %198 = arith.mulf %194, %193 : vector<8x32xf32>
    %199 = arith.addf %197, %198 : vector<8x32xf32>
    %200 = math.tanh %199 : vector<8x32xf32>
    %201 = arith.mulf %196, %200 : vector<8x32xf32>
    %cst_48 = arith.constant dense<0.000000e+00> : vector<8x128xf32>
    %202 = tpu.matmul %201, %11, %cst_48 {dimension_numbers = #tpu.dot_dimension_numbers<[1], [0], [0], [1], [0, 0, 1, 1], [], []>, precision = #tpu.contract_precision<fp32>} : vector<8x32xf32>, vector<32x128xf32>, vector<8x128xf32> -> vector<8x128xf32>
    %203 = vector.broadcast %12 : vector<1x128xf32> to vector<8x128xf32>
    %204 = arith.addf %202, %203 : vector<8x128xf32>
    %c8 = arith.constant 8 : index
    %c0_49 = arith.constant 0 : index
    %205 = vector.load %arg8[%c8, %c0_49] : memref<64x128xf32, #tpu.memory_space<vmem>>, vector<8x128xf32>
    tpu.vector_store %arg8[%c8, %c0_49], %204 {strides = array<i32>} : memref<64x128xf32, #tpu.memory_space<vmem>>, vector<8x128xf32>,
    %cst_50 = arith.constant dense<0.000000e+00> : vector<8x128xf32>
    %206 = tpu.matmul %201, %161, %cst_50 {dimension_numbers = #tpu.dot_dimension_numbers<[1], [0], [0], [1], [0, 0, 1, 1], [], []>, precision = #tpu.contract_precision<fp32>} : vector<8x32xf32>, vector<32x128xf32>, vector<8x128xf32> -> vector<8x128xf32>
    %207 = arith.addf %70, %206 : vector<8x128xf32>
    %208 = arith.negf %207 : vector<8x128xf32>
    %209 = math.exp %208 : vector<8x128xf32>
    %cst_51 = arith.constant 1.000000e+00 : f32
    %210 = vector.broadcast %cst_51 : f32 to vector<8x128xf32>
    %211 = arith.addf %210, %209 : vector<8x128xf32>
    %212 = arith.divf %210, %211 : vector<8x128xf32>
    %213 = vector.extract_strided_slice %207 {offsets = [0, 96], sizes = [8, 32], strides = [1, 1]} : vector<8x128xf32> to vector<8x32xf32>
    %214 = math.tanh %213 : vector<8x32xf32>
    %215 = vector.extract_strided_slice %212 {offsets = [0, 0], sizes = [8, 32], strides = [1, 1]} : vector<8x128xf32> to vector<8x32xf32>
    %216 = vector.extract_strided_slice %212 {offsets = [0, 32], sizes = [8, 32], strides = [1, 1]} : vector<8x128xf32> to vector<8x32xf32>
    %217 = vector.extract_strided_slice %212 {offsets = [0, 64], sizes = [8, 32], strides = [1, 1]} : vector<8x128xf32> to vector<8x32xf32>
    %218 = arith.mulf %216, %199 : vector<8x32xf32>
    %219 = arith.mulf %215, %214 : vector<8x32xf32>
    %220 = arith.addf %218, %219 : vector<8x32xf32>
    %221 = math.tanh %220 : vector<8x32xf32>
    %222 = arith.mulf %217, %221 : vector<8x32xf32>
    %cst_52 = arith.constant dense<0.000000e+00> : vector<8x128xf32>
    %223 = tpu.matmul %222, %11, %cst_52 {dimension_numbers = #tpu.dot_dimension_numbers<[1], [0], [0], [1], [0, 0, 1, 1], [], []>, precision = #tpu.contract_precision<fp32>} : vector<8x32xf32>, vector<32x128xf32>, vector<8x128xf32> -> vector<8x128xf32>
    %224 = vector.broadcast %12 : vector<1x128xf32> to vector<8x128xf32>
    %225 = arith.addf %223, %224 : vector<8x128xf32>
    %c16 = arith.constant 16 : index
    %c0_53 = arith.constant 0 : index
    %226 = vector.load %arg8[%c16, %c0_53] : memref<64x128xf32, #tpu.memory_space<vmem>>, vector<8x128xf32>
    tpu.vector_store %arg8[%c16, %c0_53], %225 {strides = array<i32>} : memref<64x128xf32, #tpu.memory_space<vmem>>, vector<8x128xf32>,
    %cst_54 = arith.constant dense<0.000000e+00> : vector<8x128xf32>
    %227 = tpu.matmul %222, %161, %cst_54 {dimension_numbers = #tpu.dot_dimension_numbers<[1], [0], [0], [1], [0, 0, 1, 1], [], []>, precision = #tpu.contract_precision<fp32>} : vector<8x32xf32>, vector<32x128xf32>, vector<8x128xf32> -> vector<8x128xf32>
    %228 = arith.addf %88, %227 : vector<8x128xf32>
    %229 = arith.negf %228 : vector<8x128xf32>
    %230 = math.exp %229 : vector<8x128xf32>
    %cst_55 = arith.constant 1.000000e+00 : f32
    %231 = vector.broadcast %cst_55 : f32 to vector<8x128xf32>
    %232 = arith.addf %231, %230 : vector<8x128xf32>
    %233 = arith.divf %231, %232 : vector<8x128xf32>
    %234 = vector.extract_strided_slice %228 {offsets = [0, 96], sizes = [8, 32], strides = [1, 1]} : vector<8x128xf32> to vector<8x32xf32>
    %235 = math.tanh %234 : vector<8x32xf32>
    %236 = vector.extract_strided_slice %233 {offsets = [0, 0], sizes = [8, 32], strides = [1, 1]} : vector<8x128xf32> to vector<8x32xf32>
    %237 = vector.extract_strided_slice %233 {offsets = [0, 32], sizes = [8, 32], strides = [1, 1]} : vector<8x128xf32> to vector<8x32xf32>
    %238 = vector.extract_strided_slice %233 {offsets = [0, 64], sizes = [8, 32], strides = [1, 1]} : vector<8x128xf32> to vector<8x32xf32>
    %239 = arith.mulf %237, %220 : vector<8x32xf32>
    %240 = arith.mulf %236, %235 : vector<8x32xf32>
    %241 = arith.addf %239, %240 : vector<8x32xf32>
    %242 = math.tanh %241 : vector<8x32xf32>
    %243 = arith.mulf %238, %242 : vector<8x32xf32>
    %cst_56 = arith.constant dense<0.000000e+00> : vector<8x128xf32>
    %244 = tpu.matmul %243, %11, %cst_56 {dimension_numbers = #tpu.dot_dimension_numbers<[1], [0], [0], [1], [0, 0, 1, 1], [], []>, precision = #tpu.contract_precision<fp32>} : vector<8x32xf32>, vector<32x128xf32>, vector<8x128xf32> -> vector<8x128xf32>
    %245 = vector.broadcast %12 : vector<1x128xf32> to vector<8x128xf32>
    %246 = arith.addf %244, %245 : vector<8x128xf32>
    %c24 = arith.constant 24 : index
    %c0_57 = arith.constant 0 : index
    %247 = vector.load %arg8[%c24, %c0_57] : memref<64x128xf32, #tpu.memory_space<vmem>>, vector<8x128xf32>
    tpu.vector_store %arg8[%c24, %c0_57], %246 {strides = array<i32>} : memref<64x128xf32, #tpu.memory_space<vmem>>, vector<8x128xf32>,
    %cst_58 = arith.constant dense<0.000000e+00> : vector<8x128xf32>
    %248 = tpu.matmul %243, %161, %cst_58 {dimension_numbers = #tpu.dot_dimension_numbers<[1], [0], [0], [1], [0, 0, 1, 1], [], []>, precision = #tpu.contract_precision<fp32>} : vector<8x32xf32>, vector<32x128xf32>, vector<8x128xf32> -> vector<8x128xf32>
    %249 = arith.addf %106, %248 : vector<8x128xf32>
    %250 = arith.negf %249 : vector<8x128xf32>
    %251 = math.exp %250 : vector<8x128xf32>
    %cst_59 = arith.constant 1.000000e+00 : f32
    %252 = vector.broadcast %cst_59 : f32 to vector<8x128xf32>
    %253 = arith.addf %252, %251 : vector<8x128xf32>
    %254 = arith.divf %252, %253 : vector<8x128xf32>
    %255 = vector.extract_strided_slice %249 {offsets = [0, 96], sizes = [8, 32], strides = [1, 1]} : vector<8x128xf32> to vector<8x32xf32>
    %256 = math.tanh %255 : vector<8x32xf32>
    %257 = vector.extract_strided_slice %254 {offsets = [0, 0], sizes = [8, 32], strides = [1, 1]} : vector<8x128xf32> to vector<8x32xf32>
    %258 = vector.extract_strided_slice %254 {offsets = [0, 32], sizes = [8, 32], strides = [1, 1]} : vector<8x128xf32> to vector<8x32xf32>
    %259 = vector.extract_strided_slice %254 {offsets = [0, 64], sizes = [8, 32], strides = [1, 1]} : vector<8x128xf32> to vector<8x32xf32>
    %260 = arith.mulf %258, %241 : vector<8x32xf32>
    %261 = arith.mulf %257, %256 : vector<8x32xf32>
    %262 = arith.addf %260, %261 : vector<8x32xf32>
    %263 = math.tanh %262 : vector<8x32xf32>
    %264 = arith.mulf %259, %263 : vector<8x32xf32>
    %cst_60 = arith.constant dense<0.000000e+00> : vector<8x128xf32>
    %265 = tpu.matmul %264, %11, %cst_60 {dimension_numbers = #tpu.dot_dimension_numbers<[1], [0], [0], [1], [0, 0, 1, 1], [], []>, precision = #tpu.contract_precision<fp32>} : vector<8x32xf32>, vector<32x128xf32>, vector<8x128xf32> -> vector<8x128xf32>
    %266 = vector.broadcast %12 : vector<1x128xf32> to vector<8x128xf32>
    %267 = arith.addf %265, %266 : vector<8x128xf32>
    %c32 = arith.constant 32 : index
    %c0_61 = arith.constant 0 : index
    %268 = vector.load %arg8[%c32, %c0_61] : memref<64x128xf32, #tpu.memory_space<vmem>>, vector<8x128xf32>
    tpu.vector_store %arg8[%c32, %c0_61], %267 {strides = array<i32>} : memref<64x128xf32, #tpu.memory_space<vmem>>, vector<8x128xf32>,
    %cst_62 = arith.constant dense<0.000000e+00> : vector<8x128xf32>
    %269 = tpu.matmul %264, %161, %cst_62 {dimension_numbers = #tpu.dot_dimension_numbers<[1], [0], [0], [1], [0, 0, 1, 1], [], []>, precision = #tpu.contract_precision<fp32>} : vector<8x32xf32>, vector<32x128xf32>, vector<8x128xf32> -> vector<8x128xf32>
    %270 = arith.addf %124, %269 : vector<8x128xf32>
    %271 = arith.negf %270 : vector<8x128xf32>
    %272 = math.exp %271 : vector<8x128xf32>
    %cst_63 = arith.constant 1.000000e+00 : f32
    %273 = vector.broadcast %cst_63 : f32 to vector<8x128xf32>
    %274 = arith.addf %273, %272 : vector<8x128xf32>
    %275 = arith.divf %273, %274 : vector<8x128xf32>
    %276 = vector.extract_strided_slice %270 {offsets = [0, 96], sizes = [8, 32], strides = [1, 1]} : vector<8x128xf32> to vector<8x32xf32>
    %277 = math.tanh %276 : vector<8x32xf32>
    %278 = vector.extract_strided_slice %275 {offsets = [0, 0], sizes = [8, 32], strides = [1, 1]} : vector<8x128xf32> to vector<8x32xf32>
    %279 = vector.extract_strided_slice %275 {offsets = [0, 32], sizes = [8, 32], strides = [1, 1]} : vector<8x128xf32> to vector<8x32xf32>
    %280 = vector.extract_strided_slice %275 {offsets = [0, 64], sizes = [8, 32], strides = [1, 1]} : vector<8x128xf32> to vector<8x32xf32>
    %281 = arith.mulf %279, %262 : vector<8x32xf32>
    %282 = arith.mulf %278, %277 : vector<8x32xf32>
    %283 = arith.addf %281, %282 : vector<8x32xf32>
    %284 = math.tanh %283 : vector<8x32xf32>
    %285 = arith.mulf %280, %284 : vector<8x32xf32>
    %cst_64 = arith.constant dense<0.000000e+00> : vector<8x128xf32>
    %286 = tpu.matmul %285, %11, %cst_64 {dimension_numbers = #tpu.dot_dimension_numbers<[1], [0], [0], [1], [0, 0, 1, 1], [], []>, precision = #tpu.contract_precision<fp32>} : vector<8x32xf32>, vector<32x128xf32>, vector<8x128xf32> -> vector<8x128xf32>
    %287 = vector.broadcast %12 : vector<1x128xf32> to vector<8x128xf32>
    %288 = arith.addf %286, %287 : vector<8x128xf32>
    %c40 = arith.constant 40 : index
    %c0_65 = arith.constant 0 : index
    %289 = vector.load %arg8[%c40, %c0_65] : memref<64x128xf32, #tpu.memory_space<vmem>>, vector<8x128xf32>
    tpu.vector_store %arg8[%c40, %c0_65], %288 {strides = array<i32>} : memref<64x128xf32, #tpu.memory_space<vmem>>, vector<8x128xf32>,
    %cst_66 = arith.constant dense<0.000000e+00> : vector<8x128xf32>
    %290 = tpu.matmul %285, %161, %cst_66 {dimension_numbers = #tpu.dot_dimension_numbers<[1], [0], [0], [1], [0, 0, 1, 1], [], []>, precision = #tpu.contract_precision<fp32>} : vector<8x32xf32>, vector<32x128xf32>, vector<8x128xf32> -> vector<8x128xf32>
    %291 = arith.addf %142, %290 : vector<8x128xf32>
    %292 = arith.negf %291 : vector<8x128xf32>
    %293 = math.exp %292 : vector<8x128xf32>
    %cst_67 = arith.constant 1.000000e+00 : f32
    %294 = vector.broadcast %cst_67 : f32 to vector<8x128xf32>
    %295 = arith.addf %294, %293 : vector<8x128xf32>
    %296 = arith.divf %294, %295 : vector<8x128xf32>
    %297 = vector.extract_strided_slice %291 {offsets = [0, 96], sizes = [8, 32], strides = [1, 1]} : vector<8x128xf32> to vector<8x32xf32>
    %298 = math.tanh %297 : vector<8x32xf32>
    %299 = vector.extract_strided_slice %296 {offsets = [0, 0], sizes = [8, 32], strides = [1, 1]} : vector<8x128xf32> to vector<8x32xf32>
    %300 = vector.extract_strided_slice %296 {offsets = [0, 32], sizes = [8, 32], strides = [1, 1]} : vector<8x128xf32> to vector<8x32xf32>
    %301 = vector.extract_strided_slice %296 {offsets = [0, 64], sizes = [8, 32], strides = [1, 1]} : vector<8x128xf32> to vector<8x32xf32>
    %302 = arith.mulf %300, %283 : vector<8x32xf32>
    %303 = arith.mulf %299, %298 : vector<8x32xf32>
    %304 = arith.addf %302, %303 : vector<8x32xf32>
    %305 = math.tanh %304 : vector<8x32xf32>
    %306 = arith.mulf %301, %305 : vector<8x32xf32>
    %cst_68 = arith.constant dense<0.000000e+00> : vector<8x128xf32>
    %307 = tpu.matmul %306, %11, %cst_68 {dimension_numbers = #tpu.dot_dimension_numbers<[1], [0], [0], [1], [0, 0, 1, 1], [], []>, precision = #tpu.contract_precision<fp32>} : vector<8x32xf32>, vector<32x128xf32>, vector<8x128xf32> -> vector<8x128xf32>
    %308 = vector.broadcast %12 : vector<1x128xf32> to vector<8x128xf32>
    %309 = arith.addf %307, %308 : vector<8x128xf32>
    %c48 = arith.constant 48 : index
    %c0_69 = arith.constant 0 : index
    %310 = vector.load %arg8[%c48, %c0_69] : memref<64x128xf32, #tpu.memory_space<vmem>>, vector<8x128xf32>
    tpu.vector_store %arg8[%c48, %c0_69], %309 {strides = array<i32>} : memref<64x128xf32, #tpu.memory_space<vmem>>, vector<8x128xf32>,
    %cst_70 = arith.constant dense<0.000000e+00> : vector<8x128xf32>
    %311 = tpu.matmul %306, %161, %cst_70 {dimension_numbers = #tpu.dot_dimension_numbers<[1], [0], [0], [1], [0, 0, 1, 1], [], []>, precision = #tpu.contract_precision<fp32>} : vector<8x32xf32>, vector<32x128xf32>, vector<8x128xf32> -> vector<8x128xf32>
    %312 = arith.addf %160, %311 : vector<8x128xf32>
    %313 = arith.negf %312 : vector<8x128xf32>
    %314 = math.exp %313 : vector<8x128xf32>
    %cst_71 = arith.constant 1.000000e+00 : f32
    %315 = vector.broadcast %cst_71 : f32 to vector<8x128xf32>
    %316 = arith.addf %315, %314 : vector<8x128xf32>
    %317 = arith.divf %315, %316 : vector<8x128xf32>
    %318 = vector.extract_strided_slice %312 {offsets = [0, 96], sizes = [8, 32], strides = [1, 1]} : vector<8x128xf32> to vector<8x32xf32>
    %319 = math.tanh %318 : vector<8x32xf32>
    %320 = vector.extract_strided_slice %317 {offsets = [0, 0], sizes = [8, 32], strides = [1, 1]} : vector<8x128xf32> to vector<8x32xf32>
    %321 = vector.extract_strided_slice %317 {offsets = [0, 32], sizes = [8, 32], strides = [1, 1]} : vector<8x128xf32> to vector<8x32xf32>
    %322 = vector.extract_strided_slice %317 {offsets = [0, 64], sizes = [8, 32], strides = [1, 1]} : vector<8x128xf32> to vector<8x32xf32>
    %323 = arith.mulf %321, %304 : vector<8x32xf32>
    %324 = arith.mulf %320, %319 : vector<8x32xf32>
    %325 = arith.addf %323, %324 : vector<8x32xf32>
    %326 = math.tanh %325 : vector<8x32xf32>
    %327 = arith.mulf %322, %326 : vector<8x32xf32>
    %cst_72 = arith.constant dense<0.000000e+00> : vector<8x128xf32>
    %328 = tpu.matmul %327, %11, %cst_72 {dimension_numbers = #tpu.dot_dimension_numbers<[1], [0], [0], [1], [0, 0, 1, 1], [], []>, precision = #tpu.contract_precision<fp32>} : vector<8x32xf32>, vector<32x128xf32>, vector<8x128xf32> -> vector<8x128xf32>
    %329 = vector.broadcast %12 : vector<1x128xf32> to vector<8x128xf32>
    %330 = arith.addf %328, %329 : vector<8x128xf32>
    %c56 = arith.constant 56 : index
    %c0_73 = arith.constant 0 : index
    %331 = vector.load %arg8[%c56, %c0_73] : memref<64x128xf32, #tpu.memory_space<vmem>>, vector<8x128xf32>
    tpu.vector_store %arg8[%c56, %c0_73], %330 {strides = array<i32>} : memref<64x128xf32, #tpu.memory_space<vmem>>, vector<8x128xf32>,
    return
  }
  func.func @transform_0(%arg0: i32) -> (i32, i32) {
    %c0_i32 = arith.constant 0 : i32
    %c0_i32_0 = arith.constant 0 : i32
    %c0_i32_1 = arith.constant 0 : i32
    return %c0_i32, %c0_i32_0 : i32, i32
  }
  func.func @transform_1(%arg0: i32) -> (i32, i32) {
    %c0_i32 = arith.constant 0 : i32
    %c0_i32_0 = arith.constant 0 : i32
    %c0_i32_1 = arith.constant 0 : i32
    return %c0_i32, %c0_i32_0 : i32, i32
  }
  func.func @transform_2(%arg0: i32) -> (i32, i32) {
    %c0_i32 = arith.constant 0 : i32
    %c0_i32_0 = arith.constant 0 : i32
    %c0_i32_1 = arith.constant 0 : i32
    return %c0_i32, %c0_i32_0 : i32, i32
  }
  func.func @transform_3(%arg0: i32) -> (i32, i32) {
    %c0_i32 = arith.constant 0 : i32
    %c0_i32_0 = arith.constant 0 : i32
    %c0_i32_1 = arith.constant 0 : i32
    return %c0_i32, %c0_i32_0 : i32, i32
  }
  func.func @transform_4(%arg0: i32) -> (i32, i32) {
    %c0_i32 = arith.constant 0 : i32
    %c0_i32_0 = arith.constant 0 : i32
    %c0_i32_1 = arith.constant 0 : i32
    return %c0_i32, %c0_i32_0 : i32, i32
  }
  func.func @transform_5(%arg0: i32) -> (i32, i32) {
    %c0_i32 = arith.constant 0 : i32
    %c0_i32_0 = arith.constant 0 : i32
    %c0_i32_1 = arith.constant 0 : i32
    return %c0_i32, %c0_i32_0 : i32, i32
  }
  func.func @transform_6(%arg0: i32) -> (i32, i32) {
    %c0_i32 = arith.constant 0 : i32
    %c0_i32_0 = arith.constant 0 : i32
    %c0_i32_1 = arith.constant 0 : i32
    return %c0_i32, %c0_i32_0 : i32, i32
  }
  func.func @transform_7(%arg0: i32) -> (i32, i32) {
    %c0_i32 = arith.constant 0 : i32
    %c0_i32_0 = arith.constant 0 : i32
    %c0_i32_1 = arith.constant 0 : i32
    return %c0_i32, %c0_i32_0 : i32, i32
  }
}

</mosaic_0001>

<bundles_post_ra>
// kernel: lstm_model_forward.1
= control target key start
LH: loop header
LB: loop body
LE: loop exit
PB: predicated region body
PF: predicated region fallthrough
CT: control target
= control target key end

     0   :  { %12 = vsyncpa [#allocation3], 0  ;;  %s21787_s24 = smov [#allocation2]   ;;  %s23774_s0 = inlined_call_operand.vmem [shape: f32[64,4], index: 0, kind: input, shape index: {}]   ;;  %s23775_s1 = inlined_call_operand.vmem [shape: f32[4,128], index: 1, kind: input, shape index: {}]   ;;  %s23776_s2 = inlined_call_operand.vmem [shape: f32[32,128], index: 2, kind: input, shape index: {}]   ;;  %s23777_s3 = inlined_call_operand.vmem [shape: f32[32,128], index: 3, kind: input, shape index: {}]   ;;  %s23778_s4 = inlined_call_operand.vmem [shape: f32[32,128], index: 4, kind: input, shape index: {}]   ;;  %s23779_s5 = inlined_call_operand.hbm [shape: f32[32,128], index: 5, kind: input, shape index: {}]   ;;  %s23780_s6 = inlined_call_operand.vmem [shape: f32[1,128], index: 6, kind: input, shape index: {}]   ;;  %s23781_s7 = inlined_call_operand.vmem [shape: f32[64,128], index: 7, kind: output, shape index: {}]  }
   0x1   :  { %s28_s25 = sshll.u32 %s21787_s24, 4  ;;  %s21763_s28 = scalar_lea.hbm %s23779_s5, 512  ;;  %s29_s25 = int_to_ptr.vmem [resolvable:$true] %s28_s25 }
   0x2   :  { %p21764_p0 = scmp.ne.s32.totalorder %s23779_s5, %s21763_s28  ;;  %p21767_p1 = scmp.lt.u32.totalorder %s21763_s28, %s23779_s5 }
   0x4   :  { %p21769_p2 = pnand %p21767_p1, %p21764_p0 }
   0x6   :  { %21772 = shalt.err (!%p21769_p2)
}
   0x7   :  { %s21773_s10 = scalar_lea.vmem %s29_s25, 512  ;;  %p21778_p4 = scmp.lt.s32.totalorder %s29_s25, %s29_s25 }
   0x8   :  { %p21774_p3 = scmp.ne.s32.totalorder %s29_s25, %s21773_s10  ;;  %p21779_p5 = scmp.lt.s32.totalorder %s21773_s10, %s21773_s10 }
   0xa   :  { %p21780_p6 = por %p21779_p5, %p21778_p4 }
   0xc   :  { %p21781_p7 = pnand %p21780_p6, %p21774_p3 }
   0xe   :  { %21784 = shalt.err (!%p21781_p7)
}
   0xf   :  { %s21788_s11 = smov 128   ;;  %s21789_s12 = smov 8  }
  0x10   :  { %34 = dma.hbm_to_vmem [thread:$0]  %s23779_s5, 512, %s29_s25, [#allocation3], %s21788_s11, %s21788_s11, %s21789_s12  }
  0x11   :  { %21785 = dma.done.wait [#allocation3], 512  }
  0x12   :  { %21786 = vsyncadd [#allocation3], 4294966784  ;;  %v21790_v0 = vmov 0.0|0.0   ;;  %vm838_vm0 = vcmask 261120   ;;  %vm21791_vm1 = vmmov 0   ;;  %v23786_v1 = vmov 0.0  }
  0x13   :  { %20088 = vmatprep.subr.bf16.mxu1 %v21790_v0  ;;  %17984 = vmatprep.mubr.msk.f32.mxu1 %vm21791_vm1, %v23786_v1  ;;  %v21793_v2 = vmov 0   ;;  %vm74_vm2 = vcmask 1043456   ;;  %v830_v6 = vld [vmem:[%s23776_s2] sm:$0xff]  ;;  %v831_v7 = vld [vmem:[%s23776_s2 + $0x8] sm:$0xff]  ;;  %v832_v8 = vld [vmem:[%s23776_s2 + $0x10] sm:$0xff]  ;;  %vm49_vm3 = vcmask 31744  }
  0x14   :  { %v840_v3 = vsel %vm838_vm0, 1.0, %v21793_v2  ;;  %v843_v10 = vand.u32 4294901760, %v830_v6  ;;  %v846_v11 = vand.u32 4294901760, %v831_v7  ;;  %v833_v12 = vld [vmem:[%s23776_s2 + $0x18] sm:$0xff]  ;;  %v849_v13 = vand.u32 4294901760, %v832_v8  ;;  %v40_v17 = vld [vmem:[%s23774_s0] sm:$0xff] }
  0x15   :  { %v21853_v4 = vsub.f32 %v840_v3, %v840_v3  ;;  %v48_v14 = vld [vmem:[%s23775_s1] sm:$0xf]  ;;  %v852_v15 = vand.u32 4294901760, %v833_v12  ;;  %v41_v18 = vld [vmem:[%s23774_s0 + $0x8] sm:$0xff]  ;;  %v42_v20 = vld [vmem:[%s23774_s0 + $0x10] sm:$0xff]  ;;  %v51_v23 = vsel %vm49_vm3, %v40_v17, 0 }
  0x16   :  { %v76_v16 = vsel %vm74_vm2, %v48_v14, 0  ;;  %v21886_v21 = vpack.c.bf16 %v846_v11, %v843_v10  ;;  %v54_v24 = vsel %vm49_vm3, %v41_v18, 0  ;;  %v43_v25 = vld [vmem:[%s23774_s0 + $0x18] sm:$0xff]  ;;  %v21897_v27 = vand.u32 4294901760, %v51_v23  ;;  %v44_v54 = vld [vmem:[%s23774_s0 + $0x20] sm:$0xff]  ;;  %v45_v59 = vld [vmem:[%s23774_s0 + $0x28] sm:$0xff] }
  0x17   :  { %v21856_v5 = vand.u32 4294901760, %v21853_v4  ;;  %v21888_v22 = vand.u32 4294901760, %v76_v16  ;;  %v21895_v26 = vpack.c.bf16 %v852_v15, %v849_v13  ;;  %v21899_v28 = vand.u32 4294901760, %v54_v24  ;;  %v46_v2 = vld [vmem:[%s23774_s0 + $0x30] sm:$0xff]  ;;  %s21796_s5 = smov 64  }
  0x18   :  { %v21901_v29 = vsub.f32 %v830_v6, %v843_v10  ;;  %20090 = vmatpush3.bf16.msra.mxu1 %v21886_v21  ;;  %v21908_v31 = vsub.f32 %v831_v7, %v846_v11  ;;  %v57_v32 = vsel %vm49_vm3, %v42_v20, 0  ;;  %v60_v33 = vsel %vm49_vm3, %v43_v25, 0 }
  0x19   :  { %v914_v9 = vsub.f32 %v21853_v4, %v21856_v5  ;;  %17892 = vmatprep.subr.mxu0 %v21888_v22  ;;  %v21906_v30 = vsub.f32 %v76_v16, %v21888_v22  ;;  %20091 = vmatprep.subr.bf16.mxu1 %v21790_v0  ;;  %v21915_v34 = vsub.f32 %v51_v23, %v21897_v27  ;;  %v21921_v37 = vand.u32 4294901760, %v57_v32 }
  0x1a   :  { %17893 = vmatpush3.msra.mxu0 %v21888_v22  ;;  %v21918_v35 = vsub.f32 %v54_v24, %v21899_v28  ;;  %v924_v36 = vand.u32 4294901760, %v21901_v29  ;;  %v931_v39 = vand.u32 4294901760, %v21908_v31  ;;  %v21927_v40 = vand.u32 4294901760, %v60_v33 }
  0x1b   :  { %v21881_v19 = vand.u32 4294901760, %v914_v9  ;;  %v21924_v38 = vand.u32 4294901760, %v21906_v30  ;;  %v21929_v41 = vsub.f32 %v832_v8, %v849_v13  ;;  %v146_v42 = vand.u32 4294901760, %v21915_v34  ;;  %v47_v8 = vld [vmem:[%s23774_s0 + $0x38] sm:$0xff]  ;;  %s21795_s0 = smov 32  }
  0x1c   :  { %v156_v43 = vand.u32 4294901760, %v21918_v35  ;;  %v925_v44 = vsub.f32 %v21901_v29, %v924_v36  ;;  %v21937_v45 = vsub.f32 %v57_v32, %v21921_v37  ;;  %20093 = vmatpush3.bf16.msra.mxu1 %v21895_v26  ;;  %v932_v47 = vsub.f32 %v21908_v31, %v931_v39 }
  0x1d   :  { %v228_v46 = vsub.f32 %v21906_v30, %v21924_v38  ;;  %v21946_v48 = vsub.f32 %v60_v33, %v21927_v40  ;;  %v938_v49 = vand.u32 4294901760, %v21929_v41  ;;  %v147_v50 = vsub.f32 %v21915_v34, %v146_v42  ;;  %20094 = vmatprep.subr.bf16.mxu1 %v21790_v0 }
  0x1e   :  { %v157_v51 = vsub.f32 %v21918_v35, %v156_v43  ;;  %v926_v52 = vand.u32 4294901760, %v925_v44  ;;  %v166_v53 = vand.u32 4294901760, %v21937_v45  ;;  %v933_v56 = vand.u32 4294901760, %v932_v47 }
  0x1f   :  { %v229_v55 = vand.u32 4294901760, %v228_v46  ;;  %v176_v57 = vand.u32 4294901760, %v21946_v48  ;;  %v939_v58 = vsub.f32 %v21929_v41, %v938_v49  ;;  %v148_v60 = vand.u32 4294901760, %v147_v50  ;;  %17985 = vmatmul.mubr.f32.vlgmr.msra.gmra.mrb[0].mxu1 %v21881_v19 }
  0x20   :  { %v158_v61 = vand.u32 4294901760, %v157_v51  ;;  %v167_v62 = vsub.f32 %v21937_v45, %v166_v53  ;;  %v21971_v63 = vsub.f32 %v833_v12, %v852_v15  ;;  %v21976_v3 = vpack.c.bf16 %v933_v56, %v926_v52  ;;  %17995 = vmatprep.mubr.msk.f32.mxu1 %vm21791_vm1, %v23786_v1 }
  0x21   :  { %17906 = vmatprep.subr.mxu0 %v229_v55  ;;  %v177_v6 = vsub.f32 %v21946_v48, %v176_v57  ;;  %v63_v7 = vsel %vm49_vm3, %v44_v54, 0  ;;  %17894 = vmatprep.mubr.f32.mxu0 %v148_v60  ;;  %v66_v12 = vsel %vm49_vm3, %v45_v59, 0  ;;  %v940_v14 = vand.u32 4294901760, %v939_v58 }
  0x22   :  { %v168_v9 = vand.u32 4294901760, %v167_v62  ;;  %v945_v10 = vand.u32 4294901760, %v21971_v63  ;;  %v21988_v11 = vand.u32 4294901760, %v63_v7  ;;  %17895 = vmatmul.mubr.f32.vlgmr.msra.gmra.mrb[0].mxu0 %v158_v61  ;;  %20096 = vmatpush3.bf16.msra.mxu1 %v21976_v3  ;;  %v21992_v15 = vand.u32 4294901760, %v66_v12 }
  0x23   :  { %v178_v13 = vand.u32 4294901760, %v177_v6  ;;  %v69_v16 = vsel %vm49_vm3, %v46_v2, 0  ;;  %17907 = vmatpush3.msra.mxu0 %v229_v55  ;;  %v72_v23 = vsel %vm49_vm3, %v47_v8, 0  ;;  %20097 = vmatprep.subr.bf16.mxu1 %v21790_v0  ;;  %v22032_v58 = vpack.c.bf16 %v21908_v31, %v21901_v29 }
  0x24   :  { %17897 = vmatprep.mubr.f32.mxu0 %v168_v9  ;;  %v946_v17 = vsub.f32 %v21971_v63, %v945_v10  ;;  %v21999_v18 = vsub.f32 %v63_v7, %v21988_v11  ;;  %v22001_v20 = vand.u32 4294901760, %v69_v16  ;;  %v22006_v24 = vsub.f32 %v66_v12, %v21992_v15  ;;  %17920 = vmatprep.subr.mxu0 %v21906_v30 }
  0x25   :  { %v22008_v25 = vand.u32 4294901760, %v72_v23  ;;  %v21794_v2 = vmov 1.0   ;;  %v22046_v7 = vpack.c.bf16 %v21971_v63, %v21929_v41  ;;  %v22081_v8 = vpack.c.bf16 %v945_v10, %v938_v49 }
  0x26   :  { %v947_v32 = vand.u32 4294901760, %v946_v17  ;;  %v186_v33 = vand.u32 4294901760, %v21999_v18  ;;  %v22013_v44 = vsub.f32 %v69_v16, %v22001_v20  ;;  %17898 = vmatmul.mubr.f32.gmra.mrb[2].mxu0 %v178_v13  ;;  %v196_v46 = vand.u32 4294901760, %v22006_v24 }
  0x27   :  { %v22017_v47 = vsub.f32 %v72_v23, %v22008_v25 }
  0x28   :  { %v22019_v50 = vpack.c.bf16 %v947_v32, %v940_v14  ;;  %v187_v51 = vsub.f32 %v21999_v18, %v186_v33  ;;  %v206_v52 = vand.u32 4294901760, %v22013_v44  ;;  %v197_v54 = vsub.f32 %v22006_v24, %v196_v46 }
  0x29   :  { %v216_v55 = vand.u32 4294901760, %v22017_v47 }
  0x2a   :  { %20099 = vmatpush3.bf16.msra.mxu1 %v22019_v50  ;;  %v188_v56 = vand.u32 4294901760, %v187_v51  ;;  %v207_v59 = vsub.f32 %v22013_v44, %v206_v52  ;;  %v198_v60 = vand.u32 4294901760, %v197_v54 }
  0x2b   :  { %20100 = vmatprep.subr.bf16.mxu1 %v21790_v0  ;;  %v217_v61 = vsub.f32 %v22017_v47, %v216_v55 }
  0x2c   :  { %17900 = vmatprep.mubr.f32.mxu0 %v188_v56  ;;  %v208_v62 = vand.u32 4294901760, %v207_v59 }
  0x2d   :  { %17901 = vmatmul.mubr.f32.gmra.mrb[4].mxu0 %v198_v60  ;;  %17996 = vmatmul.mubr.msk.f32.vlgmr.msra.gmra.mrb[0].mxu1 %vm838_vm0, %v21794_v2  ;;  %v218_v6 = vand.u32 4294901760, %v217_v61 }
  0x2e   :  { %20102 = vmatpush3.bf16.msra.mxu1 %v22032_v58  ;;  %17903 = vmatprep.mubr.f32.mxu0 %v208_v62 }
  0x2f   :  { %20103 = vmatprep.subr.bf16.mxu1 %v21790_v0  ;;  %18006 = vmatprep.mubr.msk.f32.mxu1 %vm21791_vm1, %v23786_v1 }
  0x31   :  { %17904 = vmatmul.mubr.f32.gmra.mrb[6].mxu0 %v218_v6 }
  0x32   :  { %20105 = vmatpush3.bf16.msra.mxu1 %v22046_v7  ;;  %17908 = vmatprep.mubr.f32.mxu0 %v21897_v27 }
  0x33   :  { %20106 = vmatprep.subr.bf16.mxu1 %v21790_v0 }
  0x35   :  { %17909 = vmatmul.mubr.f32.vlgmr.msra.gmra.mrb[0].mxu0 %v21899_v28  ;;  %18007 = vmatmul.mubr.f32.vlgmr.msra.gmra.mrb[0].mxu1 %v21853_v4 }
  0x36   :  { %17921 = vmatpush3.msra.mxu0 %v21906_v30  ;;  %20108 = vmatpush3.bf16.msra.mxu1 %v21886_v21  ;;  %v22070_v30 = vpack.c.bf16 %v931_v39, %v924_v36 }
  0x37   :  { %17911 = vmatprep.mubr.f32.mxu0 %v21921_v37  ;;  %20109 = vmatprep.subr.bf16.mxu1 %v21790_v0 }
  0x38   :  { %18017 = vmatprep.mubr.msk.f32.mxu1 %vm21791_vm1, %v23786_v1  ;;  %17934 = vmatprep.subr.mxu0 %v21888_v22 }
  0x39   :  { %17912 = vmatmul.mubr.f32.gmra.mrb[2].mxu0 %v21927_v40 }
  0x3a   :  { %20111 = vmatpush3.bf16.msra.mxu1 %v21895_v26  ;;  %17914 = vmatprep.mubr.f32.mxu0 %v21988_v11 }
  0x3b   :  { %20112 = vmatprep.subr.bf16.mxu1 %v21790_v0 }
  0x3d   :  { %17915 = vmatmul.mubr.f32.gmra.mrb[4].mxu0 %v21992_v15  ;;  %18018 = vmatmul.mubr.f32.vlgmr.msra.gmra.mrb[0].mxu1 %v21856_v5 }
  0x3e   :  { %20114 = vmatpush3.bf16.msra.mxu1 %v22070_v30  ;;  %17917 = vmatprep.mubr.f32.mxu0 %v22001_v20 }
  0x3f   :  { %20115 = vmatprep.subr.bf16.mxu1 %v21790_v0  ;;  %18028 = vmatprep.mubr.msk.f32.mxu1 %vm21791_vm1, %v23786_v1 }
  0x41   :  { %17918 = vmatmul.mubr.f32.gmra.mrb[6].mxu0 %v22008_v25 }
  0x42   :  { %20117 = vmatpush3.bf16.msra.mxu1 %v22081_v8  ;;  %17922 = vmatprep.mubr.f32.mxu0 %v21915_v34 }
  0x43   :  { %20118 = vmatprep.subr.bf16.mxu1 %v21790_v0 }
  0x45   :  { %17923 = vmatmul.mubr.f32.vlgmr.msra.gmra.mrb[0].mxu0 %v21918_v35  ;;  %18029 = vmatmul.mubr.msk.f32.vlgmr.msra.gmra.mrb[0].mxu1 %vm838_vm0, %v21794_v2 }
  0x46   :  { %17935 = vmatpush3.msra.mxu0 %v21888_v22  ;;  %20120 = vmatpush3.bf16.msra.mxu1 %v21886_v21 }
  0x47   :  { %17925 = vmatprep.mubr.f32.mxu0 %v21937_v45  ;;  %20121 = vmatprep.subr.bf16.mxu1 %v21790_v0 }
  0x48   :  { %18039 = vmatprep.mubr.msk.f32.mxu1 %vm21791_vm1, %v23786_v1  ;;  %17948 = vmatprep.subr.mxu0 %v21924_v38 }
  0x49   :  { %17926 = vmatmul.mubr.f32.gmra.mrb[2].mxu0 %v21946_v48 }
  0x4a   :  { %20123 = vmatpush3.bf16.msra.mxu1 %v21895_v26  ;;  %17928 = vmatprep.mubr.f32.mxu0 %v21999_v18 }
  0x4b   :  { %20124 = vmatprep.subr.bf16.mxu1 %v21790_v0 }
  0x4d   :  { %17929 = vmatmul.mubr.f32.gmra.mrb[4].mxu0 %v22006_v24  ;;  %18040 = vmatmul.mubr.msk.f32.vlgmr.msra.gmra.mrb[0].mxu1 %vm838_vm0, %v21794_v2 }
  0x4e   :  { %17931 = vmatprep.mubr.f32.mxu0 %v22013_v44  ;;  %20126 = vmatpush3.bf16.msra.mxu1 %v21886_v21 }
  0x4f   :  { %20127 = vmatprep.subr.bf16.mxu1 %v21790_v0  ;;  %18050 = vmatprep.mubr.msk.f32.mxu1 %vm21791_vm1, %v23786_v1 }
  0x51   :  { %17932 = vmatmul.mubr.f32.gmra.mrb[6].mxu0 %v22017_v47 }
  0x52   :  { %17936 = vmatprep.mubr.f32.mxu0 %v146_v42  ;;  %20129 = vmatpush3.bf16.msra.mxu1 %v21895_v26 }
  0x53   :  { %20130 = vmatprep.subr.bf16.mxu1 %v21790_v0 }
  0x55   :  { %17937 = vmatmul.mubr.f32.vlgmr.msra.gmra.mrb[0].mxu0 %v156_v43 }
  0x56   :  { %17949 = vmatpush3.msra.mxu0 %v21924_v38  ;;  %17939 = vmatprep.mubr.f32.mxu0 %v166_v53 }
  0x57   :  { %17962 = vmatprep.subr.mxu0 %v21888_v22 }
  0x59   :  { %17940 = vmatmul.mubr.f32.gmra.mrb[2].mxu0 %v176_v57 }
  0x5a   :  { %17942 = vmatprep.mubr.f32.mxu0 %v186_v33 }
  0x5d   :  { %17943 = vmatmul.mubr.f32.gmra.mrb[4].mxu0 %v196_v46 }
  0x5e   :  { %17945 = vmatprep.mubr.f32.mxu0 %v206_v52 }
  0x61   :  { %17946 = vmatmul.mubr.f32.gmra.mrb[6].mxu0 %v216_v55 }
  0x62   :  { %17950 = vmatprep.mubr.f32.mxu0 %v21897_v27 }
  0x65   :  { %17951 = vmatmul.mubr.f32.vlgmr.msra.gmra.mrb[0].mxu0 %v21899_v28 }
  0x66   :  { %17963 = vmatpush3.msra.mxu0 %v21888_v22  ;;  %17953 = vmatprep.mubr.f32.mxu0 %v21921_v37 }
  0x67   :  { %20160 = vmatprep.subr.bf16.mxu0 %v21790_v0 }
  0x69   :  { %17954 = vmatmul.mubr.f32.gmra.mrb[2].mxu0 %v21927_v40 }
  0x6a   :  { %17956 = vmatprep.mubr.f32.mxu0 %v21988_v11 }
  0x6d   :  { %17957 = vmatmul.mubr.f32.gmra.mrb[4].mxu0 %v21992_v15 }
  0x6e   :  { %17959 = vmatprep.mubr.f32.mxu0 %v22001_v20 }
  0x71   :  { %17960 = vmatmul.mubr.f32.gmra.mrb[6].mxu0 %v22008_v25 }
  0x72   :  { %17964 = vmatprep.mubr.f32.mxu0 %v21897_v27 }
  0x75   :  { %17965 = vmatmul.mubr.f32.vlgmr.msra.gmra.mrb[0].mxu0 %v21899_v28 }
  0x76   :  { %17967 = vmatprep.mubr.f32.mxu0 %v21921_v37  ;;  %20162 = vmatpush3.bf16.msra.mxu0 %v21886_v21 }
  0x77   :  { %20163 = vmatprep.subr.bf16.mxu0 %v21790_v0 }
  0x79   :  { %17968 = vmatmul.mubr.f32.gmra.mrb[2].mxu0 %v21927_v40 }
  0x7a   :  { %17970 = vmatprep.mubr.f32.mxu0 %v21988_v11  ;;  %20165 = vmatpush3.bf16.msra.mxu0 %v21895_v26 }
  0x7b   :  { %20166 = vmatprep.subr.bf16.mxu0 %v21790_v0 }
  0x7d   :  { %17971 = vmatmul.mubr.f32.gmra.mrb[4].mxu0 %v21992_v15 }
  0x7e   :  { %17973 = vmatprep.mubr.f32.mxu0 %v22001_v20 }
  0x81   :  { %17974 = vmatmul.mubr.f32.gmra.mrb[6].mxu0 %v22008_v25 }
  0x82   :  { %18116 = vmatprep.mubr.msk.f32.mxu0 %vm21791_vm1, %v23786_v1 }
 0x120   :  { %v1323_v22 = vpop.f32.mrb[0].mxu1 }
 0x121   :  { %v18041_v27 = vpop.f32.mrb[1].mxu1 }
 0x148   :  { %v22157_v28 = vpop.f32.mrb[0].mxu0 }
 0x149   :  { %v779_v29 = vpop.f32.mrb[1].mxu0 }
 0x14a   :  { %v1327_v31 = vadd.f32 %v1323_v22, %v779_v29 }
 0x14c   :  { %21634 = vtanh.f32 %v1327_v31  ;;  %v22159_v34 = vpop.f32.mrb[2].mxu0  ;;  %v16858_v41 = vmul.f32 -1.442695, %v1327_v31 }
 0x14d   :  { %v22161_v35 = vpop.f32.mrb[3].mxu0 }
 0x14e   :  { %21636 = vpow2.f32 %v16858_v41 }
 0x150   :  { %v22163_v36 = vpop.f32.mrb[4].mxu0 }
 0x151   :  { %v22165_v37 = vpop.f32.mrb[5].mxu0 }
 0x154   :  { %v22167_v38 = vpop.f32.mrb[6].mxu0 }
 0x155   :  { %v22169_v39 = vpop.f32.mrb[7].mxu0 }
 0x156   :  { %v21635_v40 = vpop.eup %21634 }
 0x157   :  { %1336 = vrot.lane.b32.xlu0 %v21635_v40, %s21795_s0 }
 0x158   :  { %v21637_v42 = vpop.eup %21636 }
 0x159   :  { %v1331_v43 = vadd.f32 1.0, %v21637_v42 }
 0x15b   :  { %21638 = vrcp.f32 %v1331_v43 }
 0x165   :  { %v21639_v45 = vpop.eup %21638 }
 0x1c9   :  { %v1337_v48 = vpop.permute.xlu0 %1336 }
 0x1ca   :  { %v1339_v49 = vmul.f32 %v21639_v45, %v1337_v48 }
 0x1cc   :  { %1341 = vrot.lane.b32.xlu0 %v1339_v49, %s21795_s0 }
 0x23e   :  { %v1342_v53 = vpop.permute.xlu0 %1341 }
 0x23f   :  { %v22173_v57 = vadd.f32 %v21639_v45, %v1342_v53 }
 0x241   :  { %21640 = vtanh.f32 %v22173_v57 }
 0x24b   :  { %v21641_v63 = vpop.eup %21640 }
 0x24c   :  { %1347 = vrot.lane.b32.xlu1 %v21641_v63, %s21795_s0 }
 0x2be   :  { %v1348_v9 = vpop.permute.xlu1 %1347 }
 0x2bf   :  { %v1350_v10 = vmul.f32 %v21639_v45, %v1348_v9 }
 0x2c1   :  { %1352 = vrot.lane.b32.xlu1 %v1350_v10, %s21796_s5 }
 0x333   :  { %v1353_v11 = vpop.permute.xlu1 %1352 }
 0x334   :  { %v1354_v12 = vsel %vm838_vm0, %v1353_v11, 0 }
 0x335   :  { %v22179_v13 = vand.u32 4294901760, %v1354_v12 }
 0x337   :  { %v22182_v14 = vsub.f32 %v1354_v12, %v22179_v13 }
 0x339   :  { %v22185_v15 = vand.u32 4294901760, %v22182_v14 }
 0x33b   :  { %v1428_v16 = vsub.f32 %v22182_v14, %v22185_v15 }
 0x33d   :  { %v22189_v17 = vand.u32 4294901760, %v1428_v16 }
 0x33f   :  { %18051 = vmatmul.mubr.f32.vlgmr.msra.gmra.mrb[2].mxu1 %v22189_v17 }
 0x340   :  { %20132 = vmatpush3.bf16.msra.mxu1 %v21976_v3  ;;  %18061 = vmatprep.mubr.msk.f32.mxu1 %vm21791_vm1, %v23786_v1 }
 0x341   :  { %20133 = vmatprep.subr.bf16.mxu1 %v21790_v0 }
 0x344   :  { %20135 = vmatpush3.bf16.msra.mxu1 %v22019_v50 }
 0x345   :  { %20136 = vmatprep.subr.bf16.mxu1 %v21790_v0 }
 0x347   :  { %18062 = vmatmul.mubr.f32.vlgmr.msra.gmra.mrb[2].mxu1 %v22179_v13 }
 0x348   :  { %20138 = vmatpush3.bf16.msra.mxu1 %v22032_v58  ;;  %18072 = vmatprep.mubr.msk.f32.mxu1 %vm21791_vm1, %v23786_v1 }
 0x349   :  { %20139 = vmatprep.subr.bf16.mxu1 %v21790_v0 }
 0x34c   :  { %20141 = vmatpush3.bf16.msra.mxu1 %v22046_v7 }
 0x34d   :  { %20142 = vmatprep.subr.bf16.mxu1 %v21790_v0 }
 0x34f   :  { %18073 = vmatmul.mubr.f32.vlgmr.msra.gmra.mrb[2].mxu1 %v22182_v14 }
 0x350   :  { %20144 = vmatpush3.bf16.msra.mxu1 %v21886_v21  ;;  %18083 = vmatprep.mubr.msk.f32.mxu1 %vm21791_vm1, %v23786_v1 }
 0x351   :  { %20145 = vmatprep.subr.bf16.mxu1 %v21790_v0 }
 0x354   :  { %20147 = vmatpush3.bf16.msra.mxu1 %v21895_v26 }
 0x355   :  { %20148 = vmatprep.subr.bf16.mxu1 %v21790_v0 }
 0x357   :  { %18084 = vmatmul.mubr.f32.vlgmr.msra.gmra.mrb[2].mxu1 %v22185_v15 }
 0x358   :  { %20150 = vmatpush3.bf16.msra.mxu1 %v22070_v30  ;;  %18094 = vmatprep.mubr.msk.f32.mxu1 %vm21791_vm1, %v23786_v1 }
 0x359   :  { %20151 = vmatprep.subr.bf16.mxu1 %v21790_v0 }
 0x35c   :  { %20153 = vmatpush3.bf16.msra.mxu1 %v22081_v8 }
 0x35d   :  { %20154 = vmatprep.subr.bf16.mxu1 %v21790_v0 }
 0x35f   :  { %18095 = vmatmul.mubr.f32.vlgmr.msra.gmra.mrb[2].mxu1 %v22179_v13 }
 0x360   :  { %20156 = vmatpush3.bf16.msra.mxu1 %v21886_v21  ;;  %18105 = vmatprep.mubr.msk.f32.mxu1 %vm21791_vm1, %v23786_v1 }
 0x361   :  { %20157 = vmatprep.subr.bf16.mxu1 %v21790_v0 }
 0x364   :  { %20159 = vmatpush3.bf16.msra.mxu1 %v21895_v26 }
 0x365   :  { %20196 = vmatprep.subr.bf16.mxu1 %v21790_v0 }
 0x367   :  { %18106 = vmatmul.mubr.f32.vlgmr.msra.gmra.mrb[2].mxu1 %v22179_v13 }
 0x368   :  { %20198 = vmatpush3.bf16.msra.mxu1 %v21886_v21  ;;  %18182 = vmatprep.mubr.msk.f32.mxu1 %vm21791_vm1, %v23786_v1 }
 0x369   :  { %20199 = vmatprep.subr.bf16.mxu1 %v21790_v0 }
 0x36c   :  { %20201 = vmatpush3.bf16.msra.mxu1 %v21895_v26 }
 0x36d   :  { %20202 = vmatprep.subr.bf16.mxu1 %v21790_v0 }
 0x43a   :  { %v1837_v18 = vpop.f32.mrb[2].mxu1 }
 0x43b   :  { %v1841_v20 = vadd.f32 %v22157_v28, %v1837_v18  ;;  %v18107_v23 = vpop.f32.mrb[3].mxu1 }
 0x43d   :  { %21642 = vtanh.f32 %v1841_v20  ;;  %v16859_v25 = vmul.f32 -1.442695, %v1841_v20 }
 0x43f   :  { %21644 = vpow2.f32 %v16859_v25 }
 0x447   :  { %v21643_v24 = vpop.eup %21642 }
 0x448   :  { %1851 = vrot.lane.b32.xlu0 %v21643_v24, %s21795_s0 }
 0x449   :  { %v21645_v32 = vpop.eup %21644 }
 0x44a   :  { %v1845_v33 = vadd.f32 1.0, %v21645_v32 }
 0x44c   :  { %21646 = vrcp.f32 %v1845_v33 }
 0x456   :  { %v21647_v44 = vpop.eup %21646 }
 0x457   :  { %v1849_v51 = vmul.f32 %v21647_v44, %v22173_v57 }
 0x4ba   :  { %v1852_v46 = vpop.permute.xlu0 %1851 }
 0x4bb   :  { %v1854_v47 = vmul.f32 %v21647_v44, %v1852_v46 }
 0x4bd   :  { %1856 = vrot.lane.b32.xlu1 %v1854_v47, %s21795_s0 }
 0x52f   :  { %v1857_v52 = vpop.permute.xlu1 %1856 }
 0x530   :  { %v22237_v54 = vadd.f32 %v1857_v52, %v1849_v51 }
 0x532   :  { %21648 = vtanh.f32 %v22237_v54 }
 0x53c   :  { %v21649_v55 = vpop.eup %21648 }
 0x53d   :  { %1862 = vrot.lane.b32.xlu0 %v21649_v55, %s21795_s0 }
 0x5af   :  { %v1863_v56 = vpop.permute.xlu0 %1862 }
 0x5b0   :  { %v1865_v59 = vmul.f32 %v21647_v44, %v1863_v56 }
 0x5b2   :  { %1867 = vrot.lane.b32.xlu1 %v1865_v59, %s21796_s5 }
 0x624   :  { %v1868_v60 = vpop.permute.xlu1 %1867 }
 0x625   :  { %v1869_v61 = vsel %vm838_vm0, %v1868_v60, 0 }
 0x626   :  { %v22243_v62 = vand.u32 4294901760, %v1869_v61 }
 0x628   :  { %v22246_v6 = vsub.f32 %v1869_v61, %v22243_v62 }
 0x62a   :  { %v22249_v22 = vand.u32 4294901760, %v22246_v6 }
 0x62c   :  { %v1943_v27 = vsub.f32 %v22246_v6, %v22249_v22 }
 0x62e   :  { %v22253_v28 = vand.u32 4294901760, %v1943_v27 }
 0x630   :  { %18117 = vmatmul.mubr.f32.vlgmr.msra.gmra.mrb[8].mxu0 %v22253_v28 }
 0x631   :  { %20168 = vmatpush3.bf16.msra.mxu0 %v21976_v3  ;;  %18127 = vmatprep.mubr.msk.f32.mxu0 %vm21791_vm1, %v23786_v1 }
 0x632   :  { %20169 = vmatprep.subr.bf16.mxu0 %v21790_v0 }
 0x635   :  { %20171 = vmatpush3.bf16.msra.mxu0 %v22019_v50 }
 0x636   :  { %20172 = vmatprep.subr.bf16.mxu0 %v21790_v0 }
 0x638   :  { %18128 = vmatmul.mubr.f32.vlgmr.msra.gmra.mrb[8].mxu0 %v22243_v62 }
 0x639   :  { %20174 = vmatpush3.bf16.msra.mxu0 %v22032_v58  ;;  %18138 = vmatprep.mubr.msk.f32.mxu0 %vm21791_vm1, %v23786_v1 }
 0x63a   :  { %20175 = vmatprep.subr.bf16.mxu0 %v21790_v0 }
 0x63d   :  { %20177 = vmatpush3.bf16.msra.mxu0 %v22046_v7 }
 0x63e   :  { %20178 = vmatprep.subr.bf16.mxu0 %v21790_v0 }
 0x640   :  { %18139 = vmatmul.mubr.f32.vlgmr.msra.gmra.mrb[8].mxu0 %v22246_v6 }
 0x641   :  { %20180 = vmatpush3.bf16.msra.mxu0 %v21886_v21  ;;  %18149 = vmatprep.mubr.msk.f32.mxu0 %vm21791_vm1, %v23786_v1 }
 0x642   :  { %20181 = vmatprep.subr.bf16.mxu0 %v21790_v0 }
 0x645   :  { %20183 = vmatpush3.bf16.msra.mxu0 %v21895_v26 }
 0x646   :  { %20184 = vmatprep.subr.bf16.mxu0 %v21790_v0 }
 0x648   :  { %18150 = vmatmul.mubr.f32.vlgmr.msra.gmra.mrb[8].mxu0 %v22249_v22 }
 0x649   :  { %20186 = vmatpush3.bf16.msra.mxu0 %v22070_v30  ;;  %18160 = vmatprep.mubr.msk.f32.mxu0 %vm21791_vm1, %v23786_v1 }
 0x64a   :  { %20187 = vmatprep.subr.bf16.mxu0 %v21790_v0 }
 0x64d   :  { %20189 = vmatpush3.bf16.msra.mxu0 %v22081_v8 }
 0x64e   :  { %20190 = vmatprep.subr.bf16.mxu0 %v21790_v0 }
 0x650   :  { %18161 = vmatmul.mubr.f32.vlgmr.msra.gmra.mrb[8].mxu0 %v22243_v62 }
 0x651   :  { %20192 = vmatpush3.bf16.msra.mxu0 %v21886_v21  ;;  %18171 = vmatprep.mubr.msk.f32.mxu0 %vm21791_vm1, %v23786_v1 }
 0x652   :  { %20193 = vmatprep.subr.bf16.mxu0 %v21790_v0 }
 0x655   :  { %20195 = vmatpush3.bf16.msra.mxu0 %v21895_v26 }
 0x656   :  { %20232 = vmatprep.subr.bf16.mxu0 %v21790_v0 }
 0x658   :  { %18172 = vmatmul.mubr.f32.vlgmr.msra.gmra.mrb[8].mxu0 %v22243_v62 }
 0x659   :  { %20234 = vmatpush3.bf16.msra.mxu0 %v21886_v21  ;;  %18248 = vmatprep.mubr.msk.f32.mxu0 %vm21791_vm1, %v23786_v1 }
 0x65a   :  { %20235 = vmatprep.subr.bf16.mxu0 %v21790_v0 }
 0x65d   :  { %20237 = vmatpush3.bf16.msra.mxu0 %v21895_v26 }
 0x65e   :  { %20238 = vmatprep.subr.bf16.mxu0 %v21790_v0 }
 0x72b   :  { %v2352_v29 = vpop.f32.mrb[8].mxu0 }
 0x72c   :  { %v2356_v31 = vadd.f32 %v2352_v29, %v22161_v35  ;;  %v18173_v40 = vpop.f32.mrb[9].mxu0 }
 0x72e   :  { %21650 = vtanh.f32 %v2356_v31  ;;  %v16860_v42 = vmul.f32 -1.442695, %v2356_v31 }
 0x730   :  { %21652 = vpow2.f32 %v16860_v42 }
 0x738   :  { %v21651_v41 = vpop.eup %21650 }
 0x739   :  { %2366 = vrot.lane.b32.xlu0 %v21651_v41, %s21795_s0 }
 0x73a   :  { %v21653_v43 = vpop.eup %21652 }
 0x73b   :  { %v2360_v45 = vadd.f32 1.0, %v21653_v43 }
 0x73d   :  { %21654 = vrcp.f32 %v2360_v45 }
 0x747   :  { %v21655_v48 = vpop.eup %21654 }
 0x748   :  { %v2364_v57 = vmul.f32 %v21655_v48, %v22237_v54 }
 0x7ab   :  { %v2367_v49 = vpop.permute.xlu0 %2366 }
 0x7ac   :  { %v2369_v53 = vmul.f32 %v21655_v48, %v2367_v49 }
 0x7ae   :  { %2371 = vrot.lane.b32.xlu1 %v2369_v53, %s21795_s0 }
 0x820   :  { %v2372_v63 = vpop.permute.xlu1 %2371 }
 0x821   :  { %v22301_v9 = vadd.f32 %v2372_v63, %v2364_v57 }
 0x823   :  { %21656 = vtanh.f32 %v22301_v9 }
 0x82d   :  { %v21657_v35 = vpop.eup %21656 }
 0x82e   :  { %2377 = vrot.lane.b32.xlu0 %v21657_v35, %s21795_s0 }
 0x8a0   :  { %v2378_v10 = vpop.permute.xlu0 %2377 }
 0x8a1   :  { %v2380_v11 = vmul.f32 %v21655_v48, %v2378_v10 }
 0x8a3   :  { %2382 = vrot.lane.b32.xlu1 %v2380_v11, %s21796_s5 }
 0x915   :  { %v2383_v12 = vpop.permute.xlu1 %2382 }
 0x916   :  { %v2384_v16 = vsel %vm838_vm0, %v2383_v12, 0 }
 0x917   :  { %v22307_v18 = vand.u32 4294901760, %v2384_v16 }
 0x919   :  { %v22310_v20 = vsub.f32 %v2384_v16, %v22307_v18 }
 0x91b   :  { %v22313_v23 = vand.u32 4294901760, %v22310_v20 }
 0x91d   :  { %v2458_v24 = vsub.f32 %v22310_v20, %v22313_v23 }
 0x91f   :  { %v22317_v25 = vand.u32 4294901760, %v2458_v24 }
 0x921   :  { %18183 = vmatmul.mubr.f32.vlgmr.msra.gmra.mrb[4].mxu1 %v22317_v25 }
 0x922   :  { %20204 = vmatpush3.bf16.msra.mxu1 %v21976_v3  ;;  %18193 = vmatprep.mubr.msk.f32.mxu1 %vm21791_vm1, %v23786_v1 }
 0x923   :  { %20205 = vmatprep.subr.bf16.mxu1 %v21790_v0 }
 0x926   :  { %20207 = vmatpush3.bf16.msra.mxu1 %v22019_v50 }
 0x927   :  { %20208 = vmatprep.subr.bf16.mxu1 %v21790_v0 }
 0x929   :  { %18194 = vmatmul.mubr.f32.vlgmr.msra.gmra.mrb[4].mxu1 %v22307_v18 }
 0x92a   :  { %20210 = vmatpush3.bf16.msra.mxu1 %v22032_v58  ;;  %18204 = vmatprep.mubr.msk.f32.mxu1 %vm21791_vm1, %v23786_v1 }
 0x92b   :  { %20211 = vmatprep.subr.bf16.mxu1 %v21790_v0 }
 0x92e   :  { %20213 = vmatpush3.bf16.msra.mxu1 %v22046_v7 }
 0x92f   :  { %20214 = vmatprep.subr.bf16.mxu1 %v21790_v0 }
 0x931   :  { %18205 = vmatmul.mubr.f32.vlgmr.msra.gmra.mrb[4].mxu1 %v22310_v20 }
 0x932   :  { %20216 = vmatpush3.bf16.msra.mxu1 %v21886_v21  ;;  %18215 = vmatprep.mubr.msk.f32.mxu1 %vm21791_vm1, %v23786_v1 }
 0x933   :  { %20217 = vmatprep.subr.bf16.mxu1 %v21790_v0 }
 0x936   :  { %20219 = vmatpush3.bf16.msra.mxu1 %v21895_v26 }
 0x937   :  { %20220 = vmatprep.subr.bf16.mxu1 %v21790_v0 }
 0x939   :  { %18216 = vmatmul.mubr.f32.vlgmr.msra.gmra.mrb[4].mxu1 %v22313_v23 }
 0x93a   :  { %20222 = vmatpush3.bf16.msra.mxu1 %v22070_v30  ;;  %18226 = vmatprep.mubr.msk.f32.mxu1 %vm21791_vm1, %v23786_v1 }
 0x93b   :  { %20223 = vmatprep.subr.bf16.mxu1 %v21790_v0 }
 0x93e   :  { %20225 = vmatpush3.bf16.msra.mxu1 %v22081_v8 }
 0x93f   :  { %20226 = vmatprep.subr.bf16.mxu1 %v21790_v0 }
 0x941   :  { %18227 = vmatmul.mubr.f32.vlgmr.msra.gmra.mrb[4].mxu1 %v22307_v18 }
 0x942   :  { %20228 = vmatpush3.bf16.msra.mxu1 %v21886_v21  ;;  %18237 = vmatprep.mubr.msk.f32.mxu1 %vm21791_vm1, %v23786_v1 }
 0x943   :  { %20229 = vmatprep.subr.bf16.mxu1 %v21790_v0 }
 0x946   :  { %20231 = vmatpush3.bf16.msra.mxu1 %v21895_v26 }
 0x947   :  { %20268 = vmatprep.subr.bf16.mxu1 %v21790_v0 }
 0x949   :  { %18238 = vmatmul.mubr.f32.vlgmr.msra.gmra.mrb[4].mxu1 %v22307_v18 }
 0x94a   :  { %20270 = vmatpush3.bf16.msra.mxu1 %v21886_v21  ;;  %18314 = vmatprep.mubr.msk.f32.mxu1 %vm21791_vm1, %v23786_v1 }
 0x94b   :  { %20271 = vmatprep.subr.bf16.mxu1 %v21790_v0 }
 0x94e   :  { %20273 = vmatpush3.bf16.msra.mxu1 %v21895_v26 }
 0x94f   :  { %20274 = vmatprep.subr.bf16.mxu1 %v21790_v0 }
 0xa1c   :  { %v2867_v32 = vpop.f32.mrb[4].mxu1 }
 0xa1d   :  { %v2871_v33 = vadd.f32 %v22159_v34, %v2867_v32  ;;  %v18239_v44 = vpop.f32.mrb[5].mxu1 }
 0xa1f   :  { %21658 = vtanh.f32 %v2871_v33  ;;  %v16861_v47 = vmul.f32 -1.442695, %v2871_v33 }
 0xa21   :  { %21660 = vpow2.f32 %v16861_v47 }
 0xa29   :  { %v21659_v46 = vpop.eup %21658 }
 0xa2a   :  { %2881 = vrot.lane.b32.xlu0 %v21659_v46, %s21795_s0 }
 0xa2b   :  { %v21661_v51 = vpop.eup %21660 }
 0xa2c   :  { %v2875_v52 = vadd.f32 1.0, %v21661_v51 }
 0xa2e   :  { %21662 = vrcp.f32 %v2875_v52 }
 0xa38   :  { %v21663_v54 = vpop.eup %21662 }
 0xa39   :  { %v2879_v59 = vmul.f32 %v21663_v54, %v22301_v9 }
 0xa9c   :  { %v2882_v55 = vpop.permute.xlu0 %2881 }
 0xa9d   :  { %v2884_v56 = vmul.f32 %v21663_v54, %v2882_v55 }
 0xa9f   :  { %2886 = vrot.lane.b32.xlu1 %v2884_v56, %s21795_s0 }
 0xb11   :  { %v2887_v60 = vpop.permute.xlu1 %2886 }
 0xb12   :  { %v22365_v61 = vadd.f32 %v2887_v60, %v2879_v59 }
 0xb14   :  { %21664 = vtanh.f32 %v22365_v61 }
 0xb1e   :  { %v21665_v34 = vpop.eup %21664 }
 0xb1f   :  { %2892 = vrot.lane.b32.xlu0 %v21665_v34, %s21795_s0 }
 0xb91   :  { %v2893_v27 = vpop.permute.xlu0 %2892 }
 0xb92   :  { %v2895_v29 = vmul.f32 %v21663_v54, %v2893_v27 }
 0xb94   :  { %2897 = vrot.lane.b32.xlu1 %v2895_v29, %s21796_s5 }
 0xc06   :  { %v2898_v31 = vpop.permute.xlu1 %2897 }
 0xc07   :  { %v2899_v40 = vsel %vm838_vm0, %v2898_v31, 0 }
 0xc08   :  { %v22371_v41 = vand.u32 4294901760, %v2899_v40 }
 0xc0a   :  { %v22374_v42 = vsub.f32 %v2899_v40, %v22371_v41 }
 0xc0c   :  { %v22377_v43 = vand.u32 4294901760, %v22374_v42 }
 0xc0e   :  { %23796 = vst [vmem:[#allocation5_spill] sm:$0xff] %v22377_v43  ;;  %v2973_v45 = vsub.f32 %v22374_v42, %v22377_v43 }
 0xc10   :  { %v22381_v48 = vand.u32 4294901760, %v2973_v45 }
 0xc12   :  { %18249 = vmatmul.mubr.f32.vlgmr.msra.gmra.mrb[10].mxu0 %v22381_v48 }
 0xc13   :  { %20240 = vmatpush3.bf16.msra.mxu0 %v21976_v3  ;;  %18259 = vmatprep.mubr.msk.f32.mxu0 %vm21791_vm1, %v23786_v1 }
 0xc14   :  { %20241 = vmatprep.subr.bf16.mxu0 %v21790_v0 }
 0xc17   :  { %20243 = vmatpush3.bf16.msra.mxu0 %v22019_v50 }
 0xc18   :  { %20244 = vmatprep.subr.bf16.mxu0 %v21790_v0 }
 0xc1a   :  { %18260 = vmatmul.mubr.f32.vlgmr.msra.gmra.mrb[10].mxu0 %v22371_v41 }
 0xc1b   :  { %20246 = vmatpush3.bf16.msra.mxu0 %v22032_v58  ;;  %18270 = vmatprep.mubr.msk.f32.mxu0 %vm21791_vm1, %v23786_v1 }
 0xc1c   :  { %20247 = vmatprep.subr.bf16.mxu0 %v21790_v0 }
 0xc1f   :  { %20249 = vmatpush3.bf16.msra.mxu0 %v22046_v7 }
 0xc20   :  { %20250 = vmatprep.subr.bf16.mxu0 %v21790_v0 }
 0xc22   :  { %18271 = vmatmul.mubr.f32.vlgmr.msra.gmra.mrb[10].mxu0 %v22374_v42 }
 0xc23   :  { %20252 = vmatpush3.bf16.msra.mxu0 %v21886_v21  ;;  %18281 = vmatprep.mubr.msk.f32.mxu0 %vm21791_vm1, %v23786_v1 }
 0xc24   :  { %20253 = vmatprep.subr.bf16.mxu0 %v21790_v0 }
 0xc27   :  { %20255 = vmatpush3.bf16.msra.mxu0 %v21895_v26 }
 0xc28   :  { %20256 = vmatprep.subr.bf16.mxu0 %v21790_v0 }
 0xc2a   :  { %18282 = vmatmul.mubr.f32.vlgmr.msra.gmra.mrb[10].mxu0 %v22377_v43 }
 0xc2b   :  { %20258 = vmatpush3.bf16.msra.mxu0 %v22070_v30  ;;  %18292 = vmatprep.mubr.msk.f32.mxu0 %vm21791_vm1, %v23786_v1 }
 0xc2c   :  { %20259 = vmatprep.subr.bf16.mxu0 %v21790_v0 }
 0xc2f   :  { %20261 = vmatpush3.bf16.msra.mxu0 %v22081_v8 }
 0xc30   :  { %20262 = vmatprep.subr.bf16.mxu0 %v21790_v0 }
 0xc32   :  { %18293 = vmatmul.mubr.f32.vlgmr.msra.gmra.mrb[10].mxu0 %v22371_v41 }
 0xc33   :  { %20264 = vmatpush3.bf16.msra.mxu0 %v21886_v21  ;;  %18303 = vmatprep.mubr.msk.f32.mxu0 %vm21791_vm1, %v23786_v1 }
 0xc34   :  { %20265 = vmatprep.subr.bf16.mxu0 %v21790_v0 }
 0xc37   :  { %20267 = vmatpush3.bf16.msra.mxu0 %v21895_v26 }
 0xc38   :  { %20304 = vmatprep.subr.bf16.mxu0 %v21790_v0 }
 0xc3a   :  { %18304 = vmatmul.mubr.f32.vlgmr.msra.gmra.mrb[10].mxu0 %v22371_v41 }
 0xc3b   :  { %20306 = vmatpush3.bf16.msra.mxu0 %v21886_v21  ;;  %18380 = vmatprep.mubr.msk.f32.mxu0 %vm21791_vm1, %v23786_v1 }
 0xc3c   :  { %20307 = vmatprep.subr.bf16.mxu0 %v21790_v0 }
 0xc3f   :  { %20309 = vmatpush3.bf16.msra.mxu0 %v21895_v26 }
 0xc40   :  { %20310 = vmatprep.subr.bf16.mxu0 %v21790_v0 }
 0xd0d   :  { %v3382_v49 = vpop.f32.mrb[10].mxu0 }
 0xd0e   :  { %v3386_v53 = vadd.f32 %v3382_v49, %v22165_v37  ;;  %v18305_v57 = vpop.f32.mrb[11].mxu0 }
 0xd10   :  { %21666 = vtanh.f32 %v3386_v53  ;;  %v16862_v9 = vmul.f32 -1.442695, %v3386_v53 }
 0xd12   :  { %21668 = vpow2.f32 %v16862_v9 }
 0xd1a   :  { %v21667_v63 = vpop.eup %21666 }
 0xd1b   :  { %3396 = vrot.lane.b32.xlu0 %v21667_v63, %s21795_s0 }
 0xd1c   :  { %v21669_v35 = vpop.eup %21668 }
 0xd1d   :  { %v3390_v10 = vadd.f32 1.0, %v21669_v35 }
 0xd1f   :  { %21670 = vrcp.f32 %v3390_v10 }
 0xd29   :  { %v21671_v11 = vpop.eup %21670 }
 0xd2a   :  { %v3394_v24 = vmul.f32 %v21671_v11, %v22365_v61 }
 0xd8d   :  { %v3397_v12 = vpop.permute.xlu0 %3396 }
 0xd8e   :  { %v3399_v16 = vmul.f32 %v21671_v11, %v3397_v12 }
 0xd90   :  { %3401 = vrot.lane.b32.xlu1 %v3399_v16, %s21795_s0 }
 0xe02   :  { %v3402_v32 = vpop.permute.xlu1 %3401 }
 0xe03   :  { %v22429_v33 = vadd.f32 %v3402_v32, %v3394_v24 }
 0xe05   :  { %21672 = vtanh.f32 %v22429_v33 }
 0xe0f   :  { %v21673_v37 = vpop.eup %21672 }
 0xe10   :  { %3407 = vrot.lane.b32.xlu0 %v21673_v37, %s21795_s0 }
 0xe82   :  { %v3408_v44 = vpop.permute.xlu0 %3407 }
 0xe83   :  { %v3410_v46 = vmul.f32 %v21671_v11, %v3408_v44  ;;  %v4956_v44 = vld [vmem:[%s23778_s4] sm:$0xff] }
 0xe85   :  { %3412 = vrot.lane.b32.xlu1 %v3410_v46, %s21796_s5  ;;  %v4957_v46 = vld [vmem:[%s23778_s4 + $0x8] sm:$0xff] }
 0xef7   :  { %v3413_v47 = vpop.permute.xlu1 %3412 }
 0xef8   :  { %v3414_v51 = vsel %vm838_vm0, %v3413_v47, 0  ;;  %v4961_v47 = vand.u32 4294901760, %v4956_v44 }
 0xef9   :  { %v22435_v52 = vand.u32 4294901760, %v3414_v51 }
 0xefb   :  { %23797 = vst [vmem:[#allocation6_spill] sm:$0xff] %v22435_v52  ;;  %v22438_v54 = vsub.f32 %v3414_v51, %v22435_v52  ;;  %v4964_v51 = vand.u32 4294901760, %v4957_v46 }
 0xefd   :  { %23798 = vst [vmem:[#allocation7_spill] sm:$0xff] %v22438_v54  ;;  %v22441_v55 = vand.u32 4294901760, %v22438_v54 }
 0xeff   :  { %23799 = vst [vmem:[#allocation8_spill] sm:$0xff] %v22441_v55  ;;  %v3488_v56 = vsub.f32 %v22438_v54, %v22441_v55 }
 0xf01   :  { %v22445_v59 = vand.u32 4294901760, %v3488_v56  ;;  %v4958_v56 = vld [vmem:[%s23778_s4 + $0x10] sm:$0xff] }
 0xf03   :  { %23800 = vst [vmem:[#allocation9_spill] sm:$0xff] %v22445_v59  ;;  %18315 = vmatmul.mubr.f32.vlgmr.msra.gmra.mrb[6].mxu1 %v22445_v59 }
 0xf04   :  { %20276 = vmatpush3.bf16.msra.mxu1 %v21976_v3  ;;  %18325 = vmatprep.mubr.msk.f32.mxu1 %vm21791_vm1, %v23786_v1 }
 0xf05   :  { %20277 = vmatprep.subr.bf16.mxu1 %v21790_v0 }
 0xf08   :  { %20279 = vmatpush3.bf16.msra.mxu1 %v22019_v50 }
 0xf09   :  { %20280 = vmatprep.subr.bf16.mxu1 %v21790_v0 }
 0xf0b   :  { %18326 = vmatmul.mubr.f32.vlgmr.msra.gmra.mrb[6].mxu1 %v22435_v52 }
 0xf0c   :  { %20282 = vmatpush3.bf16.msra.mxu1 %v22032_v58  ;;  %18336 = vmatprep.mubr.msk.f32.mxu1 %vm21791_vm1, %v23786_v1 }
 0xf0d   :  { %20283 = vmatprep.subr.bf16.mxu1 %v21790_v0 }
 0xf10   :  { %20285 = vmatpush3.bf16.msra.mxu1 %v22046_v7 }
 0xf11   :  { %20286 = vmatprep.subr.bf16.mxu1 %v21790_v0 }
 0xf13   :  { %18337 = vmatmul.mubr.f32.vlgmr.msra.gmra.mrb[6].mxu1 %v22438_v54 }
 0xf14   :  { %20288 = vmatpush3.bf16.msra.mxu1 %v21886_v21  ;;  %18347 = vmatprep.mubr.msk.f32.mxu1 %vm21791_vm1, %v23786_v1 }
 0xf15   :  { %20289 = vmatprep.subr.bf16.mxu1 %v21790_v0 }
 0xf18   :  { %20291 = vmatpush3.bf16.msra.mxu1 %v21895_v26 }
 0xf19   :  { %20292 = vmatprep.subr.bf16.mxu1 %v21790_v0 }
 0xf1b   :  { %18348 = vmatmul.mubr.f32.vlgmr.msra.gmra.mrb[6].mxu1 %v22441_v55 }
 0xf1c   :  { %20294 = vmatpush3.bf16.msra.mxu1 %v22070_v30  ;;  %18358 = vmatprep.mubr.msk.f32.mxu1 %vm21791_vm1, %v23786_v1 }
 0xf1d   :  { %20295 = vmatprep.subr.bf16.mxu1 %v21790_v0 }
 0xf20   :  { %20297 = vmatpush3.bf16.msra.mxu1 %v22081_v8 }
 0xf21   :  { %20298 = vmatprep.subr.bf16.mxu1 %v21790_v0 }
 0xf23   :  { %18359 = vmatmul.mubr.f32.vlgmr.msra.gmra.mrb[6].mxu1 %v22435_v52 }
 0xf24   :  { %20300 = vmatpush3.bf16.msra.mxu1 %v21886_v21  ;;  %18369 = vmatprep.mubr.msk.f32.mxu1 %vm21791_vm1, %v23786_v1 }
 0xf25   :  { %20301 = vmatprep.subr.bf16.mxu1 %v21790_v0 }
 0xf28   :  { %20303 = vmatpush3.bf16.msra.mxu1 %v21895_v26 }
 0xf29   :  { %20340 = vmatprep.subr.bf16.mxu1 %v21790_v0 }
 0xf2b   :  { %18370 = vmatmul.mubr.f32.vlgmr.msra.gmra.mrb[6].mxu1 %v22435_v52 }
 0xf2c   :  { %20342 = vmatpush3.bf16.msra.mxu1 %v21886_v21  ;;  %18446 = vmatprep.mubr.msk.f32.mxu1 %vm21791_vm1, %v23786_v1 }
 0xf2d   :  { %20343 = vmatprep.subr.bf16.mxu1 %v21790_v0 }
 0xf30   :  { %20345 = vmatpush3.bf16.msra.mxu1 %v21895_v26 }
 0xf31   :  { %20346 = vmatprep.subr.bf16.mxu1 %v21790_v0 }
 0xffe   :  { %v3897_v60 = vpop.f32.mrb[6].mxu1 }
 0xfff   :  { %v3901_v61 = vadd.f32 %v22163_v36, %v3897_v60  ;;  %v18371_v34 = vpop.f32.mrb[7].mxu1  ;;  %v4959_v60 = vld [vmem:[%s23778_s4 + $0x18] sm:$0xff] }
0x1000   :  { %v4970_v34 = vand.u32 4294901760, %v4959_v60 }
0x1001   :  { %21674 = vtanh.f32 %v3901_v61  ;;  %v16863_v29 = vmul.f32 -1.442695, %v3901_v61  ;;  %v4967_v61 = vand.u32 4294901760, %v4958_v56 }
0x1003   :  { %21676 = vpow2.f32 %v16863_v29  ;;  %v5048_v29 = vsub.f32 %v4957_v46, %v4964_v51 }
0x100b   :  { %v21675_v27 = vpop.eup %21674 }
0x100c   :  { %3911 = vrot.lane.b32.xlu0 %v21675_v27, %s21795_s0  ;;  %v5041_v27 = vsub.f32 %v4956_v44, %v4961_v47 }
0x100d   :  { %v21677_v31 = vpop.eup %21676 }
0x100e   :  { %v3905_v40 = vadd.f32 1.0, %v21677_v31  ;;  %v5042_v31 = vand.u32 4294901760, %v5041_v27 }
0x1010   :  { %21678 = vrcp.f32 %v3905_v40  ;;  %v5049_v40 = vand.u32 4294901760, %v5048_v29 }
0x101a   :  { %v21679_v45 = vpop.eup %21678 }
0x101b   :  { %v3909_v57 = vmul.f32 %v21679_v45, %v22429_v33 }
0x107e   :  { %v3912_v49 = vpop.permute.xlu0 %3911 }
0x107f   :  { %v3914_v53 = vmul.f32 %v21679_v45, %v3912_v49  ;;  %v5062_v49 = vsub.f32 %v4959_v60, %v4970_v34  ;;  %v22579_v60 = vpack.c.bf16 %v5048_v29, %v5041_v27 }
0x1081   :  { %3916 = vrot.lane.b32.xlu1 %v3914_v53, %s21795_s0  ;;  %v22556_v53 = vpack.c.bf16 %v4964_v51, %v4961_v47 }
0x10f3   :  { %v3917_v63 = vpop.permute.xlu1 %3916 }
0x10f4   :  { %v22493_v9 = vadd.f32 %v3917_v63, %v3909_v57  ;;  %v5043_v57 = vsub.f32 %v5041_v27, %v5042_v31  ;;  %v5050_v63 = vsub.f32 %v5048_v29, %v5049_v40 }
0x10f6   :  { %21680 = vtanh.f32 %v22493_v9 }
0x1100   :  { %v21681_v36 = vpop.eup %21680 }
0x1101   :  { %3922 = vrot.lane.b32.xlu0 %v21681_v36, %s21795_s0 }
0x1173   :  { %v3923_v35 = vpop.permute.xlu0 %3922 }
0x1174   :  { %v3925_v10 = vmul.f32 %v21679_v45, %v3923_v35  ;;  %v5055_v45 = vsub.f32 %v4958_v56, %v4967_v61  ;;  %v5063_v35 = vand.u32 4294901760, %v5062_v49 }
0x1176   :  { %3927 = vrot.lane.b32.xlu1 %v3925_v10, %s21796_s5  ;;  %v5056_v36 = vand.u32 4294901760, %v5055_v45  ;;  %v22561_v10 = vpack.c.bf16 %v4970_v34, %v4967_v61  ;;  %v5064_v44 = vsub.f32 %v5062_v49, %v5063_v35  ;;  %v22598_v61 = vpack.c.bf16 %v5049_v40, %v5042_v31  ;;  %v834_v34 = vld [vmem:[%s23777_s3] sm:$0xff]  ;;  %v836_v40 = vld [vmem:[%s23777_s3 + $0x10] sm:$0xff] }
0x1177   :  { %v5446_v29 = vand.u32 4294901760, %v834_v34 }
0x1178   :  { %v5065_v51 = vand.u32 4294901760, %v5064_v44  ;;  %v22609_v27 = vpack.c.bf16 %v5063_v35, %v5056_v36 }
0x11e8   :  { %v3928_v11 = vpop.permute.xlu1 %3927 }
0x11e9   :  { %v3929_v12 = vsel %vm838_vm0, %v3928_v11, 0  ;;  %v5044_v11 = vand.u32 4294901760, %v5043_v57  ;;  %v5526_v57 = vsub.f32 %v834_v34, %v5446_v29 }
0x11ea   :  { %v22499_v16 = vand.u32 4294901760, %v3929_v12 }
0x11ec   :  { %23801 = vst [vmem:[#allocation10_spill] sm:$0xff] %v22499_v16  ;;  %v22502_v24 = vsub.f32 %v3929_v12, %v22499_v16  ;;  %v5051_v12 = vand.u32 4294901760, %v5050_v63 }
0x11ee   :  { %23802 = vst [vmem:[#allocation11_spill] sm:$0xff] %v22502_v24  ;;  %v22505_v32 = vand.u32 4294901760, %v22502_v24  ;;  %v22568_v46 = vpack.c.bf16 %v5051_v12, %v5044_v11 }
0x11f0   :  { %23803 = vst [vmem:[#allocation12_spill] sm:$0xff] %v22505_v32  ;;  %v4003_v33 = vsub.f32 %v22502_v24, %v22505_v32 }
0x11f2   :  { %v22509_v37 = vand.u32 4294901760, %v4003_v33  ;;  %v5057_v33 = vsub.f32 %v5055_v45, %v5056_v36  ;;  %v5527_v36 = vand.u32 4294901760, %v5526_v57 }
0x11f4   :  { %23804 = vst [vmem:[#allocation13_spill] sm:$0xff] %v22509_v37  ;;  %18381 = vmatmul.mubr.f32.vlgmr.msra.gmra.mrb[12].mxu0 %v22509_v37  ;;  %v5058_v47 = vand.u32 4294901760, %v5057_v33  ;;  %v5528_v44 = vsub.f32 %v5526_v57, %v5527_v36 }
0x11f5   :  { %20312 = vmatpush3.bf16.msra.mxu0 %v21976_v3  ;;  %18391 = vmatprep.mubr.msk.f32.mxu0 %vm21791_vm1, %v23786_v1 }
0x11f6   :  { %20313 = vmatprep.subr.bf16.mxu0 %v21790_v0  ;;  %v22573_v56 = vpack.c.bf16 %v5065_v51, %v5058_v47 }
0x11f9   :  { %20315 = vmatpush3.bf16.msra.mxu0 %v22019_v50 }
0x11fa   :  { %20316 = vmatprep.subr.bf16.mxu0 %v21790_v0 }
0x11fc   :  { %18392 = vmatmul.mubr.f32.vlgmr.msra.gmra.mrb[12].mxu0 %v22499_v16 }
0x11fd   :  { %20318 = vmatpush3.bf16.msra.mxu0 %v22032_v58  ;;  %18402 = vmatprep.mubr.msk.f32.mxu0 %vm21791_vm1, %v23786_v1 }
0x11fe   :  { %20319 = vmatprep.subr.bf16.mxu0 %v21790_v0 }
0x1201   :  { %20321 = vmatpush3.bf16.msra.mxu0 %v22046_v7 }
0x1202   :  { %20322 = vmatprep.subr.bf16.mxu0 %v21790_v0 }
0x1204   :  { %18403 = vmatmul.mubr.f32.vlgmr.msra.gmra.mrb[12].mxu0 %v22502_v24 }
0x1205   :  { %20324 = vmatpush3.bf16.msra.mxu0 %v21886_v21  ;;  %18413 = vmatprep.mubr.msk.f32.mxu0 %vm21791_vm1, %v23786_v1 }
0x1206   :  { %20325 = vmatprep.subr.bf16.mxu0 %v21790_v0 }
0x1209   :  { %20327 = vmatpush3.bf16.msra.mxu0 %v21895_v26 }
0x120a   :  { %20328 = vmatprep.subr.bf16.mxu0 %v21790_v0 }
0x120c   :  { %18414 = vmatmul.mubr.f32.vlgmr.msra.gmra.mrb[12].mxu0 %v22505_v32 }
0x120d   :  { %20330 = vmatpush3.bf16.msra.mxu0 %v22070_v30  ;;  %18424 = vmatprep.mubr.msk.f32.mxu0 %vm21791_vm1, %v23786_v1 }
0x120e   :  { %20331 = vmatprep.subr.bf16.mxu0 %v21790_v0 }
0x1211   :  { %20333 = vmatpush3.bf16.msra.mxu0 %v22081_v8 }
0x1212   :  { %20334 = vmatprep.subr.bf16.mxu0 %v21790_v0 }
0x1214   :  { %18425 = vmatmul.mubr.f32.vlgmr.msra.gmra.mrb[12].mxu0 %v22499_v16 }
0x1215   :  { %20336 = vmatpush3.bf16.msra.mxu0 %v21886_v21  ;;  %18435 = vmatprep.mubr.msk.f32.mxu0 %vm21791_vm1, %v23786_v1 }
0x1216   :  { %20337 = vmatprep.subr.bf16.mxu0 %v21790_v0 }
0x1219   :  { %20339 = vmatpush3.bf16.msra.mxu0 %v21895_v26 }
0x121a   :  { %20376 = vmatprep.subr.bf16.mxu0 %v21790_v0 }
0x121c   :  { %18436 = vmatmul.mubr.f32.vlgmr.msra.gmra.mrb[12].mxu0 %v22499_v16 }
0x121d   :  { %20378 = vmatpush3.bf16.msra.mxu0 %v22556_v53  ;;  %18512 = vmatprep.mubr.msk.f32.mxu0 %vm21791_vm1, %v23786_v1 }
0x121e   :  { %20379 = vmatprep.subr.bf16.mxu0 %v21790_v0 }
0x1221   :  { %20381 = vmatpush3.bf16.msra.mxu0 %v22561_v10 }
0x1222   :  { %20382 = vmatprep.subr.bf16.mxu0 %v21790_v0 }
0x1224   :  { %18513 = vmatmul.mubr.f32.vlgmr.msra.gmra.mrb[14].mxu0 %v21881_v19  ;;  %v22585_v19 = vpack.c.bf16 %v5062_v49, %v5055_v45  ;;  %v837_v45 = vld [vmem:[%s23777_s3 + $0x18] sm:$0xff] }
0x1225   :  { %20384 = vmatpush3.bf16.msra.mxu0 %v22568_v46  ;;  %18523 = vmatprep.mubr.msk.f32.mxu0 %vm21791_vm1, %v23786_v1  ;;  %v5455_v49 = vand.u32 4294901760, %v837_v45 }
0x1226   :  { %20385 = vmatprep.subr.bf16.mxu0 %v21790_v0 }
0x1227   :  { %v5547_v12 = vsub.f32 %v837_v45, %v5455_v49 }
0x1229   :  { %20387 = vmatpush3.bf16.msra.mxu0 %v22573_v56  ;;  %v5548_v34 = vand.u32 4294901760, %v5547_v12 }
0x122a   :  { %20388 = vmatprep.subr.bf16.mxu0 %v21790_v0 }
0x122b   :  { %v5549_v45 = vsub.f32 %v5547_v12, %v5548_v34 }
0x122c   :  { %18524 = vmatmul.mubr.msk.f32.vlgmr.msra.gmra.mrb[14].mxu0 %vm838_vm0, %v21794_v2 }
0x122d   :  { %20390 = vmatpush3.bf16.msra.mxu0 %v22579_v60  ;;  %18534 = vmatprep.mubr.msk.f32.mxu0 %vm21791_vm1, %v23786_v1  ;;  %v5550_v16 = vand.u32 4294901760, %v5549_v45 }
0x122e   :  { %20391 = vmatprep.subr.bf16.mxu0 %v21790_v0 }
0x1231   :  { %20393 = vmatpush3.bf16.msra.mxu0 %v22585_v19 }
0x1232   :  { %20394 = vmatprep.subr.bf16.mxu0 %v21790_v0 }
0x1234   :  { %18535 = vmatmul.mubr.f32.vlgmr.msra.gmra.mrb[14].mxu0 %v21853_v4  ;;  %v835_v4 = vld [vmem:[%s23777_s3 + $0x8] sm:$0xff] }
0x1235   :  { %20396 = vmatpush3.bf16.msra.mxu0 %v22556_v53  ;;  %18545 = vmatprep.mubr.msk.f32.mxu0 %vm21791_vm1, %v23786_v1  ;;  %v5449_v31 = vand.u32 4294901760, %v835_v4 }
0x1236   :  { %20397 = vmatprep.subr.bf16.mxu0 %v21790_v0 }
0x1237   :  { %v5533_v63 = vsub.f32 %v835_v4, %v5449_v31  ;;  %v22628_v33 = vpack.c.bf16 %v5449_v31, %v5446_v29  ;;  %v5529_v29 = vand.u32 4294901760, %v5528_v44 }
0x1239   :  { %20399 = vmatpush3.bf16.msra.mxu0 %v22561_v10  ;;  %v5534_v35 = vand.u32 4294901760, %v5533_v63 }
0x123a   :  { %20400 = vmatprep.subr.bf16.mxu0 %v21790_v0 }
0x123b   :  { %v5535_v47 = vsub.f32 %v5533_v63, %v5534_v35 }
0x123c   :  { %18546 = vmatmul.mubr.f32.vlgmr.msra.gmra.mrb[14].mxu0 %v21856_v5  ;;  %v5452_v5 = vand.u32 4294901760, %v836_v40 }
0x123d   :  { %20402 = vmatpush3.bf16.msra.mxu0 %v22598_v61  ;;  %18556 = vmatprep.mubr.msk.f32.mxu0 %vm21791_vm1, %v23786_v1  ;;  %v5536_v31 = vand.u32 4294901760, %v5535_v47 }
0x123e   :  { %20403 = vmatprep.subr.bf16.mxu0 %v21790_v0  ;;  %v5540_v11 = vsub.f32 %v836_v40, %v5452_v5  ;;  %v22634_v4 = vpack.c.bf16 %v5455_v49, %v5452_v5  ;;  %v22652_v5 = vpack.c.bf16 %v5533_v63, %v5526_v57 }
0x123f   :  { %v22641_v32 = vpack.c.bf16 %v5536_v31, %v5529_v29 }
0x1240   :  { %v5541_v51 = vand.u32 4294901760, %v5540_v11 }
0x1241   :  { %20405 = vmatpush3.bf16.msra.mxu0 %v22609_v27 }
0x1242   :  { %20406 = vmatprep.subr.bf16.mxu0 %v21790_v0  ;;  %v5542_v40 = vsub.f32 %v5540_v11, %v5541_v51 }
0x1244   :  { %18557 = vmatmul.mubr.msk.f32.vlgmr.msra.gmra.mrb[14].mxu0 %vm838_vm0, %v21794_v2  ;;  %v5543_v24 = vand.u32 4294901760, %v5542_v40 }
0x1245   :  { %20408 = vmatpush3.bf16.msra.mxu0 %v22556_v53  ;;  %18567 = vmatprep.mubr.msk.f32.mxu0 %vm21791_vm1, %v23786_v1 }
0x1246   :  { %20409 = vmatprep.subr.bf16.mxu0 %v21790_v0 }
0x1249   :  { %20411 = vmatpush3.bf16.msra.mxu0 %v22561_v10 }
0x124a   :  { %20412 = vmatprep.subr.bf16.mxu0 %v21790_v0 }
0x124c   :  { %18568 = vmatmul.mubr.msk.f32.vlgmr.msra.gmra.mrb[14].mxu0 %vm838_vm0, %v21794_v2  ;;  %v22646_v2 = vpack.c.bf16 %v5550_v16, %v5543_v24  ;;  %v22670_v16 = vpack.c.bf16 %v5534_v35, %v5527_v36  ;;  %v22675_v24 = vpack.c.bf16 %v5548_v34, %v5541_v51 }
0x124d   :  { %20414 = vmatpush3.bf16.msra.mxu0 %v22628_v33  ;;  %18578 = vmatprep.mubr.msk.f32.mxu0 %vm21791_vm1, %v23786_v1 }
0x124e   :  { %20415 = vmatprep.subr.bf16.mxu0 %v21790_v0 }
0x1251   :  { %20417 = vmatpush3.bf16.msra.mxu0 %v22634_v4 }
0x1252   :  { %20418 = vmatprep.subr.bf16.mxu0 %v21790_v0 }
0x1254   :  { %18579 = vmatmul.mubr.f32.vlgmr.msra.gmra.mrb[14].mxu0 %v22189_v17  ;;  %v22657_v17 = vpack.c.bf16 %v5547_v12, %v5540_v11 }
0x1255   :  { %20420 = vmatpush3.bf16.msra.mxu0 %v22641_v32  ;;  %18589 = vmatprep.mubr.msk.f32.mxu0 %vm21791_vm1, %v23786_v1 }
0x1256   :  { %20421 = vmatprep.subr.bf16.mxu0 %v21790_v0 }
0x1259   :  { %20423 = vmatpush3.bf16.msra.mxu0 %v22646_v2 }
0x125a   :  { %20424 = vmatprep.subr.bf16.mxu0 %v21790_v0 }
0x125c   :  { %18590 = vmatmul.mubr.f32.vlgmr.msra.gmra.mrb[14].mxu0 %v22179_v13 }
0x125d   :  { %20426 = vmatpush3.bf16.msra.mxu0 %v22652_v5  ;;  %18600 = vmatprep.mubr.msk.f32.mxu0 %vm21791_vm1, %v23786_v1 }
0x125e   :  { %20427 = vmatprep.subr.bf16.mxu0 %v21790_v0 }
0x1261   :  { %20429 = vmatpush3.bf16.msra.mxu0 %v22657_v17 }
0x1262   :  { %20430 = vmatprep.subr.bf16.mxu0 %v21790_v0 }
0x1264   :  { %18601 = vmatmul.mubr.f32.vlgmr.msra.gmra.mrb[14].mxu0 %v22182_v14 }
0x1265   :  { %20432 = vmatpush3.bf16.msra.mxu0 %v22628_v33  ;;  %18611 = vmatprep.mubr.msk.f32.mxu0 %vm21791_vm1, %v23786_v1 }
0x1266   :  { %20433 = vmatprep.subr.bf16.mxu0 %v21790_v0 }
0x1269   :  { %20435 = vmatpush3.bf16.msra.mxu0 %v22634_v4 }
0x126a   :  { %20436 = vmatprep.subr.bf16.mxu0 %v21790_v0 }
0x126c   :  { %18612 = vmatmul.mubr.f32.vlgmr.msra.gmra.mrb[14].mxu0 %v22185_v15 }
0x126d   :  { %20438 = vmatpush3.bf16.msra.mxu0 %v22670_v16  ;;  %18622 = vmatprep.mubr.msk.f32.mxu0 %vm21791_vm1, %v23786_v1 }
0x126e   :  { %20439 = vmatprep.subr.bf16.mxu0 %v21790_v0 }
0x1271   :  { %20441 = vmatpush3.bf16.msra.mxu0 %v22675_v24 }
0x1272   :  { %20442 = vmatprep.subr.bf16.mxu0 %v21790_v0 }
0x1274   :  { %18623 = vmatmul.mubr.f32.vlgmr.msra.gmra.mrb[14].mxu0 %v22179_v13 }
0x1275   :  { %20444 = vmatpush3.bf16.msra.mxu0 %v22628_v33  ;;  %18633 = vmatprep.mubr.msk.f32.mxu0 %vm21791_vm1, %v23786_v1 }
0x1276   :  { %20445 = vmatprep.subr.bf16.mxu0 %v21790_v0 }
0x1279   :  { %20447 = vmatpush3.bf16.msra.mxu0 %v22634_v4 }
0x127a   :  { %20556 = vmatprep.subr.bf16.mxu0 %v21790_v0 }
0x127c   :  { %18634 = vmatmul.mubr.f32.vlgmr.msra.gmra.mrb[14].mxu0 %v22179_v13 }
0x127d   :  { %18842 = vmatprep.mubr.msk.f32.mxu0 %vm21791_vm1, %v23786_v1 }
0x12ef   :  { %v4412_v14 = vpop.f32.mrb[12].mxu0 }
0x12f0   :  { %v4416_v15 = vadd.f32 %v4412_v14, %v22169_v39  ;;  %v18437_v49 = vpop.f32.mrb[13].mxu0 }
0x12f2   :  { %21682 = vtanh.f32 %v4416_v15  ;;  %v16864_v36 = vmul.f32 -1.442695, %v4416_v15 }
0x12fc   :  { %v21683_v57 = vpop.eup %21682 }
0x12fd   :  { %4426 = vrot.lane.b32.xlu0 %v21683_v57, %s21795_s0 }
0x134f   :  { %v5926_v63 = vpop.f32.mrb[14].mxu0 }
0x1350   :  { %21684 = vtanh.f32 %v5926_v63  ;;  %v18635_v35 = vpop.f32.mrb[15].mxu0  ;;  %v16869_v39 = vmul.f32 -1.442695, %v5926_v63 }
0x1351   :  { %21686 = vpow2.f32 %v16864_v36 }
0x135a   :  { %v21685_v11 = vpop.eup %21684 }
0x135b   :  { %5938 = vrot.lane.b32.xlu1 %v21685_v11, %s21795_s0  ;;  %v21687_v13 = vpop.eup %21686 }
0x135c   :  { %v4420_v12 = vadd.f32 1.0, %v21687_v13 }
0x135e   :  { %21688 = vrcp.f32 %v4420_v12  ;;  %v826_v12 = vld [vmem:[#allocation2 + $0x8] sm:$0xff] }
0x135f   :  { %21690 = vpow2.f32 %v16869_v39 }
0x1368   :  { %v21689_v44 = vpop.eup %21688 }
0x1369   :  { %v21691_v34 = vpop.eup %21690  ;;  %v4424_v14 = vmul.f32 %v21689_v44, %v22493_v9  ;;  %v825_v9 = vld [vmem:[#allocation2] sm:$0xff] }
0x136a   :  { %v5933_v29 = vadd.f32 1.0, %v21691_v34 }
0x136c   :  { %21692 = vrcp.f32 %v5933_v29 }
0x136f   :  { %v4427_v47 = vpop.permute.xlu0 %4426 }
0x1370   :  { %v4429_v51 = vmul.f32 %v21689_v44, %v4427_v47  ;;  %v5965_v47 = vand.u32 4294901760, %v825_v9 }
0x1372   :  { %4431 = vrot.lane.b32.xlu0 %v4429_v51, %s21795_s0  ;;  %v5968_v51 = vand.u32 4294901760, %v826_v12  ;;  %v6045_v34 = vsub.f32 %v825_v9, %v5965_v47 }
0x1374   :  { %v22707_v39 = vpack.c.bf16 %v5968_v51, %v5965_v47  ;;  %v6052_v29 = vsub.f32 %v826_v12, %v5968_v51 }
0x1376   :  { %v21693_v31 = vpop.eup %21692  ;;  %20558 = vmatpush3.bf16.msra.mxu0 %v22707_v39 }
0x1377   :  { %20559 = vmatprep.subr.bf16.mxu0 %v21790_v0 }
0x13cd   :  { %v5939_v40 = vpop.permute.xlu1 %5938 }
0x13ce   :  { %v5941_v45 = vmul.f32 %v21693_v31, %v5939_v40  ;;  %v827_v40 = vld [vmem:[#allocation2 + $0x10] sm:$0xff] }
0x13d0   :  { %5943 = vrot.lane.b32.xlu1 %v5941_v45, %s21795_s0  ;;  %v828_v45 = vld [vmem:[#allocation2 + $0x18] sm:$0xff] }
0x13e4   :  { %v4432_v15 = vpop.permute.xlu0 %4431 }
0x13e5   :  { %v22698_v49 = vadd.f32 %v4432_v15, %v4424_v14  ;;  %v5971_v14 = vand.u32 4294901760, %v827_v40  ;;  %v5974_v15 = vand.u32 4294901760, %v828_v45 }
0x13e7   :  { %23805 = vst [vmem:[#allocation14_spill] sm:$0xff] %v22698_v49  ;;  %21694 = vtanh.f32 %v22698_v49  ;;  %v6066_v1 = vsub.f32 %v828_v45, %v5974_v15  ;;  %v22720_v45 = vpack.c.bf16 %v6052_v29, %v6045_v34 }
0x13e9   :  { %v6067_v12 = vand.u32 4294901760, %v6066_v1 }
0x13eb   :  { %v6068_v54 = vsub.f32 %v6066_v1, %v6067_v12 }
0x13ed   :  { %v6069_v43 = vand.u32 4294901760, %v6068_v54  ;;  %v23806_v54 = vmov 0.0  }
0x13f1   :  { %v21695_v57 = vpop.eup %21694 }
0x13f2   :  { %4437 = vrot.lane.b32.xlu0 %v21695_v57, %s21795_s0  ;;  %v6046_v57 = vand.u32 4294901760, %v6045_v34 }
0x1442   :  { %v5944_v63 = vpop.permute.xlu1 %5943 }
0x1443   :  { %v22702_v36 = vadd.f32 %v21693_v31, %v5944_v63  ;;  %v6053_v63 = vand.u32 4294901760, %v6052_v29 }
0x1445   :  { %21696 = vtanh.f32 %v22702_v36 }
0x144f   :  { %v21697_v35 = vpop.eup %21696 }
0x1450   :  { %5949 = vrot.lane.b32.xlu1 %v21697_v35, %s21795_s0  ;;  %v6047_v35 = vsub.f32 %v6045_v34, %v6046_v57 }
0x1452   :  { %v6048_v49 = vand.u32 4294901760, %v6047_v35 }
0x1464   :  { %v4438_v11 = vpop.permute.xlu0 %4437 }
0x1465   :  { %v4440_v13 = vmul.f32 %v21689_v44, %v4438_v11  ;;  %v22711_v44 = vpack.c.bf16 %v5974_v15, %v5971_v14  ;;  %v6054_v11 = vsub.f32 %v6052_v29, %v6053_v63 }
0x1467   :  { %4442 = vrot.lane.b32.xlu0 %v4440_v13, %s21796_s5  ;;  %v6059_v13 = vsub.f32 %v827_v40, %v5971_v14  ;;  %v6055_v37 = vand.u32 4294901760, %v6054_v11  ;;  %20561 = vmatpush3.bf16.msra.mxu0 %v22711_v44  ;;  %v22725_v11 = vpack.c.bf16 %v6053_v63, %v6046_v57 }
0x1468   :  { %20562 = vmatprep.subr.bf16.mxu0 %v21790_v0 }
0x1469   :  { %v6060_v9 = vand.u32 4294901760, %v6059_v13  ;;  %v22715_v47 = vpack.c.bf16 %v6055_v37, %v6048_v49  ;;  %v22722_v14 = vpack.c.bf16 %v6066_v1, %v6059_v13 }
0x146b   :  { %v6061_v55 = vsub.f32 %v6059_v13, %v6060_v9 }
0x146d   :  { %v6062_v59 = vand.u32 4294901760, %v6061_v55  ;;  %v22732_v55 = vpack.c.bf16 %v6067_v12, %v6060_v9 }
0x146f   :  { %v22718_v40 = vpack.c.bf16 %v6069_v43, %v6062_v59 }
0x14c2   :  { %v5950_v51 = vpop.permute.xlu1 %5949 }
0x14c3   :  { %v5952_v52 = vmul.f32 %v21693_v31, %v5950_v51 }
0x14c5   :  { %5960 = vrot.lane.b32.xlu1 %v5952_v52, %s21796_s5 }
0x14d9   :  { %v4443_v15 = vpop.permute.xlu0 %4442 }
0x14da   :  { %v4444_v35 = vsel %vm838_vm0, %v4443_v15, 0 }
0x14db   :  { %v22727_v37 = vand.u32 4294901760, %v4444_v35 }
0x14dd   :  { %v22730_v49 = vsub.f32 %v4444_v35, %v22727_v37 }
0x14df   :  { %v22735_v52 = vand.u32 4294901760, %v22730_v49 }
0x14e1   :  { %v4518_v43 = vsub.f32 %v22730_v49, %v22735_v52 }
0x14e3   :  { %v22739_v1 = vand.u32 4294901760, %v4518_v43 }
0x14e5   :  { %18447 = vmatmul.mubr.f32.vlgmr.msra.gmra.mrb[8].mxu1 %v22739_v1 }
0x14e6   :  { %20348 = vmatpush3.bf16.msra.mxu1 %v21976_v3  ;;  %18457 = vmatprep.mubr.msk.f32.mxu1 %vm21791_vm1, %v23806_v54 }
0x14e7   :  { %20349 = vmatprep.subr.bf16.mxu1 %v21790_v0 }
0x14ea   :  { %20351 = vmatpush3.bf16.msra.mxu1 %v22019_v50 }
0x14eb   :  { %20352 = vmatprep.subr.bf16.mxu1 %v21790_v0 }
0x14ed   :  { %18458 = vmatmul.mubr.f32.vlgmr.msra.gmra.mrb[8].mxu1 %v22727_v37 }
0x14ee   :  { %20354 = vmatpush3.bf16.msra.mxu1 %v22032_v58  ;;  %18468 = vmatprep.mubr.msk.f32.mxu1 %vm21791_vm1, %v23806_v54 }
0x14ef   :  { %20355 = vmatprep.subr.bf16.mxu1 %v21790_v0 }
0x14f2   :  { %20357 = vmatpush3.bf16.msra.mxu1 %v22046_v7 }
0x14f3   :  { %20358 = vmatprep.subr.bf16.mxu1 %v21790_v0 }
0x14f5   :  { %18469 = vmatmul.mubr.f32.vlgmr.msra.gmra.mrb[8].mxu1 %v22730_v49 }
0x14f6   :  { %20360 = vmatpush3.bf16.msra.mxu1 %v21886_v21  ;;  %18479 = vmatprep.mubr.msk.f32.mxu1 %vm21791_vm1, %v23806_v54 }
0x14f7   :  { %20361 = vmatprep.subr.bf16.mxu1 %v21790_v0 }
0x14fa   :  { %20363 = vmatpush3.bf16.msra.mxu1 %v21895_v26 }
0x14fb   :  { %20364 = vmatprep.subr.bf16.mxu1 %v21790_v0 }
0x14fd   :  { %18480 = vmatmul.mubr.f32.vlgmr.msra.gmra.mrb[8].mxu1 %v22735_v52 }
0x14fe   :  { %20366 = vmatpush3.bf16.msra.mxu1 %v22070_v30  ;;  %18490 = vmatprep.mubr.msk.f32.mxu1 %vm21791_vm1, %v23806_v54 }
0x14ff   :  { %20367 = vmatprep.subr.bf16.mxu1 %v21790_v0 }
0x1502   :  { %20369 = vmatpush3.bf16.msra.mxu1 %v22081_v8 }
0x1503   :  { %20370 = vmatprep.subr.bf16.mxu1 %v21790_v0 }
0x1505   :  { %18491 = vmatmul.mubr.f32.vlgmr.msra.gmra.mrb[8].mxu1 %v22727_v37 }
0x1506   :  { %20372 = vmatpush3.bf16.msra.mxu1 %v21886_v21  ;;  %18501 = vmatprep.mubr.msk.f32.mxu1 %vm21791_vm1, %v23806_v54 }
0x1507   :  { %20373 = vmatprep.subr.bf16.mxu1 %v21790_v0 }
0x150a   :  { %20375 = vmatpush3.bf16.msra.mxu1 %v21895_v26 }
0x150b   :  { %20448 = vmatprep.subr.bf16.mxu1 %v21790_v0 }
0x150d   :  { %18502 = vmatmul.mubr.f32.vlgmr.msra.gmra.mrb[8].mxu1 %v22727_v37 }
0x150e   :  { %20450 = vmatpush3.bf16.msra.mxu1 %v22707_v39  ;;  %18644 = vmatprep.mubr.msk.f32.mxu1 %vm21791_vm1, %v23806_v54 }
0x150f   :  { %20451 = vmatprep.subr.bf16.mxu1 %v21790_v0 }
0x1512   :  { %20453 = vmatpush3.bf16.msra.mxu1 %v22711_v44 }
0x1513   :  { %20454 = vmatprep.subr.bf16.mxu1 %v21790_v0 }
0x1537   :  { %v5961_v21 = vpop.permute.xlu1 %5960 }
0x1538   :  { %v5962_v3 = vsel %vm838_vm0, %v5961_v21, 0 }
0x1539   :  { %v22784_v50 = vand.u32 4294901760, %v5962_v3 }
0x153b   :  { %v6034_v26 = vsub.f32 %v5962_v3, %v22784_v50 }
0x153d   :  { %v6035_v58 = vand.u32 4294901760, %v6034_v26 }
0x153f   :  { %v6036_v7 = vsub.f32 %v6034_v26, %v6035_v58 }
0x1541   :  { %v6037_v30 = vand.u32 4294901760, %v6036_v7 }
0x1543   :  { %18645 = vmatmul.mubr.f32.vlgmr.msra.gmra.mrb[10].mxu1 %v6037_v30 }
0x1544   :  { %20456 = vmatpush3.bf16.msra.mxu1 %v22715_v47  ;;  %18655 = vmatprep.mubr.msk.f32.mxu1 %vm21791_vm1, %v23806_v54 }
0x1545   :  { %20457 = vmatprep.subr.bf16.mxu1 %v21790_v0 }
0x1548   :  { %20459 = vmatpush3.bf16.msra.mxu1 %v22718_v40 }
0x1549   :  { %20460 = vmatprep.subr.bf16.mxu1 %v21790_v0 }
0x154b   :  { %18656 = vmatmul.mubr.f32.vlgmr.msra.gmra.mrb[10].mxu1 %v22784_v50 }
0x154c   :  { %20462 = vmatpush3.bf16.msra.mxu1 %v22720_v45  ;;  %18666 = vmatprep.mubr.msk.f32.mxu1 %vm21791_vm1, %v23806_v54 }
0x154d   :  { %20463 = vmatprep.subr.bf16.mxu1 %v21790_v0 }
0x1550   :  { %20465 = vmatpush3.bf16.msra.mxu1 %v22722_v14 }
0x1551   :  { %20466 = vmatprep.subr.bf16.mxu1 %v21790_v0 }
0x1553   :  { %18667 = vmatmul.mubr.f32.vlgmr.msra.gmra.mrb[10].mxu1 %v6034_v26 }
0x1554   :  { %20468 = vmatpush3.bf16.msra.mxu1 %v22707_v39  ;;  %18677 = vmatprep.mubr.msk.f32.mxu1 %vm21791_vm1, %v23806_v54 }
0x1555   :  { %20469 = vmatprep.subr.bf16.mxu1 %v21790_v0 }
0x1558   :  { %20471 = vmatpush3.bf16.msra.mxu1 %v22711_v44 }
0x1559   :  { %20472 = vmatprep.subr.bf16.mxu1 %v21790_v0 }
0x155b   :  { %18678 = vmatmul.mubr.f32.vlgmr.msra.gmra.mrb[10].mxu1 %v6035_v58 }
0x155c   :  { %20474 = vmatpush3.bf16.msra.mxu1 %v22725_v11  ;;  %18688 = vmatprep.mubr.msk.f32.mxu1 %vm21791_vm1, %v23806_v54 }
0x155d   :  { %20475 = vmatprep.subr.bf16.mxu1 %v21790_v0 }
0x1560   :  { %20477 = vmatpush3.bf16.msra.mxu1 %v22732_v55 }
0x1561   :  { %20478 = vmatprep.subr.bf16.mxu1 %v21790_v0 }
0x1563   :  { %18689 = vmatmul.mubr.f32.vlgmr.msra.gmra.mrb[10].mxu1 %v22784_v50 }
0x1564   :  { %20480 = vmatpush3.bf16.msra.mxu1 %v22707_v39  ;;  %18699 = vmatprep.mubr.msk.f32.mxu1 %vm21791_vm1, %v23806_v54 }
0x1565   :  { %20481 = vmatprep.subr.bf16.mxu1 %v21790_v0 }
0x1568   :  { %20483 = vmatpush3.bf16.msra.mxu1 %v22711_v44 }
0x1569   :  { %20484 = vmatprep.subr.bf16.mxu1 %v21790_v0 }
0x156b   :  { %18700 = vmatmul.mubr.f32.vlgmr.msra.gmra.mrb[10].mxu1 %v22784_v50 }
0x156c   :  { %20486 = vmatpush3.bf16.msra.mxu1 %v22556_v53  ;;  %18710 = vmatprep.mubr.msk.f32.mxu1 %vm21791_vm1, %v23806_v54 }
0x156d   :  { %20487 = vmatprep.subr.bf16.mxu1 %v21790_v0 }
0x1570   :  { %20489 = vmatpush3.bf16.msra.mxu1 %v22561_v10 }
0x1571   :  { %20490 = vmatprep.subr.bf16.mxu1 %v21790_v0 }
0x1573   :  { %18711 = vmatmul.mubr.f32.vlgmr.msra.gmra.mrb[12].mxu1 %v6037_v30 }
0x1574   :  { %20492 = vmatpush3.bf16.msra.mxu1 %v22568_v46  ;;  %18721 = vmatprep.mubr.msk.f32.mxu1 %vm21791_vm1, %v23806_v54 }
0x1575   :  { %20493 = vmatprep.subr.bf16.mxu1 %v21790_v0 }
0x1578   :  { %20495 = vmatpush3.bf16.msra.mxu1 %v22573_v56 }
0x1579   :  { %20496 = vmatprep.subr.bf16.mxu1 %v21790_v0 }
0x157b   :  { %18722 = vmatmul.mubr.f32.vlgmr.msra.gmra.mrb[12].mxu1 %v22784_v50 }
0x157c   :  { %20498 = vmatpush3.bf16.msra.mxu1 %v22579_v60  ;;  %18732 = vmatprep.mubr.msk.f32.mxu1 %vm21791_vm1, %v23806_v54 }
0x157d   :  { %20499 = vmatprep.subr.bf16.mxu1 %v21790_v0 }
0x1580   :  { %20501 = vmatpush3.bf16.msra.mxu1 %v22585_v19 }
0x1581   :  { %20502 = vmatprep.subr.bf16.mxu1 %v21790_v0 }
0x1583   :  { %18733 = vmatmul.mubr.f32.vlgmr.msra.gmra.mrb[12].mxu1 %v6034_v26 }
0x1584   :  { %20504 = vmatpush3.bf16.msra.mxu1 %v22556_v53  ;;  %18743 = vmatprep.mubr.msk.f32.mxu1 %vm21791_vm1, %v23806_v54 }
0x1585   :  { %20505 = vmatprep.subr.bf16.mxu1 %v21790_v0 }
0x1588   :  { %20507 = vmatpush3.bf16.msra.mxu1 %v22561_v10 }
0x1589   :  { %20508 = vmatprep.subr.bf16.mxu1 %v21790_v0 }
0x158b   :  { %18744 = vmatmul.mubr.f32.vlgmr.msra.gmra.mrb[12].mxu1 %v6035_v58 }
0x158c   :  { %20510 = vmatpush3.bf16.msra.mxu1 %v22598_v61  ;;  %18754 = vmatprep.mubr.msk.f32.mxu1 %vm21791_vm1, %v23806_v54 }
0x158d   :  { %20511 = vmatprep.subr.bf16.mxu1 %v21790_v0 }
0x1590   :  { %20513 = vmatpush3.bf16.msra.mxu1 %v22609_v27 }
0x1591   :  { %20514 = vmatprep.subr.bf16.mxu1 %v21790_v0 }
0x1593   :  { %18755 = vmatmul.mubr.f32.vlgmr.msra.gmra.mrb[12].mxu1 %v22784_v50 }
0x1594   :  { %20516 = vmatpush3.bf16.msra.mxu1 %v22556_v53  ;;  %18765 = vmatprep.mubr.msk.f32.mxu1 %vm21791_vm1, %v23806_v54 }
0x1595   :  { %20517 = vmatprep.subr.bf16.mxu1 %v21790_v0 }
0x1598   :  { %20519 = vmatpush3.bf16.msra.mxu1 %v22561_v10 }
0x1599   :  { %20520 = vmatprep.subr.bf16.mxu1 %v21790_v0 }
0x159b   :  { %18766 = vmatmul.mubr.f32.vlgmr.msra.gmra.mrb[12].mxu1 %v22784_v50 }
0x159c   :  { %20522 = vmatpush3.bf16.msra.mxu1 %v22628_v33  ;;  %18776 = vmatprep.mubr.msk.f32.mxu1 %vm21791_vm1, %v23806_v54 }
0x159d   :  { %20523 = vmatprep.subr.bf16.mxu1 %v21790_v0 }
0x15a0   :  { %20525 = vmatpush3.bf16.msra.mxu1 %v22634_v4 }
0x15a1   :  { %20526 = vmatprep.subr.bf16.mxu1 %v21790_v0 }
0x15a3   :  { %18777 = vmatmul.mubr.f32.vlgmr.msra.gmra.mrb[12].mxu1 %v22253_v28 }
0x15a4   :  { %20528 = vmatpush3.bf16.msra.mxu1 %v22641_v32  ;;  %18787 = vmatprep.mubr.msk.f32.mxu1 %vm21791_vm1, %v23806_v54 }
0x15a5   :  { %20529 = vmatprep.subr.bf16.mxu1 %v21790_v0 }
0x15a8   :  { %20531 = vmatpush3.bf16.msra.mxu1 %v22646_v2 }
0x15a9   :  { %20532 = vmatprep.subr.bf16.mxu1 %v21790_v0 }
0x15ab   :  { %18788 = vmatmul.mubr.f32.vlgmr.msra.gmra.mrb[12].mxu1 %v22243_v62 }
0x15ac   :  { %20534 = vmatpush3.bf16.msra.mxu1 %v22652_v5  ;;  %18798 = vmatprep.mubr.msk.f32.mxu1 %vm21791_vm1, %v23806_v54 }
0x15ad   :  { %20535 = vmatprep.subr.bf16.mxu1 %v21790_v0 }
0x15b0   :  { %20537 = vmatpush3.bf16.msra.mxu1 %v22657_v17 }
0x15b1   :  { %20538 = vmatprep.subr.bf16.mxu1 %v21790_v0 }
0x15b3   :  { %18799 = vmatmul.mubr.f32.vlgmr.msra.gmra.mrb[12].mxu1 %v22246_v6 }
0x15b4   :  { %20540 = vmatpush3.bf16.msra.mxu1 %v22628_v33  ;;  %18809 = vmatprep.mubr.msk.f32.mxu1 %vm21791_vm1, %v23806_v54 }
0x15b5   :  { %20541 = vmatprep.subr.bf16.mxu1 %v21790_v0 }
0x15b8   :  { %20543 = vmatpush3.bf16.msra.mxu1 %v22634_v4 }
0x15b9   :  { %20544 = vmatprep.subr.bf16.mxu1 %v21790_v0 }
0x15bb   :  { %18810 = vmatmul.mubr.f32.vlgmr.msra.gmra.mrb[12].mxu1 %v22249_v22 }
0x15bc   :  { %20546 = vmatpush3.bf16.msra.mxu1 %v22670_v16  ;;  %18820 = vmatprep.mubr.msk.f32.mxu1 %vm21791_vm1, %v23806_v54 }
0x15bd   :  { %20547 = vmatprep.subr.bf16.mxu1 %v21790_v0 }
0x15c0   :  { %20549 = vmatpush3.bf16.msra.mxu1 %v22675_v24 }
0x15c1   :  { %20550 = vmatprep.subr.bf16.mxu1 %v21790_v0 }
0x15c3   :  { %18821 = vmatmul.mubr.f32.vlgmr.msra.gmra.mrb[12].mxu1 %v22243_v62 }
0x15c4   :  { %20552 = vmatpush3.bf16.msra.mxu1 %v22628_v33  ;;  %18831 = vmatprep.mubr.msk.f32.mxu1 %vm21791_vm1, %v23806_v54 }
0x15c5   :  { %20553 = vmatprep.subr.bf16.mxu1 %v21790_v0 }
0x15c8   :  { %20555 = vmatpush3.bf16.msra.mxu1 %v22634_v4 }
0x15c9   :  { %20664 = vmatprep.subr.bf16.mxu1 %v21790_v0 }
0x15cb   :  { %18832 = vmatmul.mubr.f32.vlgmr.msra.gmra.mrb[12].mxu1 %v22243_v62  ;;  %v22913_v62 = vld [vmem:[%s23780_s6] ss:$0 sm:$0xff] }
0x15cc   :  { %20666 = vmatpush3.bf16.msra.mxu1 %v22707_v39  ;;  %19040 = vmatprep.mubr.msk.f32.mxu1 %vm21791_vm1, %v23806_v54 }
0x15cd   :  { %20667 = vmatprep.subr.bf16.mxu1 %v21790_v0 }
0x15d0   :  { %20669 = vmatpush3.bf16.msra.mxu1 %v22711_v44 }
0x15d1   :  { %20670 = vmatprep.subr.bf16.mxu1 %v21790_v0 }
0x15e0   :  { %v4927_v8 = vpop.f32.mrb[8].mxu1 }
0x15e1   :  { %v22908_v6 = vadd.f32 %v22167_v38, %v4927_v8  ;;  %v18503_v22 = vpop.f32.mrb[9].mxu1 }
0x163e   :  { %v6445_v28 = vpop.f32.mrb[10].mxu1 }
0x163f   :  { %v21240_v59 = vadd.f32 %v22913_v62, %v6445_v28  ;;  %v18701_v31 = vpop.f32.mrb[11].mxu1 }
0x1641   :  { %6449 = vst [vmem:[%s23781_s7] sm:$0xff] %v21240_v59 }
0x169e   :  { %v7416_v34 = vpop.f32.mrb[12].mxu1 }
0x169f   :  { %21698 = vtanh.f32 %v7416_v34  ;;  %v18833_v29 = vpop.f32.mrb[13].mxu1  ;;  %v16871_v38 = vmul.f32 -1.442695, %v7416_v34 }
0x16a1   :  { %21700 = vpow2.f32 %v16871_v38 }
0x16a9   :  { %v21699_v57 = vpop.eup %21698 }
0x16aa   :  { %7429 = vrot.lane.b32.xlu0 %v21699_v57, %s21795_s0 }
0x16ab   :  { %v21701_v63 = vpop.eup %21700 }
0x16ac   :  { %v7423_v13 = vadd.f32 1.0, %v21701_v63 }
0x16ae   :  { %21702 = vrcp.f32 %v7423_v13 }
0x16b8   :  { %v21703_v9 = vpop.eup %21702 }
0x16b9   :  { %v7427_v15 = vmul.f32 %v21703_v9, %v22702_v36 }
0x171c   :  { %v7430_v12 = vpop.permute.xlu0 %7429 }
0x171d   :  { %v7432_v51 = vmul.f32 %v21703_v9, %v7430_v12 }
0x171f   :  { %7434 = vrot.lane.b32.xlu1 %v7432_v51, %s21795_s0 }
0x1791   :  { %v7435_v35 = vpop.permute.xlu1 %7434 }
0x1792   :  { %v22922_v43 = vadd.f32 %v7435_v35, %v7427_v15 }
0x1794   :  { %21704 = vtanh.f32 %v22922_v43 }
0x179e   :  { %v21705_v21 = vpop.eup %21704 }
0x179f   :  { %7440 = vrot.lane.b32.xlu0 %v21705_v21, %s21795_s0 }
0x1811   :  { %v7441_v3 = vpop.permute.xlu0 %7440 }
0x1812   :  { %v7443_v50 = vmul.f32 %v21703_v9, %v7441_v3 }
0x1814   :  { %7445 = vrot.lane.b32.xlu1 %v7443_v50, %s21796_s5 }
0x1886   :  { %v7446_v26 = vpop.permute.xlu1 %7445 }
0x1887   :  { %v7447_v58 = vsel %vm838_vm0, %v7446_v26, 0 }
0x1888   :  { %v22928_v7 = vand.u32 4294901760, %v7447_v58 }
0x188a   :  { %v7519_v30 = vsub.f32 %v7447_v58, %v22928_v7 }
0x188c   :  { %v7520_v36 = vand.u32 4294901760, %v7519_v30 }
0x188e   :  { %v7521_v8 = vsub.f32 %v7519_v30, %v7520_v36 }
0x1890   :  { %v7522_v22 = vand.u32 4294901760, %v7521_v8 }
0x1892   :  { %18843 = vmatmul.mubr.f32.vlgmr.msra.gmra.mrb[16].mxu0 %v7522_v22 }
0x1893   :  { %20564 = vmatpush3.bf16.msra.mxu0 %v22715_v47  ;;  %18853 = vmatprep.mubr.msk.f32.mxu0 %vm21791_vm1, %v23806_v54 }
0x1894   :  { %20565 = vmatprep.subr.bf16.mxu0 %v21790_v0 }
0x1897   :  { %20567 = vmatpush3.bf16.msra.mxu0 %v22718_v40 }
0x1898   :  { %20568 = vmatprep.subr.bf16.mxu0 %v21790_v0 }
0x189a   :  { %18854 = vmatmul.mubr.f32.vlgmr.msra.gmra.mrb[16].mxu0 %v22928_v7 }
0x189b   :  { %20570 = vmatpush3.bf16.msra.mxu0 %v22720_v45  ;;  %18864 = vmatprep.mubr.msk.f32.mxu0 %vm21791_vm1, %v23806_v54 }
0x189c   :  { %20571 = vmatprep.subr.bf16.mxu0 %v21790_v0 }
0x189f   :  { %20573 = vmatpush3.bf16.msra.mxu0 %v22722_v14 }
0x18a0   :  { %20574 = vmatprep.subr.bf16.mxu0 %v21790_v0 }
0x18a2   :  { %18865 = vmatmul.mubr.f32.vlgmr.msra.gmra.mrb[16].mxu0 %v7519_v30 }
0x18a3   :  { %20576 = vmatpush3.bf16.msra.mxu0 %v22707_v39  ;;  %18875 = vmatprep.mubr.msk.f32.mxu0 %vm21791_vm1, %v23806_v54 }
0x18a4   :  { %20577 = vmatprep.subr.bf16.mxu0 %v21790_v0 }
0x18a7   :  { %20579 = vmatpush3.bf16.msra.mxu0 %v22711_v44 }
0x18a8   :  { %20580 = vmatprep.subr.bf16.mxu0 %v21790_v0 }
0x18aa   :  { %18876 = vmatmul.mubr.f32.vlgmr.msra.gmra.mrb[16].mxu0 %v7520_v36 }
0x18ab   :  { %20582 = vmatpush3.bf16.msra.mxu0 %v22725_v11  ;;  %18886 = vmatprep.mubr.msk.f32.mxu0 %vm21791_vm1, %v23806_v54 }
0x18ac   :  { %20583 = vmatprep.subr.bf16.mxu0 %v21790_v0 }
0x18af   :  { %20585 = vmatpush3.bf16.msra.mxu0 %v22732_v55 }
0x18b0   :  { %20586 = vmatprep.subr.bf16.mxu0 %v21790_v0 }
0x18b2   :  { %18887 = vmatmul.mubr.f32.vlgmr.msra.gmra.mrb[16].mxu0 %v22928_v7 }
0x18b3   :  { %20588 = vmatpush3.bf16.msra.mxu0 %v22707_v39  ;;  %18897 = vmatprep.mubr.msk.f32.mxu0 %vm21791_vm1, %v23806_v54 }
0x18b4   :  { %20589 = vmatprep.subr.bf16.mxu0 %v21790_v0 }
0x18b7   :  { %20591 = vmatpush3.bf16.msra.mxu0 %v22711_v44 }
0x18b8   :  { %20592 = vmatprep.subr.bf16.mxu0 %v21790_v0 }
0x18ba   :  { %18898 = vmatmul.mubr.f32.vlgmr.msra.gmra.mrb[16].mxu0 %v22928_v7 }
0x18bb   :  { %20594 = vmatpush3.bf16.msra.mxu0 %v22556_v53  ;;  %18908 = vmatprep.mubr.msk.f32.mxu0 %vm21791_vm1, %v23806_v54 }
0x18bc   :  { %20595 = vmatprep.subr.bf16.mxu0 %v21790_v0 }
0x18bf   :  { %20597 = vmatpush3.bf16.msra.mxu0 %v22561_v10 }
0x18c0   :  { %20598 = vmatprep.subr.bf16.mxu0 %v21790_v0 }
0x18c2   :  { %18909 = vmatmul.mubr.f32.vlgmr.msra.gmra.mrb[18].mxu0 %v7522_v22 }
0x18c3   :  { %20600 = vmatpush3.bf16.msra.mxu0 %v22568_v46  ;;  %18919 = vmatprep.mubr.msk.f32.mxu0 %vm21791_vm1, %v23806_v54 }
0x18c4   :  { %20601 = vmatprep.subr.bf16.mxu0 %v21790_v0 }
0x18c7   :  { %20603 = vmatpush3.bf16.msra.mxu0 %v22573_v56 }
0x18c8   :  { %20604 = vmatprep.subr.bf16.mxu0 %v21790_v0 }
0x18ca   :  { %18920 = vmatmul.mubr.f32.vlgmr.msra.gmra.mrb[18].mxu0 %v22928_v7 }
0x18cb   :  { %20606 = vmatpush3.bf16.msra.mxu0 %v22579_v60  ;;  %18930 = vmatprep.mubr.msk.f32.mxu0 %vm21791_vm1, %v23806_v54 }
0x18cc   :  { %20607 = vmatprep.subr.bf16.mxu0 %v21790_v0 }
0x18cf   :  { %20609 = vmatpush3.bf16.msra.mxu0 %v22585_v19 }
0x18d0   :  { %20610 = vmatprep.subr.bf16.mxu0 %v21790_v0 }
0x18d2   :  { %18931 = vmatmul.mubr.f32.vlgmr.msra.gmra.mrb[18].mxu0 %v7519_v30 }
0x18d3   :  { %20612 = vmatpush3.bf16.msra.mxu0 %v22556_v53  ;;  %18941 = vmatprep.mubr.msk.f32.mxu0 %vm21791_vm1, %v23806_v54 }
0x18d4   :  { %20613 = vmatprep.subr.bf16.mxu0 %v21790_v0 }
0x18d7   :  { %20615 = vmatpush3.bf16.msra.mxu0 %v22561_v10 }
0x18d8   :  { %20616 = vmatprep.subr.bf16.mxu0 %v21790_v0 }
0x18da   :  { %18942 = vmatmul.mubr.f32.vlgmr.msra.gmra.mrb[18].mxu0 %v7520_v36 }
0x18db   :  { %20618 = vmatpush3.bf16.msra.mxu0 %v22598_v61  ;;  %18952 = vmatprep.mubr.msk.f32.mxu0 %vm21791_vm1, %v23806_v54 }
0x18dc   :  { %20619 = vmatprep.subr.bf16.mxu0 %v21790_v0 }
0x18df   :  { %20621 = vmatpush3.bf16.msra.mxu0 %v22609_v27 }
0x18e0   :  { %20622 = vmatprep.subr.bf16.mxu0 %v21790_v0 }
0x18e2   :  { %18953 = vmatmul.mubr.f32.vlgmr.msra.gmra.mrb[18].mxu0 %v22928_v7 }
0x18e3   :  { %20624 = vmatpush3.bf16.msra.mxu0 %v22556_v53  ;;  %18963 = vmatprep.mubr.msk.f32.mxu0 %vm21791_vm1, %v23806_v54 }
0x18e4   :  { %20625 = vmatprep.subr.bf16.mxu0 %v21790_v0 }
0x18e7   :  { %20627 = vmatpush3.bf16.msra.mxu0 %v22561_v10 }
0x18e8   :  { %20628 = vmatprep.subr.bf16.mxu0 %v21790_v0 }
0x18ea   :  { %18964 = vmatmul.mubr.f32.vlgmr.msra.gmra.mrb[18].mxu0 %v22928_v7 }
0x18eb   :  { %20630 = vmatpush3.bf16.msra.mxu0 %v22628_v33  ;;  %18974 = vmatprep.mubr.msk.f32.mxu0 %vm21791_vm1, %v23806_v54 }
0x18ec   :  { %20631 = vmatprep.subr.bf16.mxu0 %v21790_v0 }
0x18ef   :  { %20633 = vmatpush3.bf16.msra.mxu0 %v22634_v4 }
0x18f0   :  { %20634 = vmatprep.subr.bf16.mxu0 %v21790_v0 }
0x18f2   :  { %18975 = vmatmul.mubr.f32.vlgmr.msra.gmra.mrb[18].mxu0 %v22317_v25 }
0x18f3   :  { %20636 = vmatpush3.bf16.msra.mxu0 %v22641_v32  ;;  %18985 = vmatprep.mubr.msk.f32.mxu0 %vm21791_vm1, %v23806_v54 }
0x18f4   :  { %20637 = vmatprep.subr.bf16.mxu0 %v21790_v0 }
0x18f7   :  { %20639 = vmatpush3.bf16.msra.mxu0 %v22646_v2 }
0x18f8   :  { %20640 = vmatprep.subr.bf16.mxu0 %v21790_v0 }
0x18fa   :  { %18986 = vmatmul.mubr.f32.vlgmr.msra.gmra.mrb[18].mxu0 %v22307_v18 }
0x18fb   :  { %20642 = vmatpush3.bf16.msra.mxu0 %v22652_v5  ;;  %18996 = vmatprep.mubr.msk.f32.mxu0 %vm21791_vm1, %v23806_v54 }
0x18fc   :  { %20643 = vmatprep.subr.bf16.mxu0 %v21790_v0 }
0x18ff   :  { %20645 = vmatpush3.bf16.msra.mxu0 %v22657_v17 }
0x1900   :  { %20646 = vmatprep.subr.bf16.mxu0 %v21790_v0 }
0x1902   :  { %18997 = vmatmul.mubr.f32.vlgmr.msra.gmra.mrb[18].mxu0 %v22310_v20 }
0x1903   :  { %20648 = vmatpush3.bf16.msra.mxu0 %v22628_v33  ;;  %19007 = vmatprep.mubr.msk.f32.mxu0 %vm21791_vm1, %v23806_v54 }
0x1904   :  { %20649 = vmatprep.subr.bf16.mxu0 %v21790_v0 }
0x1907   :  { %20651 = vmatpush3.bf16.msra.mxu0 %v22634_v4 }
0x1908   :  { %20652 = vmatprep.subr.bf16.mxu0 %v21790_v0 }
0x190a   :  { %19008 = vmatmul.mubr.f32.vlgmr.msra.gmra.mrb[18].mxu0 %v22313_v23 }
0x190b   :  { %20654 = vmatpush3.bf16.msra.mxu0 %v22670_v16  ;;  %19018 = vmatprep.mubr.msk.f32.mxu0 %vm21791_vm1, %v23806_v54 }
0x190c   :  { %20655 = vmatprep.subr.bf16.mxu0 %v21790_v0 }
0x190f   :  { %20657 = vmatpush3.bf16.msra.mxu0 %v22675_v24 }
0x1910   :  { %20658 = vmatprep.subr.bf16.mxu0 %v21790_v0 }
0x1912   :  { %19019 = vmatmul.mubr.f32.vlgmr.msra.gmra.mrb[18].mxu0 %v22307_v18 }
0x1913   :  { %20660 = vmatpush3.bf16.msra.mxu0 %v22628_v33  ;;  %19029 = vmatprep.mubr.msk.f32.mxu0 %vm21791_vm1, %v23806_v54 }
0x1914   :  { %20661 = vmatprep.subr.bf16.mxu0 %v21790_v0 }
0x1917   :  { %20663 = vmatpush3.bf16.msra.mxu0 %v22634_v4 }
0x1918   :  { %20772 = vmatprep.subr.bf16.mxu0 %v21790_v0 }
0x191a   :  { %19030 = vmatmul.mubr.f32.vlgmr.msra.gmra.mrb[18].mxu0 %v22307_v18 }
0x191b   :  { %20774 = vmatpush3.bf16.msra.mxu0 %v22707_v39  ;;  %19238 = vmatprep.mubr.msk.f32.mxu0 %vm21791_vm1, %v23806_v54 }
0x191c   :  { %20775 = vmatprep.subr.bf16.mxu0 %v21790_v0 }
0x191f   :  { %20777 = vmatpush3.bf16.msra.mxu0 %v22711_v44 }
0x1920   :  { %20778 = vmatprep.subr.bf16.mxu0 %v21790_v0 }
0x198d   :  { %v7930_v20 = vpop.f32.mrb[16].mxu0 }
0x198e   :  { %v21241_v23 = vadd.f32 %v22913_v62, %v7930_v20  ;;  %v18899_v25 = vpop.f32.mrb[17].mxu0 }
0x1990   :  { %7934 = vst [vmem:[%s23781_s7 + $0x8] sm:$0xff] %v21241_v23 }
0x19ed   :  { %v8901_v18 = vpop.f32.mrb[18].mxu0 }
0x19ee   :  { %21706 = vtanh.f32 %v8901_v18  ;;  %v19031_v28 = vpop.f32.mrb[19].mxu0  ;;  %v16872_v31 = vmul.f32 -1.442695, %v8901_v18 }
0x19f0   :  { %21708 = vpow2.f32 %v16872_v31 }
0x19f8   :  { %v21707_v59 = vpop.eup %21706 }
0x19f9   :  { %8914 = vrot.lane.b32.xlu0 %v21707_v59, %s21795_s0 }
0x19fa   :  { %v21709_v34 = vpop.eup %21708 }
0x19fb   :  { %v8908_v29 = vadd.f32 1.0, %v21709_v34 }
0x19fd   :  { %21710 = vrcp.f32 %v8908_v29 }
0x1a07   :  { %v21711_v57 = vpop.eup %21710 }
0x1a08   :  { %v8912_v13 = vmul.f32 %v21711_v57, %v22922_v43 }
0x1a6b   :  { %v8915_v38 = vpop.permute.xlu0 %8914 }
0x1a6c   :  { %v8917_v63 = vmul.f32 %v21711_v57, %v8915_v38 }
0x1a6e   :  { %8919 = vrot.lane.b32.xlu1 %v8917_v63, %s21795_s0 }
0x1ae0   :  { %v8920_v9 = vpop.permute.xlu1 %8919 }
0x1ae1   :  { %v23058_v12 = vadd.f32 %v8920_v9, %v8912_v13 }
0x1ae3   :  { %21712 = vtanh.f32 %v23058_v12 }
0x1aed   :  { %v21713_v51 = vpop.eup %21712 }
0x1aee   :  { %8925 = vrot.lane.b32.xlu0 %v21713_v51, %s21795_s0 }
0x1b60   :  { %v8926_v15 = vpop.permute.xlu0 %8925 }
0x1b61   :  { %v8928_v35 = vmul.f32 %v21711_v57, %v8926_v15 }
0x1b63   :  { %8930 = vrot.lane.b32.xlu1 %v8928_v35, %s21796_s5 }
0x1bd5   :  { %v8931_v21 = vpop.permute.xlu1 %8930 }
0x1bd6   :  { %v8932_v3 = vsel %vm838_vm0, %v8931_v21, 0 }
0x1bd7   :  { %v23064_v50 = vand.u32 4294901760, %v8932_v3 }
0x1bd9   :  { %v9004_v26 = vsub.f32 %v8932_v3, %v23064_v50  ;;  %v23808_v3 = vld [vmem:[#allocation9_spill] sm:$0xff] }
0x1bdb   :  { %v9005_v43 = vand.u32 4294901760, %v9004_v26 }
0x1bdd   :  { %v9006_v58 = vsub.f32 %v9004_v26, %v9005_v43 }
0x1bdf   :  { %v9007_v7 = vand.u32 4294901760, %v9006_v58 }
0x1be1   :  { %19041 = vmatmul.mubr.f32.vlgmr.msra.gmra.mrb[14].mxu1 %v9007_v7 }
0x1be2   :  { %20672 = vmatpush3.bf16.msra.mxu1 %v22715_v47  ;;  %19051 = vmatprep.mubr.msk.f32.mxu1 %vm21791_vm1, %v23806_v54 }
0x1be3   :  { %20673 = vmatprep.subr.bf16.mxu1 %v21790_v0 }
0x1be6   :  { %20675 = vmatpush3.bf16.msra.mxu1 %v22718_v40 }
0x1be7   :  { %20676 = vmatprep.subr.bf16.mxu1 %v21790_v0 }
0x1be9   :  { %19052 = vmatmul.mubr.f32.vlgmr.msra.gmra.mrb[14].mxu1 %v23064_v50 }
0x1bea   :  { %20678 = vmatpush3.bf16.msra.mxu1 %v22720_v45  ;;  %19062 = vmatprep.mubr.msk.f32.mxu1 %vm21791_vm1, %v23806_v54 }
0x1beb   :  { %20679 = vmatprep.subr.bf16.mxu1 %v21790_v0 }
0x1bee   :  { %20681 = vmatpush3.bf16.msra.mxu1 %v22722_v14 }
0x1bef   :  { %20682 = vmatprep.subr.bf16.mxu1 %v21790_v0 }
0x1bf1   :  { %19063 = vmatmul.mubr.f32.vlgmr.msra.gmra.mrb[14].mxu1 %v9004_v26 }
0x1bf2   :  { %20684 = vmatpush3.bf16.msra.mxu1 %v22707_v39  ;;  %19073 = vmatprep.mubr.msk.f32.mxu1 %vm21791_vm1, %v23806_v54 }
0x1bf3   :  { %20685 = vmatprep.subr.bf16.mxu1 %v21790_v0 }
0x1bf6   :  { %20687 = vmatpush3.bf16.msra.mxu1 %v22711_v44 }
0x1bf7   :  { %20688 = vmatprep.subr.bf16.mxu1 %v21790_v0 }
0x1bf9   :  { %19074 = vmatmul.mubr.f32.vlgmr.msra.gmra.mrb[14].mxu1 %v9005_v43 }
0x1bfa   :  { %20690 = vmatpush3.bf16.msra.mxu1 %v22725_v11  ;;  %19084 = vmatprep.mubr.msk.f32.mxu1 %vm21791_vm1, %v23806_v54 }
0x1bfb   :  { %20691 = vmatprep.subr.bf16.mxu1 %v21790_v0 }
0x1bfe   :  { %20693 = vmatpush3.bf16.msra.mxu1 %v22732_v55 }
0x1bff   :  { %20694 = vmatprep.subr.bf16.mxu1 %v21790_v0 }
0x1c01   :  { %19085 = vmatmul.mubr.f32.vlgmr.msra.gmra.mrb[14].mxu1 %v23064_v50 }
0x1c02   :  { %20696 = vmatpush3.bf16.msra.mxu1 %v22707_v39  ;;  %19095 = vmatprep.mubr.msk.f32.mxu1 %vm21791_vm1, %v23806_v54 }
0x1c03   :  { %20697 = vmatprep.subr.bf16.mxu1 %v21790_v0 }
0x1c06   :  { %20699 = vmatpush3.bf16.msra.mxu1 %v22711_v44 }
0x1c07   :  { %20700 = vmatprep.subr.bf16.mxu1 %v21790_v0 }
0x1c09   :  { %19096 = vmatmul.mubr.f32.vlgmr.msra.gmra.mrb[14].mxu1 %v23064_v50 }
0x1c0a   :  { %20702 = vmatpush3.bf16.msra.mxu1 %v22556_v53  ;;  %19106 = vmatprep.mubr.msk.f32.mxu1 %vm21791_vm1, %v23806_v54 }
0x1c0b   :  { %20703 = vmatprep.subr.bf16.mxu1 %v21790_v0 }
0x1c0e   :  { %20705 = vmatpush3.bf16.msra.mxu1 %v22561_v10 }
0x1c0f   :  { %20706 = vmatprep.subr.bf16.mxu1 %v21790_v0 }
0x1c11   :  { %19107 = vmatmul.mubr.f32.vlgmr.msra.gmra.mrb[16].mxu1 %v9007_v7 }
0x1c12   :  { %20708 = vmatpush3.bf16.msra.mxu1 %v22568_v46  ;;  %19117 = vmatprep.mubr.msk.f32.mxu1 %vm21791_vm1, %v23806_v54 }
0x1c13   :  { %20709 = vmatprep.subr.bf16.mxu1 %v21790_v0 }
0x1c16   :  { %20711 = vmatpush3.bf16.msra.mxu1 %v22573_v56 }
0x1c17   :  { %20712 = vmatprep.subr.bf16.mxu1 %v21790_v0 }
0x1c19   :  { %19118 = vmatmul.mubr.f32.vlgmr.msra.gmra.mrb[16].mxu1 %v23064_v50 }
0x1c1a   :  { %20714 = vmatpush3.bf16.msra.mxu1 %v22579_v60  ;;  %19128 = vmatprep.mubr.msk.f32.mxu1 %vm21791_vm1, %v23806_v54 }
0x1c1b   :  { %20715 = vmatprep.subr.bf16.mxu1 %v21790_v0 }
0x1c1e   :  { %20717 = vmatpush3.bf16.msra.mxu1 %v22585_v19 }
0x1c1f   :  { %20718 = vmatprep.subr.bf16.mxu1 %v21790_v0 }
0x1c21   :  { %19129 = vmatmul.mubr.f32.vlgmr.msra.gmra.mrb[16].mxu1 %v9004_v26  ;;  %v23810_v26 = vld [vmem:[#allocation7_spill] sm:$0xff] }
0x1c22   :  { %20720 = vmatpush3.bf16.msra.mxu1 %v22556_v53  ;;  %19139 = vmatprep.mubr.msk.f32.mxu1 %vm21791_vm1, %v23806_v54 }
0x1c23   :  { %20721 = vmatprep.subr.bf16.mxu1 %v21790_v0 }
0x1c26   :  { %20723 = vmatpush3.bf16.msra.mxu1 %v22561_v10 }
0x1c27   :  { %20724 = vmatprep.subr.bf16.mxu1 %v21790_v0 }
0x1c29   :  { %19140 = vmatmul.mubr.f32.vlgmr.msra.gmra.mrb[16].mxu1 %v9005_v43  ;;  %v23811_v43 = vld [vmem:[#allocation8_spill] sm:$0xff] }
0x1c2a   :  { %20726 = vmatpush3.bf16.msra.mxu1 %v22598_v61  ;;  %19150 = vmatprep.mubr.msk.f32.mxu1 %vm21791_vm1, %v23806_v54 }
0x1c2b   :  { %20727 = vmatprep.subr.bf16.mxu1 %v21790_v0 }
0x1c2e   :  { %20729 = vmatpush3.bf16.msra.mxu1 %v22609_v27 }
0x1c2f   :  { %20730 = vmatprep.subr.bf16.mxu1 %v21790_v0 }
0x1c31   :  { %19151 = vmatmul.mubr.f32.vlgmr.msra.gmra.mrb[16].mxu1 %v23064_v50 }
0x1c32   :  { %20732 = vmatpush3.bf16.msra.mxu1 %v22556_v53  ;;  %19161 = vmatprep.mubr.msk.f32.mxu1 %vm21791_vm1, %v23806_v54 }
0x1c33   :  { %20733 = vmatprep.subr.bf16.mxu1 %v21790_v0 }
0x1c36   :  { %20735 = vmatpush3.bf16.msra.mxu1 %v22561_v10 }
0x1c37   :  { %20736 = vmatprep.subr.bf16.mxu1 %v21790_v0 }
0x1c39   :  { %19162 = vmatmul.mubr.f32.vlgmr.msra.gmra.mrb[16].mxu1 %v23064_v50  ;;  %v23809_v50 = vld [vmem:[#allocation6_spill] sm:$0xff] }
0x1c3a   :  { %20738 = vmatpush3.bf16.msra.mxu1 %v22628_v33  ;;  %19172 = vmatprep.mubr.msk.f32.mxu1 %vm21791_vm1, %v23806_v54 }
0x1c3b   :  { %20739 = vmatprep.subr.bf16.mxu1 %v21790_v0 }
0x1c3e   :  { %20741 = vmatpush3.bf16.msra.mxu1 %v22634_v4 }
0x1c3f   :  { %20742 = vmatprep.subr.bf16.mxu1 %v21790_v0 }
0x1c41   :  { %19173 = vmatmul.mubr.f32.vlgmr.msra.gmra.mrb[16].mxu1 %v22381_v48  ;;  %v23807_v48 = vld [vmem:[#allocation5_spill] sm:$0xff] }
0x1c42   :  { %20744 = vmatpush3.bf16.msra.mxu1 %v22641_v32  ;;  %19183 = vmatprep.mubr.msk.f32.mxu1 %vm21791_vm1, %v23806_v54 }
0x1c43   :  { %20745 = vmatprep.subr.bf16.mxu1 %v21790_v0 }
0x1c46   :  { %20747 = vmatpush3.bf16.msra.mxu1 %v22646_v2 }
0x1c47   :  { %20748 = vmatprep.subr.bf16.mxu1 %v21790_v0 }
0x1c49   :  { %19184 = vmatmul.mubr.f32.vlgmr.msra.gmra.mrb[16].mxu1 %v22371_v41 }
0x1c4a   :  { %20750 = vmatpush3.bf16.msra.mxu1 %v22652_v5  ;;  %19194 = vmatprep.mubr.msk.f32.mxu1 %vm21791_vm1, %v23806_v54 }
0x1c4b   :  { %20751 = vmatprep.subr.bf16.mxu1 %v21790_v0 }
0x1c4e   :  { %20753 = vmatpush3.bf16.msra.mxu1 %v22657_v17 }
0x1c4f   :  { %20754 = vmatprep.subr.bf16.mxu1 %v21790_v0 }
0x1c51   :  { %19195 = vmatmul.mubr.f32.vlgmr.msra.gmra.mrb[16].mxu1 %v22374_v42 }
0x1c52   :  { %20756 = vmatpush3.bf16.msra.mxu1 %v22628_v33  ;;  %19205 = vmatprep.mubr.msk.f32.mxu1 %vm21791_vm1, %v23806_v54 }
0x1c53   :  { %20757 = vmatprep.subr.bf16.mxu1 %v21790_v0 }
0x1c56   :  { %20759 = vmatpush3.bf16.msra.mxu1 %v22634_v4 }
0x1c57   :  { %20760 = vmatprep.subr.bf16.mxu1 %v21790_v0 }
0x1c59   :  { %19206 = vmatmul.mubr.f32.vlgmr.msra.gmra.mrb[16].mxu1 %v23807_v48 }
0x1c5a   :  { %20762 = vmatpush3.bf16.msra.mxu1 %v22670_v16  ;;  %19216 = vmatprep.mubr.msk.f32.mxu1 %vm21791_vm1, %v23806_v54 }
0x1c5b   :  { %20763 = vmatprep.subr.bf16.mxu1 %v21790_v0 }
0x1c5e   :  { %20765 = vmatpush3.bf16.msra.mxu1 %v22675_v24 }
0x1c5f   :  { %20766 = vmatprep.subr.bf16.mxu1 %v21790_v0 }
0x1c61   :  { %19217 = vmatmul.mubr.f32.vlgmr.msra.gmra.mrb[16].mxu1 %v22371_v41 }
0x1c62   :  { %20768 = vmatpush3.bf16.msra.mxu1 %v22628_v33  ;;  %19227 = vmatprep.mubr.msk.f32.mxu1 %vm21791_vm1, %v23806_v54 }
0x1c63   :  { %20769 = vmatprep.subr.bf16.mxu1 %v21790_v0 }
0x1c66   :  { %20771 = vmatpush3.bf16.msra.mxu1 %v22634_v4 }
0x1c67   :  { %20880 = vmatprep.subr.bf16.mxu1 %v21790_v0 }
0x1c69   :  { %19228 = vmatmul.mubr.f32.vlgmr.msra.gmra.mrb[16].mxu1 %v22371_v41 }
0x1c6a   :  { %20882 = vmatpush3.bf16.msra.mxu1 %v22707_v39  ;;  %19436 = vmatprep.mubr.msk.f32.mxu1 %vm21791_vm1, %v23806_v54 }
0x1c6b   :  { %20883 = vmatprep.subr.bf16.mxu1 %v21790_v0 }
0x1c6e   :  { %20885 = vmatpush3.bf16.msra.mxu1 %v22711_v44 }
0x1c6f   :  { %20886 = vmatprep.subr.bf16.mxu1 %v21790_v0 }
0x1cdc   :  { %v9415_v42 = vpop.f32.mrb[14].mxu1 }
0x1cdd   :  { %v21242_v30 = vadd.f32 %v22913_v62, %v9415_v42  ;;  %v19097_v36 = vpop.f32.mrb[15].mxu1 }
0x1cdf   :  { %9419 = vst [vmem:[%s23781_s7 + $0x10] sm:$0xff] %v21242_v30 }
0x1d3c   :  { %v10386_v41 = vpop.f32.mrb[16].mxu1 }
0x1d3d   :  { %21714 = vtanh.f32 %v10386_v41  ;;  %v19229_v8 = vpop.f32.mrb[17].mxu1  ;;  %v16873_v20 = vmul.f32 -1.442695, %v10386_v41 }
0x1d3f   :  { %21716 = vpow2.f32 %v16873_v20 }
0x1d47   :  { %v21715_v22 = vpop.eup %21714 }
0x1d48   :  { %10399 = vrot.lane.b32.xlu0 %v21715_v22, %s21795_s0 }
0x1d49   :  { %v21717_v23 = vpop.eup %21716 }
0x1d4a   :  { %v10393_v25 = vadd.f32 1.0, %v21717_v23 }
0x1d4c   :  { %21718 = vrcp.f32 %v10393_v25 }
0x1d56   :  { %v21719_v18 = vpop.eup %21718 }
0x1d57   :  { %v10397_v31 = vmul.f32 %v21719_v18, %v23058_v12 }
0x1dba   :  { %v10400_v28 = vpop.permute.xlu0 %10399 }
0x1dbb   :  { %v10402_v59 = vmul.f32 %v21719_v18, %v10400_v28 }
0x1dbd   :  { %10404 = vrot.lane.b32.xlu1 %v10402_v59, %s21795_s0 }
0x1e2f   :  { %v10405_v34 = vpop.permute.xlu1 %10404 }
0x1e30   :  { %v23194_v29 = vadd.f32 %v10405_v34, %v10397_v31 }
0x1e32   :  { %21720 = vtanh.f32 %v23194_v29 }
0x1e3c   :  { %v21721_v57 = vpop.eup %21720 }
0x1e3d   :  { %10410 = vrot.lane.b32.xlu0 %v21721_v57, %s21795_s0 }
0x1eaf   :  { %v10411_v38 = vpop.permute.xlu0 %10410 }
0x1eb0   :  { %v10413_v63 = vmul.f32 %v21719_v18, %v10411_v38 }
0x1eb2   :  { %10415 = vrot.lane.b32.xlu1 %v10413_v63, %s21796_s5 }
0x1f24   :  { %v10416_v13 = vpop.permute.xlu1 %10415 }
0x1f25   :  { %v10417_v9 = vsel %vm838_vm0, %v10416_v13, 0 }
0x1f26   :  { %v23200_v51 = vand.u32 4294901760, %v10417_v9 }
0x1f28   :  { %v10489_v15 = vsub.f32 %v10417_v9, %v23200_v51 }
0x1f2a   :  { %v10490_v12 = vand.u32 4294901760, %v10489_v15 }
0x1f2c   :  { %v10491_v35 = vsub.f32 %v10489_v15, %v10490_v12 }
0x1f2e   :  { %v10492_v21 = vand.u32 4294901760, %v10491_v35  ;;  %v23814_v35 = vld [vmem:[#allocation11_spill] sm:$0xff] }
0x1f30   :  { %19239 = vmatmul.mubr.f32.vlgmr.msra.gmra.mrb[20].mxu0 %v10492_v21 }
0x1f31   :  { %20780 = vmatpush3.bf16.msra.mxu0 %v22715_v47  ;;  %19249 = vmatprep.mubr.msk.f32.mxu0 %vm21791_vm1, %v23806_v54 }
0x1f32   :  { %20781 = vmatprep.subr.bf16.mxu0 %v21790_v0 }
0x1f35   :  { %20783 = vmatpush3.bf16.msra.mxu0 %v22718_v40 }
0x1f36   :  { %20784 = vmatprep.subr.bf16.mxu0 %v21790_v0 }
0x1f38   :  { %19250 = vmatmul.mubr.f32.vlgmr.msra.gmra.mrb[20].mxu0 %v23200_v51 }
0x1f39   :  { %20786 = vmatpush3.bf16.msra.mxu0 %v22720_v45  ;;  %19260 = vmatprep.mubr.msk.f32.mxu0 %vm21791_vm1, %v23806_v54 }
0x1f3a   :  { %20787 = vmatprep.subr.bf16.mxu0 %v21790_v0 }
0x1f3d   :  { %20789 = vmatpush3.bf16.msra.mxu0 %v22722_v14 }
0x1f3e   :  { %20790 = vmatprep.subr.bf16.mxu0 %v21790_v0 }
0x1f40   :  { %19261 = vmatmul.mubr.f32.vlgmr.msra.gmra.mrb[20].mxu0 %v10489_v15 }
0x1f41   :  { %20792 = vmatpush3.bf16.msra.mxu0 %v22707_v39  ;;  %19271 = vmatprep.mubr.msk.f32.mxu0 %vm21791_vm1, %v23806_v54 }
0x1f42   :  { %20793 = vmatprep.subr.bf16.mxu0 %v21790_v0 }
0x1f45   :  { %20795 = vmatpush3.bf16.msra.mxu0 %v22711_v44 }
0x1f46   :  { %20796 = vmatprep.subr.bf16.mxu0 %v21790_v0 }
0x1f48   :  { %19272 = vmatmul.mubr.f32.vlgmr.msra.gmra.mrb[20].mxu0 %v10490_v12 }
0x1f49   :  { %20798 = vmatpush3.bf16.msra.mxu0 %v22725_v11  ;;  %19282 = vmatprep.mubr.msk.f32.mxu0 %vm21791_vm1, %v23806_v54 }
0x1f4a   :  { %20799 = vmatprep.subr.bf16.mxu0 %v21790_v0 }
0x1f4d   :  { %20801 = vmatpush3.bf16.msra.mxu0 %v22732_v55 }
0x1f4e   :  { %20802 = vmatprep.subr.bf16.mxu0 %v21790_v0 }
0x1f50   :  { %19283 = vmatmul.mubr.f32.vlgmr.msra.gmra.mrb[20].mxu0 %v23200_v51 }
0x1f51   :  { %20804 = vmatpush3.bf16.msra.mxu0 %v22707_v39  ;;  %19293 = vmatprep.mubr.msk.f32.mxu0 %vm21791_vm1, %v23806_v54 }
0x1f52   :  { %20805 = vmatprep.subr.bf16.mxu0 %v21790_v0 }
0x1f55   :  { %20807 = vmatpush3.bf16.msra.mxu0 %v22711_v44 }
0x1f56   :  { %20808 = vmatprep.subr.bf16.mxu0 %v21790_v0 }
0x1f58   :  { %19294 = vmatmul.mubr.f32.vlgmr.msra.gmra.mrb[20].mxu0 %v23200_v51 }
0x1f59   :  { %20810 = vmatpush3.bf16.msra.mxu0 %v22556_v53  ;;  %19304 = vmatprep.mubr.msk.f32.mxu0 %vm21791_vm1, %v23806_v54 }
0x1f5a   :  { %20811 = vmatprep.subr.bf16.mxu0 %v21790_v0 }
0x1f5d   :  { %20813 = vmatpush3.bf16.msra.mxu0 %v22561_v10 }
0x1f5e   :  { %20814 = vmatprep.subr.bf16.mxu0 %v21790_v0 }
0x1f60   :  { %19305 = vmatmul.mubr.f32.vlgmr.msra.gmra.mrb[22].mxu0 %v10492_v21  ;;  %v23815_v21 = vld [vmem:[#allocation12_spill] sm:$0xff] }
0x1f61   :  { %20816 = vmatpush3.bf16.msra.mxu0 %v22568_v46  ;;  %19315 = vmatprep.mubr.msk.f32.mxu0 %vm21791_vm1, %v23806_v54 }
0x1f62   :  { %20817 = vmatprep.subr.bf16.mxu0 %v21790_v0 }
0x1f65   :  { %20819 = vmatpush3.bf16.msra.mxu0 %v22573_v56 }
0x1f66   :  { %20820 = vmatprep.subr.bf16.mxu0 %v21790_v0 }
0x1f68   :  { %19316 = vmatmul.mubr.f32.vlgmr.msra.gmra.mrb[22].mxu0 %v23200_v51 }
0x1f69   :  { %20822 = vmatpush3.bf16.msra.mxu0 %v22579_v60  ;;  %19326 = vmatprep.mubr.msk.f32.mxu0 %vm21791_vm1, %v23806_v54 }
0x1f6a   :  { %20823 = vmatprep.subr.bf16.mxu0 %v21790_v0 }
0x1f6d   :  { %20825 = vmatpush3.bf16.msra.mxu0 %v22585_v19 }
0x1f6e   :  { %20826 = vmatprep.subr.bf16.mxu0 %v21790_v0 }
0x1f70   :  { %19327 = vmatmul.mubr.f32.vlgmr.msra.gmra.mrb[22].mxu0 %v10489_v15  ;;  %v23812_v15 = vld [vmem:[#allocation13_spill] sm:$0xff] }
0x1f71   :  { %20828 = vmatpush3.bf16.msra.mxu0 %v22556_v53  ;;  %19337 = vmatprep.mubr.msk.f32.mxu0 %vm21791_vm1, %v23806_v54 }
0x1f72   :  { %20829 = vmatprep.subr.bf16.mxu0 %v21790_v0 }
0x1f75   :  { %20831 = vmatpush3.bf16.msra.mxu0 %v22561_v10 }
0x1f76   :  { %20832 = vmatprep.subr.bf16.mxu0 %v21790_v0 }
0x1f78   :  { %19338 = vmatmul.mubr.f32.vlgmr.msra.gmra.mrb[22].mxu0 %v10490_v12  ;;  %v23813_v12 = vld [vmem:[#allocation10_spill] sm:$0xff] }
0x1f79   :  { %20834 = vmatpush3.bf16.msra.mxu0 %v22598_v61  ;;  %19348 = vmatprep.mubr.msk.f32.mxu0 %vm21791_vm1, %v23806_v54 }
0x1f7a   :  { %20835 = vmatprep.subr.bf16.mxu0 %v21790_v0 }
0x1f7d   :  { %20837 = vmatpush3.bf16.msra.mxu0 %v22609_v27 }
0x1f7e   :  { %20838 = vmatprep.subr.bf16.mxu0 %v21790_v0 }
0x1f80   :  { %19349 = vmatmul.mubr.f32.vlgmr.msra.gmra.mrb[22].mxu0 %v23200_v51 }
0x1f81   :  { %20840 = vmatpush3.bf16.msra.mxu0 %v22556_v53  ;;  %19359 = vmatprep.mubr.msk.f32.mxu0 %vm21791_vm1, %v23806_v54 }
0x1f82   :  { %20841 = vmatprep.subr.bf16.mxu0 %v21790_v0 }
0x1f85   :  { %20843 = vmatpush3.bf16.msra.mxu0 %v22561_v10 }
0x1f86   :  { %20844 = vmatprep.subr.bf16.mxu0 %v21790_v0 }
0x1f88   :  { %19360 = vmatmul.mubr.f32.vlgmr.msra.gmra.mrb[22].mxu0 %v23200_v51 }
0x1f89   :  { %20846 = vmatpush3.bf16.msra.mxu0 %v22628_v33  ;;  %19370 = vmatprep.mubr.msk.f32.mxu0 %vm21791_vm1, %v23806_v54 }
0x1f8a   :  { %20847 = vmatprep.subr.bf16.mxu0 %v21790_v0 }
0x1f8d   :  { %20849 = vmatpush3.bf16.msra.mxu0 %v22634_v4 }
0x1f8e   :  { %20850 = vmatprep.subr.bf16.mxu0 %v21790_v0 }
0x1f90   :  { %19371 = vmatmul.mubr.f32.vlgmr.msra.gmra.mrb[22].mxu0 %v23808_v3 }
0x1f91   :  { %20852 = vmatpush3.bf16.msra.mxu0 %v22641_v32  ;;  %19381 = vmatprep.mubr.msk.f32.mxu0 %vm21791_vm1, %v23806_v54 }
0x1f92   :  { %20853 = vmatprep.subr.bf16.mxu0 %v21790_v0 }
0x1f95   :  { %20855 = vmatpush3.bf16.msra.mxu0 %v22646_v2 }
0x1f96   :  { %20856 = vmatprep.subr.bf16.mxu0 %v21790_v0 }
0x1f98   :  { %19382 = vmatmul.mubr.f32.vlgmr.msra.gmra.mrb[22].mxu0 %v23809_v50 }
0x1f99   :  { %20858 = vmatpush3.bf16.msra.mxu0 %v22652_v5  ;;  %19392 = vmatprep.mubr.msk.f32.mxu0 %vm21791_vm1, %v23806_v54 }
0x1f9a   :  { %20859 = vmatprep.subr.bf16.mxu0 %v21790_v0 }
0x1f9d   :  { %20861 = vmatpush3.bf16.msra.mxu0 %v22657_v17 }
0x1f9e   :  { %20862 = vmatprep.subr.bf16.mxu0 %v21790_v0 }
0x1fa0   :  { %19393 = vmatmul.mubr.f32.vlgmr.msra.gmra.mrb[22].mxu0 %v23810_v26 }
0x1fa1   :  { %20864 = vmatpush3.bf16.msra.mxu0 %v22628_v33  ;;  %19403 = vmatprep.mubr.msk.f32.mxu0 %vm21791_vm1, %v23806_v54 }
0x1fa2   :  { %20865 = vmatprep.subr.bf16.mxu0 %v21790_v0 }
0x1fa5   :  { %20867 = vmatpush3.bf16.msra.mxu0 %v22634_v4 }
0x1fa6   :  { %20868 = vmatprep.subr.bf16.mxu0 %v21790_v0 }
0x1fa8   :  { %19404 = vmatmul.mubr.f32.vlgmr.msra.gmra.mrb[22].mxu0 %v23811_v43 }
0x1fa9   :  { %20870 = vmatpush3.bf16.msra.mxu0 %v22670_v16  ;;  %19414 = vmatprep.mubr.msk.f32.mxu0 %vm21791_vm1, %v23806_v54 }
0x1faa   :  { %20871 = vmatprep.subr.bf16.mxu0 %v21790_v0 }
0x1fad   :  { %20873 = vmatpush3.bf16.msra.mxu0 %v22675_v24 }
0x1fae   :  { %20874 = vmatprep.subr.bf16.mxu0 %v21790_v0 }
0x1fb0   :  { %19415 = vmatmul.mubr.f32.vlgmr.msra.gmra.mrb[22].mxu0 %v23809_v50 }
0x1fb1   :  { %20876 = vmatpush3.bf16.msra.mxu0 %v22628_v33  ;;  %19425 = vmatprep.mubr.msk.f32.mxu0 %vm21791_vm1, %v23806_v54 }
0x1fb2   :  { %20877 = vmatprep.subr.bf16.mxu0 %v21790_v0 }
0x1fb5   :  { %20879 = vmatpush3.bf16.msra.mxu0 %v22634_v4 }
0x1fb6   :  { %20988 = vmatprep.subr.bf16.mxu0 %v21790_v0 }
0x1fb8   :  { %19426 = vmatmul.mubr.f32.vlgmr.msra.gmra.mrb[22].mxu0 %v23809_v50  ;;  %v23462_v50 = vld [vmem:[%s23780_s6] ss:$0 sm:$0xff] }
0x1fb9   :  { %20990 = vmatpush3.bf16.msra.mxu0 %v22707_v39  ;;  %19634 = vmatprep.mubr.msk.f32.mxu0 %vm21791_vm1, %v23806_v54 }
0x1fba   :  { %20991 = vmatprep.subr.bf16.mxu0 %v21790_v0 }
0x1fbd   :  { %20993 = vmatpush3.bf16.msra.mxu0 %v22711_v44 }
0x1fbe   :  { %20994 = vmatprep.subr.bf16.mxu0 %v21790_v0 }
0x202b   :  { %v10900_v58 = vpop.f32.mrb[20].mxu0 }
0x202c   :  { %v21243_v7 = vadd.f32 %v22913_v62, %v10900_v58  ;;  %v19295_v48 = vpop.f32.mrb[21].mxu0 }
0x202e   :  { %10904 = vst [vmem:[%s23781_s7 + $0x18] sm:$0xff] %v21243_v7 }
0x208b   :  { %v11871_v42 = vpop.f32.mrb[22].mxu0 }
0x208c   :  { %21722 = vtanh.f32 %v11871_v42  ;;  %v19427_v30 = vpop.f32.mrb[23].mxu0  ;;  %v16874_v41 = vmul.f32 -1.442695, %v11871_v42 }
0x208e   :  { %21724 = vpow2.f32 %v16874_v41 }
0x2096   :  { %v21723_v36 = vpop.eup %21722 }
0x2097   :  { %11884 = vrot.lane.b32.xlu0 %v21723_v36, %s21795_s0 }
0x2098   :  { %v21725_v8 = vpop.eup %21724 }
0x2099   :  { %v11878_v22 = vadd.f32 1.0, %v21725_v8 }
0x209b   :  { %21726 = vrcp.f32 %v11878_v22 }
0x20a5   :  { %v21727_v20 = vpop.eup %21726 }
0x20a6   :  { %v11882_v62 = vmul.f32 %v21727_v20, %v23194_v29 }
0x2109   :  { %v11885_v23 = vpop.permute.xlu0 %11884 }
0x210a   :  { %v11887_v25 = vmul.f32 %v21727_v20, %v11885_v23 }
0x210c   :  { %11889 = vrot.lane.b32.xlu1 %v11887_v25, %s21795_s0 }
0x217e   :  { %v11890_v18 = vpop.permute.xlu1 %11889 }
0x217f   :  { %v23330_v28 = vadd.f32 %v11890_v18, %v11882_v62 }
0x2181   :  { %21728 = vtanh.f32 %v23330_v28 }
0x218b   :  { %v21729_v59 = vpop.eup %21728 }
0x218c   :  { %11895 = vrot.lane.b32.xlu0 %v21729_v59, %s21795_s0 }
0x21fe   :  { %v11896_v31 = vpop.permute.xlu0 %11895 }
0x21ff   :  { %v11898_v34 = vmul.f32 %v21727_v20, %v11896_v31 }
0x2201   :  { %11900 = vrot.lane.b32.xlu1 %v11898_v34, %s21796_s5 }
0x2273   :  { %v11901_v57 = vpop.permute.xlu1 %11900 }
0x2274   :  { %v11902_v38 = vsel %vm838_vm0, %v11901_v57, 0 }
0x2275   :  { %v23336_v63 = vand.u32 4294901760, %v11902_v38 }
0x2277   :  { %v11974_v13 = vsub.f32 %v11902_v38, %v23336_v63 }
0x2279   :  { %v11975_v29 = vand.u32 4294901760, %v11974_v13 }
0x227b   :  { %v11976_v9 = vsub.f32 %v11974_v13, %v11975_v29 }
0x227d   :  { %v11977_v51 = vand.u32 4294901760, %v11976_v9 }
0x227f   :  { %19437 = vmatmul.mubr.f32.vlgmr.msra.gmra.mrb[18].mxu1 %v11977_v51 }
0x2280   :  { %20888 = vmatpush3.bf16.msra.mxu1 %v22715_v47  ;;  %19447 = vmatprep.mubr.msk.f32.mxu1 %vm21791_vm1, %v23806_v54 }
0x2281   :  { %20889 = vmatprep.subr.bf16.mxu1 %v21790_v0 }
0x2284   :  { %20891 = vmatpush3.bf16.msra.mxu1 %v22718_v40 }
0x2285   :  { %20892 = vmatprep.subr.bf16.mxu1 %v21790_v0 }
0x2287   :  { %19448 = vmatmul.mubr.f32.vlgmr.msra.gmra.mrb[18].mxu1 %v23336_v63 }
0x2288   :  { %20894 = vmatpush3.bf16.msra.mxu1 %v22720_v45  ;;  %19458 = vmatprep.mubr.msk.f32.mxu1 %vm21791_vm1, %v23806_v54 }
0x2289   :  { %20895 = vmatprep.subr.bf16.mxu1 %v21790_v0 }
0x228c   :  { %20897 = vmatpush3.bf16.msra.mxu1 %v22722_v14 }
0x228d   :  { %20898 = vmatprep.subr.bf16.mxu1 %v21790_v0 }
0x228f   :  { %19459 = vmatmul.mubr.f32.vlgmr.msra.gmra.mrb[18].mxu1 %v11974_v13 }
0x2290   :  { %20900 = vmatpush3.bf16.msra.mxu1 %v22707_v39  ;;  %19469 = vmatprep.mubr.msk.f32.mxu1 %vm21791_vm1, %v23806_v54 }
0x2291   :  { %20901 = vmatprep.subr.bf16.mxu1 %v21790_v0 }
0x2294   :  { %20903 = vmatpush3.bf16.msra.mxu1 %v22711_v44 }
0x2295   :  { %20904 = vmatprep.subr.bf16.mxu1 %v21790_v0 }
0x2297   :  { %19470 = vmatmul.mubr.f32.vlgmr.msra.gmra.mrb[18].mxu1 %v11975_v29 }
0x2298   :  { %20906 = vmatpush3.bf16.msra.mxu1 %v22725_v11  ;;  %19480 = vmatprep.mubr.msk.f32.mxu1 %vm21791_vm1, %v23806_v54 }
0x2299   :  { %20907 = vmatprep.subr.bf16.mxu1 %v21790_v0 }
0x229c   :  { %20909 = vmatpush3.bf16.msra.mxu1 %v22732_v55 }
0x229d   :  { %20910 = vmatprep.subr.bf16.mxu1 %v21790_v0 }
0x229f   :  { %19481 = vmatmul.mubr.f32.vlgmr.msra.gmra.mrb[18].mxu1 %v23336_v63 }
0x22a0   :  { %20912 = vmatpush3.bf16.msra.mxu1 %v22707_v39  ;;  %19491 = vmatprep.mubr.msk.f32.mxu1 %vm21791_vm1, %v23806_v54 }
0x22a1   :  { %20913 = vmatprep.subr.bf16.mxu1 %v21790_v0 }
0x22a4   :  { %20915 = vmatpush3.bf16.msra.mxu1 %v22711_v44 }
0x22a5   :  { %20916 = vmatprep.subr.bf16.mxu1 %v21790_v0 }
0x22a7   :  { %19492 = vmatmul.mubr.f32.vlgmr.msra.gmra.mrb[18].mxu1 %v23336_v63 }
0x22a8   :  { %20918 = vmatpush3.bf16.msra.mxu1 %v22556_v53  ;;  %19502 = vmatprep.mubr.msk.f32.mxu1 %vm21791_vm1, %v23806_v54 }
0x22a9   :  { %20919 = vmatprep.subr.bf16.mxu1 %v21790_v0 }
0x22ac   :  { %20921 = vmatpush3.bf16.msra.mxu1 %v22561_v10 }
0x22ad   :  { %20922 = vmatprep.subr.bf16.mxu1 %v21790_v0 }
0x22af   :  { %19503 = vmatmul.mubr.f32.vlgmr.msra.gmra.mrb[20].mxu1 %v11977_v51 }
0x22b0   :  { %20924 = vmatpush3.bf16.msra.mxu1 %v22568_v46  ;;  %19513 = vmatprep.mubr.msk.f32.mxu1 %vm21791_vm1, %v23806_v54 }
0x22b1   :  { %20925 = vmatprep.subr.bf16.mxu1 %v21790_v0 }
0x22b4   :  { %20927 = vmatpush3.bf16.msra.mxu1 %v22573_v56 }
0x22b5   :  { %20928 = vmatprep.subr.bf16.mxu1 %v21790_v0 }
0x22b7   :  { %19514 = vmatmul.mubr.f32.vlgmr.msra.gmra.mrb[20].mxu1 %v23336_v63 }
0x22b8   :  { %20930 = vmatpush3.bf16.msra.mxu1 %v22579_v60  ;;  %19524 = vmatprep.mubr.msk.f32.mxu1 %vm21791_vm1, %v23806_v54 }
0x22b9   :  { %20931 = vmatprep.subr.bf16.mxu1 %v21790_v0 }
0x22bc   :  { %20933 = vmatpush3.bf16.msra.mxu1 %v22585_v19 }
0x22bd   :  { %20934 = vmatprep.subr.bf16.mxu1 %v21790_v0 }
0x22bf   :  { %19525 = vmatmul.mubr.f32.vlgmr.msra.gmra.mrb[20].mxu1 %v11974_v13 }
0x22c0   :  { %20936 = vmatpush3.bf16.msra.mxu1 %v22556_v53  ;;  %19535 = vmatprep.mubr.msk.f32.mxu1 %vm21791_vm1, %v23806_v54 }
0x22c1   :  { %20937 = vmatprep.subr.bf16.mxu1 %v21790_v0 }
0x22c4   :  { %20939 = vmatpush3.bf16.msra.mxu1 %v22561_v10 }
0x22c5   :  { %20940 = vmatprep.subr.bf16.mxu1 %v21790_v0 }
0x22c7   :  { %19536 = vmatmul.mubr.f32.vlgmr.msra.gmra.mrb[20].mxu1 %v11975_v29 }
0x22c8   :  { %20942 = vmatpush3.bf16.msra.mxu1 %v22598_v61  ;;  %19546 = vmatprep.mubr.msk.f32.mxu1 %vm21791_vm1, %v23806_v54 }
0x22c9   :  { %20943 = vmatprep.subr.bf16.mxu1 %v21790_v0 }
0x22cc   :  { %20945 = vmatpush3.bf16.msra.mxu1 %v22609_v27 }
0x22cd   :  { %20946 = vmatprep.subr.bf16.mxu1 %v21790_v0 }
0x22cf   :  { %19547 = vmatmul.mubr.f32.vlgmr.msra.gmra.mrb[20].mxu1 %v23336_v63 }
0x22d0   :  { %20948 = vmatpush3.bf16.msra.mxu1 %v22556_v53  ;;  %19557 = vmatprep.mubr.msk.f32.mxu1 %vm21791_vm1, %v23806_v54 }
0x22d1   :  { %20949 = vmatprep.subr.bf16.mxu1 %v21790_v0 }
0x22d4   :  { %20951 = vmatpush3.bf16.msra.mxu1 %v22561_v10 }
0x22d5   :  { %20952 = vmatprep.subr.bf16.mxu1 %v21790_v0 }
0x22d7   :  { %19558 = vmatmul.mubr.f32.vlgmr.msra.gmra.mrb[20].mxu1 %v23336_v63 }
0x22d8   :  { %20954 = vmatpush3.bf16.msra.mxu1 %v22628_v33  ;;  %19568 = vmatprep.mubr.msk.f32.mxu1 %vm21791_vm1, %v23806_v54 }
0x22d9   :  { %20955 = vmatprep.subr.bf16.mxu1 %v21790_v0 }
0x22dc   :  { %20957 = vmatpush3.bf16.msra.mxu1 %v22634_v4 }
0x22dd   :  { %20958 = vmatprep.subr.bf16.mxu1 %v21790_v0 }
0x22df   :  { %19569 = vmatmul.mubr.f32.vlgmr.msra.gmra.mrb[20].mxu1 %v23812_v15 }
0x22e0   :  { %20960 = vmatpush3.bf16.msra.mxu1 %v22641_v32  ;;  %19579 = vmatprep.mubr.msk.f32.mxu1 %vm21791_vm1, %v23806_v54 }
0x22e1   :  { %20961 = vmatprep.subr.bf16.mxu1 %v21790_v0 }
0x22e4   :  { %20963 = vmatpush3.bf16.msra.mxu1 %v22646_v2 }
0x22e5   :  { %20964 = vmatprep.subr.bf16.mxu1 %v21790_v0 }
0x22e7   :  { %19580 = vmatmul.mubr.f32.vlgmr.msra.gmra.mrb[20].mxu1 %v23813_v12 }
0x22e8   :  { %20966 = vmatpush3.bf16.msra.mxu1 %v22652_v5  ;;  %19590 = vmatprep.mubr.msk.f32.mxu1 %vm21791_vm1, %v23806_v54 }
0x22e9   :  { %20967 = vmatprep.subr.bf16.mxu1 %v21790_v0 }
0x22ec   :  { %20969 = vmatpush3.bf16.msra.mxu1 %v22657_v17 }
0x22ed   :  { %20970 = vmatprep.subr.bf16.mxu1 %v21790_v0 }
0x22ef   :  { %19591 = vmatmul.mubr.f32.vlgmr.msra.gmra.mrb[20].mxu1 %v23814_v35 }
0x22f0   :  { %20972 = vmatpush3.bf16.msra.mxu1 %v22628_v33  ;;  %19601 = vmatprep.mubr.msk.f32.mxu1 %vm21791_vm1, %v23806_v54 }
0x22f1   :  { %20973 = vmatprep.subr.bf16.mxu1 %v21790_v0 }
0x22f4   :  { %20975 = vmatpush3.bf16.msra.mxu1 %v22634_v4 }
0x22f5   :  { %20976 = vmatprep.subr.bf16.mxu1 %v21790_v0 }
0x22f7   :  { %19602 = vmatmul.mubr.f32.vlgmr.msra.gmra.mrb[20].mxu1 %v23815_v21 }
0x22f8   :  { %20978 = vmatpush3.bf16.msra.mxu1 %v22670_v16  ;;  %19612 = vmatprep.mubr.msk.f32.mxu1 %vm21791_vm1, %v23806_v54 }
0x22f9   :  { %20979 = vmatprep.subr.bf16.mxu1 %v21790_v0 }
0x22fc   :  { %20981 = vmatpush3.bf16.msra.mxu1 %v22675_v24 }
0x22fd   :  { %20982 = vmatprep.subr.bf16.mxu1 %v21790_v0 }
0x22ff   :  { %19613 = vmatmul.mubr.f32.vlgmr.msra.gmra.mrb[20].mxu1 %v23813_v12 }
0x2300   :  { %20984 = vmatpush3.bf16.msra.mxu1 %v22628_v33  ;;  %19623 = vmatprep.mubr.msk.f32.mxu1 %vm21791_vm1, %v23806_v54 }
0x2301   :  { %20985 = vmatprep.subr.bf16.mxu1 %v21790_v0 }
0x2304   :  { %20987 = vmatpush3.bf16.msra.mxu1 %v22634_v4 }
0x2305   :  { %21096 = vmatprep.subr.bf16.mxu1 %v21790_v0 }
0x2307   :  { %19624 = vmatmul.mubr.f32.vlgmr.msra.gmra.mrb[20].mxu1 %v23813_v12  ;;  %v16865_v12 = vmul.f32 -1.442695, %v22908_v6 }
0x2308   :  { %21098 = vmatpush3.bf16.msra.mxu1 %v22707_v39  ;;  %19832 = vmatprep.mubr.msk.f32.mxu1 %vm21791_vm1, %v23806_v54 }
0x2309   :  { %21099 = vmatprep.subr.bf16.mxu1 %v21790_v0 }
0x230c   :  { %21101 = vmatpush3.bf16.msra.mxu1 %v22711_v44 }
0x230d   :  { %21102 = vmatprep.subr.bf16.mxu1 %v21790_v0 }
0x237a   :  { %v12385_v3 = vpop.f32.mrb[18].mxu1 }
0x237b   :  { %v21244_v26 = vadd.f32 %v23462_v50, %v12385_v3  ;;  %v19493_v43 = vpop.f32.mrb[19].mxu1 }
0x237d   :  { %12389 = vst [vmem:[%s23781_s7 + $0x20] sm:$0xff] %v21244_v26 }
0x23da   :  { %v13356_v58 = vpop.f32.mrb[20].mxu1 }
0x23db   :  { %21730 = vtanh.f32 %v13356_v58  ;;  %v19625_v7 = vpop.f32.mrb[21].mxu1  ;;  %v16875_v42 = vmul.f32 -1.442695, %v13356_v58 }
0x23dd   :  { %21732 = vpow2.f32 %v16875_v42 }
0x23e5   :  { %v21731_v48 = vpop.eup %21730 }
0x23e6   :  { %13369 = vrot.lane.b32.xlu0 %v21731_v48, %s21795_s0 }
0x23e7   :  { %v21733_v30 = vpop.eup %21732 }
0x23e8   :  { %v13363_v36 = vadd.f32 1.0, %v21733_v30 }
0x23ea   :  { %21734 = vrcp.f32 %v13363_v36 }
0x23f4   :  { %v21735_v41 = vpop.eup %21734 }
0x23f5   :  { %v13367_v20 = vmul.f32 %v21735_v41, %v23330_v28 }
0x2458   :  { %v13370_v8 = vpop.permute.xlu0 %13369 }
0x2459   :  { %v13372_v22 = vmul.f32 %v21735_v41, %v13370_v8  ;;  %v23816_v8 = vld [vmem:[#allocation14_spill] sm:$0xff] }
0x245b   :  { %13374 = vrot.lane.b32.xlu1 %v13372_v22, %s21795_s0 }
0x24cd   :  { %v13375_v23 = vpop.permute.xlu1 %13374 }
0x24ce   :  { %v23471_v25 = vadd.f32 %v13375_v23, %v13367_v20 }
0x24d0   :  { %21736 = vtanh.f32 %v23471_v25 }
0x24da   :  { %v21737_v62 = vpop.eup %21736 }
0x24db   :  { %13380 = vrot.lane.b32.xlu0 %v21737_v62, %s21795_s0 }
0x254d   :  { %v13381_v18 = vpop.permute.xlu0 %13380 }
0x254e   :  { %v13383_v59 = vmul.f32 %v21735_v41, %v13381_v18 }
0x2550   :  { %13385 = vrot.lane.b32.xlu1 %v13383_v59, %s21796_s5 }
0x25c2   :  { %v13386_v31 = vpop.permute.xlu1 %13385 }
0x25c3   :  { %v13387_v34 = vsel %vm838_vm0, %v13386_v31, 0 }
0x25c4   :  { %v23477_v57 = vand.u32 4294901760, %v13387_v34 }
0x25c6   :  { %v13459_v38 = vsub.f32 %v13387_v34, %v23477_v57 }
0x25c8   :  { %v13460_v28 = vand.u32 4294901760, %v13459_v38 }
0x25ca   :  { %v13461_v63 = vsub.f32 %v13459_v38, %v13460_v28 }
0x25cc   :  { %v13462_v13 = vand.u32 4294901760, %v13461_v63 }
0x25ce   :  { %19635 = vmatmul.mubr.f32.vlgmr.msra.gmra.mrb[24].mxu0 %v13462_v13 }
0x25cf   :  { %20996 = vmatpush3.bf16.msra.mxu0 %v22715_v47  ;;  %19645 = vmatprep.mubr.msk.f32.mxu0 %vm21791_vm1, %v23806_v54 }
0x25d0   :  { %20997 = vmatprep.subr.bf16.mxu0 %v21790_v0 }
0x25d3   :  { %20999 = vmatpush3.bf16.msra.mxu0 %v22718_v40 }
0x25d4   :  { %21000 = vmatprep.subr.bf16.mxu0 %v21790_v0 }
0x25d6   :  { %19646 = vmatmul.mubr.f32.vlgmr.msra.gmra.mrb[24].mxu0 %v23477_v57 }
0x25d7   :  { %21002 = vmatpush3.bf16.msra.mxu0 %v22720_v45  ;;  %19656 = vmatprep.mubr.msk.f32.mxu0 %vm21791_vm1, %v23806_v54 }
0x25d8   :  { %21003 = vmatprep.subr.bf16.mxu0 %v21790_v0 }
0x25db   :  { %21005 = vmatpush3.bf16.msra.mxu0 %v22722_v14 }
0x25dc   :  { %21006 = vmatprep.subr.bf16.mxu0 %v21790_v0 }
0x25de   :  { %19657 = vmatmul.mubr.f32.vlgmr.msra.gmra.mrb[24].mxu0 %v13459_v38 }
0x25df   :  { %21008 = vmatpush3.bf16.msra.mxu0 %v22707_v39  ;;  %19667 = vmatprep.mubr.msk.f32.mxu0 %vm21791_vm1, %v23806_v54 }
0x25e0   :  { %21009 = vmatprep.subr.bf16.mxu0 %v21790_v0 }
0x25e3   :  { %21011 = vmatpush3.bf16.msra.mxu0 %v22711_v44 }
0x25e4   :  { %21012 = vmatprep.subr.bf16.mxu0 %v21790_v0 }
0x25e6   :  { %19668 = vmatmul.mubr.f32.vlgmr.msra.gmra.mrb[24].mxu0 %v13460_v28 }
0x25e7   :  { %21014 = vmatpush3.bf16.msra.mxu0 %v22725_v11  ;;  %19678 = vmatprep.mubr.msk.f32.mxu0 %vm21791_vm1, %v23806_v54 }
0x25e8   :  { %21015 = vmatprep.subr.bf16.mxu0 %v21790_v0 }
0x25eb   :  { %21017 = vmatpush3.bf16.msra.mxu0 %v22732_v55 }
0x25ec   :  { %21018 = vmatprep.subr.bf16.mxu0 %v21790_v0 }
0x25ee   :  { %19679 = vmatmul.mubr.f32.vlgmr.msra.gmra.mrb[24].mxu0 %v23477_v57 }
0x25ef   :  { %21020 = vmatpush3.bf16.msra.mxu0 %v22707_v39  ;;  %19689 = vmatprep.mubr.msk.f32.mxu0 %vm21791_vm1, %v23806_v54 }
0x25f0   :  { %21021 = vmatprep.subr.bf16.mxu0 %v21790_v0 }
0x25f3   :  { %21023 = vmatpush3.bf16.msra.mxu0 %v22711_v44 }
0x25f4   :  { %21024 = vmatprep.subr.bf16.mxu0 %v21790_v0 }
0x25f6   :  { %19690 = vmatmul.mubr.f32.vlgmr.msra.gmra.mrb[24].mxu0 %v23477_v57 }
0x25f7   :  { %21026 = vmatpush3.bf16.msra.mxu0 %v22556_v53  ;;  %19700 = vmatprep.mubr.msk.f32.mxu0 %vm21791_vm1, %v23806_v54 }
0x25f8   :  { %21027 = vmatprep.subr.bf16.mxu0 %v21790_v0 }
0x25fb   :  { %21029 = vmatpush3.bf16.msra.mxu0 %v22561_v10 }
0x25fc   :  { %21030 = vmatprep.subr.bf16.mxu0 %v21790_v0 }
0x25fe   :  { %19701 = vmatmul.mubr.f32.vlgmr.msra.gmra.mrb[26].mxu0 %v13462_v13 }
0x25ff   :  { %21032 = vmatpush3.bf16.msra.mxu0 %v22568_v46  ;;  %19711 = vmatprep.mubr.msk.f32.mxu0 %vm21791_vm1, %v23806_v54 }
0x2600   :  { %21033 = vmatprep.subr.bf16.mxu0 %v21790_v0 }
0x2603   :  { %21035 = vmatpush3.bf16.msra.mxu0 %v22573_v56 }
0x2604   :  { %21036 = vmatprep.subr.bf16.mxu0 %v21790_v0 }
0x2606   :  { %19712 = vmatmul.mubr.f32.vlgmr.msra.gmra.mrb[26].mxu0 %v23477_v57 }
0x2607   :  { %21038 = vmatpush3.bf16.msra.mxu0 %v22579_v60  ;;  %19722 = vmatprep.mubr.msk.f32.mxu0 %vm21791_vm1, %v23806_v54 }
0x2608   :  { %21039 = vmatprep.subr.bf16.mxu0 %v21790_v0 }
0x260b   :  { %21041 = vmatpush3.bf16.msra.mxu0 %v22585_v19 }
0x260c   :  { %21042 = vmatprep.subr.bf16.mxu0 %v21790_v0 }
0x260e   :  { %19723 = vmatmul.mubr.f32.vlgmr.msra.gmra.mrb[26].mxu0 %v13459_v38 }
0x260f   :  { %21044 = vmatpush3.bf16.msra.mxu0 %v22556_v53  ;;  %19733 = vmatprep.mubr.msk.f32.mxu0 %vm21791_vm1, %v23806_v54 }
0x2610   :  { %21045 = vmatprep.subr.bf16.mxu0 %v21790_v0 }
0x2613   :  { %21047 = vmatpush3.bf16.msra.mxu0 %v22561_v10 }
0x2614   :  { %21048 = vmatprep.subr.bf16.mxu0 %v21790_v0 }
0x2616   :  { %19734 = vmatmul.mubr.f32.vlgmr.msra.gmra.mrb[26].mxu0 %v13460_v28 }
0x2617   :  { %21050 = vmatpush3.bf16.msra.mxu0 %v22598_v61  ;;  %19744 = vmatprep.mubr.msk.f32.mxu0 %vm21791_vm1, %v23806_v54 }
0x2618   :  { %21051 = vmatprep.subr.bf16.mxu0 %v21790_v0 }
0x261b   :  { %21053 = vmatpush3.bf16.msra.mxu0 %v22609_v27 }
0x261c   :  { %21054 = vmatprep.subr.bf16.mxu0 %v21790_v0 }
0x261e   :  { %19745 = vmatmul.mubr.f32.vlgmr.msra.gmra.mrb[26].mxu0 %v23477_v57 }
0x261f   :  { %21056 = vmatpush3.bf16.msra.mxu0 %v22556_v53  ;;  %19755 = vmatprep.mubr.msk.f32.mxu0 %vm21791_vm1, %v23806_v54 }
0x2620   :  { %21057 = vmatprep.subr.bf16.mxu0 %v21790_v0 }
0x2623   :  { %21059 = vmatpush3.bf16.msra.mxu0 %v22561_v10 }
0x2624   :  { %21060 = vmatprep.subr.bf16.mxu0 %v21790_v0 }
0x2626   :  { %19756 = vmatmul.mubr.f32.vlgmr.msra.gmra.mrb[26].mxu0 %v23477_v57 }
0x2627   :  { %21062 = vmatpush3.bf16.msra.mxu0 %v22628_v33  ;;  %19766 = vmatprep.mubr.msk.f32.mxu0 %vm21791_vm1, %v23806_v54 }
0x2628   :  { %21063 = vmatprep.subr.bf16.mxu0 %v21790_v0 }
0x262b   :  { %21065 = vmatpush3.bf16.msra.mxu0 %v22634_v4 }
0x262c   :  { %21066 = vmatprep.subr.bf16.mxu0 %v21790_v0 }
0x262e   :  { %19767 = vmatmul.mubr.f32.vlgmr.msra.gmra.mrb[26].mxu0 %v22739_v1 }
0x262f   :  { %21068 = vmatpush3.bf16.msra.mxu0 %v22641_v32  ;;  %19777 = vmatprep.mubr.msk.f32.mxu0 %vm21791_vm1, %v23806_v54 }
0x2630   :  { %21069 = vmatprep.subr.bf16.mxu0 %v21790_v0 }
0x2633   :  { %21071 = vmatpush3.bf16.msra.mxu0 %v22646_v2 }
0x2634   :  { %21072 = vmatprep.subr.bf16.mxu0 %v21790_v0 }
0x2636   :  { %19778 = vmatmul.mubr.f32.vlgmr.msra.gmra.mrb[26].mxu0 %v22727_v37 }
0x2637   :  { %21074 = vmatpush3.bf16.msra.mxu0 %v22652_v5  ;;  %19788 = vmatprep.mubr.msk.f32.mxu0 %vm21791_vm1, %v23806_v54 }
0x2638   :  { %21075 = vmatprep.subr.bf16.mxu0 %v21790_v0 }
0x263b   :  { %21077 = vmatpush3.bf16.msra.mxu0 %v22657_v17 }
0x263c   :  { %21078 = vmatprep.subr.bf16.mxu0 %v21790_v0 }
0x263e   :  { %19789 = vmatmul.mubr.f32.vlgmr.msra.gmra.mrb[26].mxu0 %v22730_v49 }
0x263f   :  { %21080 = vmatpush3.bf16.msra.mxu0 %v22628_v33  ;;  %19799 = vmatprep.mubr.msk.f32.mxu0 %vm21791_vm1, %v23806_v54 }
0x2640   :  { %21081 = vmatprep.subr.bf16.mxu0 %v21790_v0 }
0x2643   :  { %21083 = vmatpush3.bf16.msra.mxu0 %v22634_v4 }
0x2644   :  { %21084 = vmatprep.subr.bf16.mxu0 %v21790_v0 }
0x2646   :  { %19800 = vmatmul.mubr.f32.vlgmr.msra.gmra.mrb[26].mxu0 %v22735_v52 }
0x2647   :  { %21086 = vmatpush3.bf16.msra.mxu0 %v22670_v16  ;;  %19810 = vmatprep.mubr.msk.f32.mxu0 %vm21791_vm1, %v23806_v54 }
0x2648   :  { %21087 = vmatprep.subr.bf16.mxu0 %v21790_v0 }
0x264b   :  { %21089 = vmatpush3.bf16.msra.mxu0 %v22675_v24 }
0x264c   :  { %21090 = vmatprep.subr.bf16.mxu0 %v21790_v0 }
0x264e   :  { %19811 = vmatmul.mubr.f32.vlgmr.msra.gmra.mrb[26].mxu0 %v22727_v37 }
0x264f   :  { %21092 = vmatpush3.bf16.msra.mxu0 %v22628_v33  ;;  %19821 = vmatprep.mubr.msk.f32.mxu0 %vm21791_vm1, %v23806_v54 }
0x2650   :  { %21093 = vmatprep.subr.bf16.mxu0 %v21790_v0 }
0x2653   :  { %21095 = vmatpush3.bf16.msra.mxu0 %v22634_v4 }
0x2654   :  { %21204 = vmatprep.subr.bf16.mxu0 %v21790_v0 }
0x2656   :  { %19822 = vmatmul.mubr.f32.vlgmr.msra.gmra.mrb[26].mxu0 %v22727_v37 }
0x2657   :  { %21206 = vmatpush3.bf16.msra.mxu0 %v22707_v39  ;;  %20030 = vmatprep.mubr.msk.f32.mxu0 %vm21791_vm1, %v23806_v54 }
0x2658   :  { %21207 = vmatprep.subr.bf16.mxu0 %v21790_v0 }
0x265b   :  { %21209 = vmatpush3.bf16.msra.mxu0 %v22711_v44 }
0x265c   :  { %21210 = vmatprep.subr.bf16.mxu0 %v21790_v0 }
0x26c9   :  { %v13870_v49 = vpop.f32.mrb[24].mxu0 }
0x26ca   :  { %v21245_v52 = vadd.f32 %v23462_v50, %v13870_v49  ;;  %v19691_v1 = vpop.f32.mrb[25].mxu0 }
0x26cc   :  { %13874 = vst [vmem:[%s23781_s7 + $0x28] sm:$0xff] %v21245_v52 }
0x2729   :  { %v14841_v37 = vpop.f32.mrb[26].mxu0 }
0x272a   :  { %21738 = vtanh.f32 %v14841_v37  ;;  %v19823_v29 = vpop.f32.mrb[27].mxu0  ;;  %v16876_v15 = vmul.f32 -1.442695, %v14841_v37 }
0x272b   :  { %21740 = vtanh.f32 %v22908_v6 }
0x272c   :  { %21742 = vpow2.f32 %v16876_v15 }
0x272d   :  { %21744 = vpow2.f32 %v16865_v12 }
0x2734   :  { %v21739_v9 = vpop.eup %21738 }
0x2735   :  { %14854 = vrot.lane.b32.xlu0 %v21739_v9, %s21795_s0  ;;  %v21741_v51 = vpop.eup %21740 }
0x2736   :  { %v21743_v35 = vpop.eup %21742 }
0x2737   :  { %v14848_v21 = vadd.f32 1.0, %v21743_v35  ;;  %v21745_v3 = vpop.eup %21744 }
0x2738   :  { %v4935_v26 = vadd.f32 1.0, %v21745_v3 }
0x2739   :  { %4941 = vrot.lane.b32.xlu0 %v21741_v51, %s21795_s0  ;;  %21746 = vrcp.f32 %v14848_v21 }
0x273a   :  { %21748 = vrcp.f32 %v4935_v26 }
0x2743   :  { %v21747_v43 = vpop.eup %21746 }
0x2744   :  { %v21749_v48 = vpop.eup %21748  ;;  %v14852_v6 = vmul.f32 %v21747_v43, %v23471_v25 }
0x2745   :  { %v4939_v22 = vmul.f32 %v21749_v48, %v23816_v8 }
0x27a7   :  { %v14855_v58 = vpop.permute.xlu0 %14854 }
0x27a8   :  { %v14857_v7 = vmul.f32 %v21747_v43, %v14855_v58 }
0x27aa   :  { %14859 = vrot.lane.b32.xlu1 %v14857_v7, %s21795_s0 }
0x27ab   :  { %v4942_v42 = vpop.permute.xlu0 %4941 }
0x27ac   :  { %v4944_v30 = vmul.f32 %v21749_v48, %v4942_v42 }
0x27ae   :  { %4946 = vrot.lane.b32.xlu0 %v4944_v30, %s21795_s0 }
0x281c   :  { %v14860_v36 = vpop.permute.xlu1 %14859 }
0x281d   :  { %v23611_v41 = vadd.f32 %v14860_v36, %v14852_v6 }
0x281f   :  { %21750 = vtanh.f32 %v23611_v41 }
0x2820   :  { %v4947_v20 = vpop.permute.xlu0 %4946 }
0x2821   :  { %v4949_v23 = vadd.f32 %v4947_v20, %v4939_v22 }
0x2823   :  { %21752 = vtanh.f32 %v4949_v23 }
0x2829   :  { %v21751_v62 = vpop.eup %21750 }
0x282a   :  { %14865 = vrot.lane.b32.xlu1 %v21751_v62, %s21795_s0 }
0x282d   :  { %v21753_v18 = vpop.eup %21752 }
0x282e   :  { %4952 = vrot.lane.b32.xlu0 %v21753_v18, %s21795_s0 }
0x289c   :  { %v14866_v59 = vpop.permute.xlu1 %14865 }
0x289d   :  { %v14868_v31 = vmul.f32 %v21747_v43, %v14866_v59 }
0x289f   :  { %14870 = vrot.lane.b32.xlu1 %v14868_v31, %s21796_s5 }
0x28a0   :  { %v4953_v25 = vpop.permute.xlu0 %4952 }
0x28a1   :  { %v4955_v34 = vmul.f32 %v21749_v48, %v4953_v25 }
0x28a3   :  { %15846 = vrot.lane.b32.xlu1 %v4955_v34, %s21796_s5 }
0x2911   :  { %v14871_v57 = vpop.permute.xlu1 %14870 }
0x2912   :  { %v14872_v38 = vsel %vm838_vm0, %v14871_v57, 0 }
0x2913   :  { %v23620_v28 = vand.u32 4294901760, %v14872_v38 }
0x2915   :  { %v14944_v63 = vsub.f32 %v14872_v38, %v23620_v28 }
0x2917   :  { %v14945_v13 = vand.u32 4294901760, %v14944_v63 }
0x2919   :  { %v14946_v49 = vsub.f32 %v14944_v63, %v14945_v13 }
0x291b   :  { %v14947_v52 = vand.u32 4294901760, %v14946_v49 }
0x291d   :  { %19833 = vmatmul.mubr.f32.vlgmr.msra.gmra.mrb[22].mxu1 %v14947_v52 }
0x291e   :  { %21104 = vmatpush3.bf16.msra.mxu1 %v22715_v47  ;;  %19843 = vmatprep.mubr.msk.f32.mxu1 %vm21791_vm1, %v23806_v54 }
0x291f   :  { %21105 = vmatprep.subr.bf16.mxu1 %v21790_v0 }
0x2922   :  { %21107 = vmatpush3.bf16.msra.mxu1 %v22718_v40 }
0x2923   :  { %21108 = vmatprep.subr.bf16.mxu1 %v21790_v0 }
0x2925   :  { %19844 = vmatmul.mubr.f32.vlgmr.msra.gmra.mrb[22].mxu1 %v23620_v28 }
0x2926   :  { %21110 = vmatpush3.bf16.msra.mxu1 %v22720_v45  ;;  %19854 = vmatprep.mubr.msk.f32.mxu1 %vm21791_vm1, %v23806_v54 }
0x2927   :  { %21111 = vmatprep.subr.bf16.mxu1 %v21790_v0 }
0x292a   :  { %21113 = vmatpush3.bf16.msra.mxu1 %v22722_v14 }
0x292b   :  { %21114 = vmatprep.subr.bf16.mxu1 %v21790_v0 }
0x292d   :  { %19855 = vmatmul.mubr.f32.vlgmr.msra.gmra.mrb[22].mxu1 %v14944_v63 }
0x292e   :  { %21116 = vmatpush3.bf16.msra.mxu1 %v22707_v39  ;;  %19865 = vmatprep.mubr.msk.f32.mxu1 %vm21791_vm1, %v23806_v54 }
0x292f   :  { %21117 = vmatprep.subr.bf16.mxu1 %v21790_v0 }
0x2932   :  { %21119 = vmatpush3.bf16.msra.mxu1 %v22711_v44 }
0x2933   :  { %21120 = vmatprep.subr.bf16.mxu1 %v21790_v0 }
0x2935   :  { %19866 = vmatmul.mubr.f32.vlgmr.msra.gmra.mrb[22].mxu1 %v14945_v13 }
0x2936   :  { %21122 = vmatpush3.bf16.msra.mxu1 %v22725_v11  ;;  %19876 = vmatprep.mubr.msk.f32.mxu1 %vm21791_vm1, %v23806_v54 }
0x2937   :  { %21123 = vmatprep.subr.bf16.mxu1 %v21790_v0 }
0x293a   :  { %21125 = vmatpush3.bf16.msra.mxu1 %v22732_v55 }
0x293b   :  { %21126 = vmatprep.subr.bf16.mxu1 %v21790_v0 }
0x293d   :  { %19877 = vmatmul.mubr.f32.vlgmr.msra.gmra.mrb[22].mxu1 %v23620_v28 }
0x293e   :  { %21128 = vmatpush3.bf16.msra.mxu1 %v22707_v39  ;;  %19887 = vmatprep.mubr.msk.f32.mxu1 %vm21791_vm1, %v23806_v54 }
0x293f   :  { %21129 = vmatprep.subr.bf16.mxu1 %v21790_v0 }
0x2942   :  { %21131 = vmatpush3.bf16.msra.mxu1 %v22711_v44 }
0x2943   :  { %21132 = vmatprep.subr.bf16.mxu1 %v21790_v0 }
0x2945   :  { %19888 = vmatmul.mubr.f32.vlgmr.msra.gmra.mrb[22].mxu1 %v23620_v28 }
0x2946   :  { %21134 = vmatpush3.bf16.msra.mxu1 %v22556_v53  ;;  %19898 = vmatprep.mubr.msk.f32.mxu1 %vm21791_vm1, %v23806_v54 }
0x2947   :  { %21135 = vmatprep.subr.bf16.mxu1 %v21790_v0 }
0x294a   :  { %21137 = vmatpush3.bf16.msra.mxu1 %v22561_v10 }
0x294b   :  { %21138 = vmatprep.subr.bf16.mxu1 %v21790_v0 }
0x294d   :  { %19899 = vmatmul.mubr.f32.vlgmr.msra.gmra.mrb[24].mxu1 %v14947_v52 }
0x294e   :  { %21140 = vmatpush3.bf16.msra.mxu1 %v22568_v46  ;;  %19909 = vmatprep.mubr.msk.f32.mxu1 %vm21791_vm1, %v23806_v54  ;;  %v15847_v46 = vpop.permute.xlu1 %15846 }
0x294f   :  { %21141 = vmatprep.subr.bf16.mxu1 %v21790_v0 }
0x2952   :  { %21143 = vmatpush3.bf16.msra.mxu1 %v22573_v56  ;;  %v15848_v56 = vsel %vm838_vm0, %v15847_v46, 0 }
0x2953   :  { %21144 = vmatprep.subr.bf16.mxu1 %v21790_v0 }
0x2955   :  { %19910 = vmatmul.mubr.f32.vlgmr.msra.gmra.mrb[24].mxu1 %v23620_v28 }
0x2956   :  { %21146 = vmatpush3.bf16.msra.mxu1 %v22579_v60  ;;  %19920 = vmatprep.mubr.msk.f32.mxu1 %vm21791_vm1, %v23806_v54  ;;  %v15919_v60 = vand.u32 4294901760, %v15848_v56 }
0x2957   :  { %21147 = vmatprep.subr.bf16.mxu1 %v21790_v0 }
0x295a   :  { %21149 = vmatpush3.bf16.msra.mxu1 %v22585_v19  ;;  %v15920_v19 = vsub.f32 %v15848_v56, %v15919_v60 }
0x295b   :  { %21150 = vmatprep.subr.bf16.mxu1 %v21790_v0 }
0x295d   :  { %19921 = vmatmul.mubr.f32.vlgmr.msra.gmra.mrb[24].mxu1 %v14944_v63 }
0x295e   :  { %21152 = vmatpush3.bf16.msra.mxu1 %v22556_v53  ;;  %19931 = vmatprep.mubr.msk.f32.mxu1 %vm21791_vm1, %v23806_v54 }
0x295f   :  { %21153 = vmatprep.subr.bf16.mxu1 %v21790_v0 }
0x2962   :  { %21155 = vmatpush3.bf16.msra.mxu1 %v22561_v10 }
0x2963   :  { %21156 = vmatprep.subr.bf16.mxu1 %v21790_v0 }
0x2965   :  { %19932 = vmatmul.mubr.f32.vlgmr.msra.gmra.mrb[24].mxu1 %v14945_v13 }
0x2966   :  { %21158 = vmatpush3.bf16.msra.mxu1 %v22598_v61  ;;  %19942 = vmatprep.mubr.msk.f32.mxu1 %vm21791_vm1, %v23806_v54  ;;  %v15921_v61 = vand.u32 4294901760, %v15920_v19 }
0x2967   :  { %21159 = vmatprep.subr.bf16.mxu1 %v21790_v0 }
0x296a   :  { %21161 = vmatpush3.bf16.msra.mxu1 %v22609_v27  ;;  %v15922_v27 = vsub.f32 %v15920_v19, %v15921_v61 }
0x296b   :  { %21162 = vmatprep.subr.bf16.mxu1 %v21790_v0 }
0x296d   :  { %19943 = vmatmul.mubr.f32.vlgmr.msra.gmra.mrb[24].mxu1 %v23620_v28 }
0x296e   :  { %21164 = vmatpush3.bf16.msra.mxu1 %v22556_v53  ;;  %19953 = vmatprep.mubr.msk.f32.mxu1 %vm21791_vm1, %v23806_v54  ;;  %v15923_v53 = vand.u32 4294901760, %v15922_v27 }
0x296f   :  { %21165 = vmatprep.subr.bf16.mxu1 %v21790_v0 }
0x2972   :  { %21167 = vmatpush3.bf16.msra.mxu1 %v22561_v10 }
0x2973   :  { %21168 = vmatprep.subr.bf16.mxu1 %v21790_v0 }
0x2975   :  { %19954 = vmatmul.mubr.f32.vlgmr.msra.gmra.mrb[24].mxu1 %v23620_v28 }
0x2976   :  { %21170 = vmatpush3.bf16.msra.mxu1 %v22628_v33  ;;  %19964 = vmatprep.mubr.msk.f32.mxu1 %vm21791_vm1, %v23806_v54 }
0x2977   :  { %21171 = vmatprep.subr.bf16.mxu1 %v21790_v0 }
0x297a   :  { %21173 = vmatpush3.bf16.msra.mxu1 %v22634_v4 }
0x297b   :  { %21174 = vmatprep.subr.bf16.mxu1 %v21790_v0 }
0x297d   :  { %19965 = vmatmul.mubr.f32.vlgmr.msra.gmra.mrb[24].mxu1 %v15923_v53 }
0x297e   :  { %21176 = vmatpush3.bf16.msra.mxu1 %v22641_v32  ;;  %19975 = vmatprep.mubr.msk.f32.mxu1 %vm21791_vm1, %v23806_v54 }
0x297f   :  { %21177 = vmatprep.subr.bf16.mxu1 %v21790_v0 }
0x2982   :  { %21179 = vmatpush3.bf16.msra.mxu1 %v22646_v2 }
0x2983   :  { %21180 = vmatprep.subr.bf16.mxu1 %v21790_v0 }
0x2985   :  { %19976 = vmatmul.mubr.f32.vlgmr.msra.gmra.mrb[24].mxu1 %v15919_v60 }
0x2986   :  { %21182 = vmatpush3.bf16.msra.mxu1 %v22652_v5  ;;  %19986 = vmatprep.mubr.msk.f32.mxu1 %vm21791_vm1, %v23806_v54 }
0x2987   :  { %21183 = vmatprep.subr.bf16.mxu1 %v21790_v0 }
0x298a   :  { %21185 = vmatpush3.bf16.msra.mxu1 %v22657_v17 }
0x298b   :  { %21186 = vmatprep.subr.bf16.mxu1 %v21790_v0 }
0x298d   :  { %19987 = vmatmul.mubr.f32.vlgmr.msra.gmra.mrb[24].mxu1 %v15920_v19 }
0x298e   :  { %21188 = vmatpush3.bf16.msra.mxu1 %v22628_v33  ;;  %19997 = vmatprep.mubr.msk.f32.mxu1 %vm21791_vm1, %v23806_v54 }
0x298f   :  { %21189 = vmatprep.subr.bf16.mxu1 %v21790_v0 }
0x2992   :  { %21191 = vmatpush3.bf16.msra.mxu1 %v22634_v4 }
0x2993   :  { %21192 = vmatprep.subr.bf16.mxu1 %v21790_v0 }
0x2995   :  { %19998 = vmatmul.mubr.f32.vlgmr.msra.gmra.mrb[24].mxu1 %v15921_v61 }
0x2996   :  { %21194 = vmatpush3.bf16.msra.mxu1 %v22670_v16  ;;  %20008 = vmatprep.mubr.msk.f32.mxu1 %vm21791_vm1, %v23806_v54 }
0x2997   :  { %21195 = vmatprep.subr.bf16.mxu1 %v21790_v0 }
0x299a   :  { %21197 = vmatpush3.bf16.msra.mxu1 %v22675_v24 }
0x299b   :  { %21198 = vmatprep.subr.bf16.mxu1 %v21790_v0 }
0x299d   :  { %20009 = vmatmul.mubr.f32.vlgmr.msra.gmra.mrb[24].mxu1 %v15919_v60 }
0x299e   :  { %21200 = vmatpush3.bf16.msra.mxu1 %v22628_v33  ;;  %20019 = vmatprep.mubr.msk.f32.mxu1 %vm21791_vm1, %v23806_v54 }
0x299f   :  { %21201 = vmatprep.subr.bf16.mxu1 %v21790_v0 }
0x29a2   :  { %21203 = vmatpush3.bf16.msra.mxu1 %v22634_v4 }
0x29a5   :  { %20020 = vmatmul.mubr.f32.vlgmr.msra.gmra.mrb[24].mxu1 %v15919_v60 }
0x2a18   :  { %v15355_v32 = vpop.f32.mrb[22].mxu1 }
0x2a19   :  { %v21246_v10 = vadd.f32 %v23462_v50, %v15355_v32  ;;  %v19889_v2 = vpop.f32.mrb[23].mxu1 }
0x2a1b   :  { %15359 = vst [vmem:[%s23781_s7 + $0x30] sm:$0xff] %v21246_v10 }
0x2a78   :  { %v16331_v5 = vpop.f32.mrb[24].mxu1 }
0x2a79   :  { %21754 = vtanh.f32 %v16331_v5  ;;  %v20021_v17 = vpop.f32.mrb[25].mxu1  ;;  %v16877_v16 = vmul.f32 -1.442695, %v16331_v5 }
0x2a7b   :  { %21756 = vpow2.f32 %v16877_v16 }
0x2a83   :  { %v21755_v33 = vpop.eup %21754 }
0x2a84   :  { %16344 = vrot.lane.b32.xlu0 %v21755_v33, %s21795_s0 }
0x2a85   :  { %v21757_v24 = vpop.eup %21756 }
0x2a86   :  { %v16338_v1 = vadd.f32 1.0, %v21757_v24 }
0x2a88   :  { %21758 = vrcp.f32 %v16338_v1 }
0x2a92   :  { %v21759_v4 = vpop.eup %21758 }
0x2a93   :  { %v16342_v9 = vmul.f32 %v21759_v4, %v23611_v41 }
0x2af6   :  { %v16345_v37 = vpop.permute.xlu0 %16344 }
0x2af7   :  { %v16347_v29 = vmul.f32 %v21759_v4, %v16345_v37 }
0x2af9   :  { %16349 = vrot.lane.b32.xlu1 %v16347_v29, %s21795_s0 }
0x2b6b   :  { %v16350_v51 = vpop.permute.xlu1 %16349 }
0x2b6c   :  { %v16352_v15 = vadd.f32 %v16350_v51, %v16342_v9 }
0x2b6e   :  { %21760 = vtanh.f32 %v16352_v15 }
0x2b78   :  { %v21761_v12 = vpop.eup %21760 }
0x2b79   :  { %16355 = vrot.lane.b32.xlu0 %v21761_v12, %s21795_s0 }
0x2beb   :  { %v16356_v35 = vpop.permute.xlu0 %16355 }
0x2bec   :  { %v16358_v21 = vmul.f32 %v21759_v4, %v16356_v35 }
0x2bee   :  { %16360 = vrot.lane.b32.xlu1 %v16358_v21, %s21796_s5 }
0x2c60   :  { %v16361_v3 = vpop.permute.xlu1 %16360 }
0x2c61   :  { %v16362_v26 = vsel %vm838_vm0, %v16361_v3, 0 }
0x2c62   :  { %v16433_v43 = vand.u32 4294901760, %v16362_v26 }
0x2c64   :  { %v16434_v58 = vsub.f32 %v16362_v26, %v16433_v43 }
0x2c66   :  { %v16435_v7 = vand.u32 4294901760, %v16434_v58 }
0x2c68   :  { %v16436_v48 = vsub.f32 %v16434_v58, %v16435_v7 }
0x2c6a   :  { %v16437_v42 = vand.u32 4294901760, %v16436_v48 }
0x2c6c   :  { %20031 = vmatmul.mubr.f32.vlgmr.msra.gmra.mrb[28].mxu0 %v16437_v42 }
0x2c6d   :  { %21212 = vmatpush3.bf16.msra.mxu0 %v22715_v47  ;;  %20041 = vmatprep.mubr.msk.f32.mxu0 %vm21791_vm1, %v23806_v54 }
0x2c6e   :  { %21213 = vmatprep.subr.bf16.mxu0 %v21790_v0 }
0x2c71   :  { %21215 = vmatpush3.bf16.msra.mxu0 %v22718_v40 }
0x2c72   :  { %21216 = vmatprep.subr.bf16.mxu0 %v21790_v0 }
0x2c74   :  { %20042 = vmatmul.mubr.f32.vlgmr.msra.gmra.mrb[28].mxu0 %v16433_v43 }
0x2c75   :  { %21218 = vmatpush3.bf16.msra.mxu0 %v22720_v45  ;;  %20052 = vmatprep.mubr.msk.f32.mxu0 %vm21791_vm1, %v23806_v54 }
0x2c76   :  { %21219 = vmatprep.subr.bf16.mxu0 %v21790_v0 }
0x2c79   :  { %21221 = vmatpush3.bf16.msra.mxu0 %v22722_v14 }
0x2c7a   :  { %21222 = vmatprep.subr.bf16.mxu0 %v21790_v0 }
0x2c7c   :  { %20053 = vmatmul.mubr.f32.vlgmr.msra.gmra.mrb[28].mxu0 %v16434_v58 }
0x2c7d   :  { %21224 = vmatpush3.bf16.msra.mxu0 %v22707_v39  ;;  %20063 = vmatprep.mubr.msk.f32.mxu0 %vm21791_vm1, %v23806_v54 }
0x2c7e   :  { %21225 = vmatprep.subr.bf16.mxu0 %v21790_v0 }
0x2c81   :  { %21227 = vmatpush3.bf16.msra.mxu0 %v22711_v44 }
0x2c82   :  { %21228 = vmatprep.subr.bf16.mxu0 %v21790_v0 }
0x2c84   :  { %20064 = vmatmul.mubr.f32.vlgmr.msra.gmra.mrb[28].mxu0 %v16435_v7 }
0x2c85   :  { %21230 = vmatpush3.bf16.msra.mxu0 %v22725_v11  ;;  %20074 = vmatprep.mubr.msk.f32.mxu0 %vm21791_vm1, %v23806_v54 }
0x2c86   :  { %21231 = vmatprep.subr.bf16.mxu0 %v21790_v0 }
0x2c89   :  { %21233 = vmatpush3.bf16.msra.mxu0 %v22732_v55 }
0x2c8a   :  { %21234 = vmatprep.subr.bf16.mxu0 %v21790_v0 }
0x2c8c   :  { %20075 = vmatmul.mubr.f32.vlgmr.msra.gmra.mrb[28].mxu0 %v16433_v43 }
0x2c8d   :  { %21236 = vmatpush3.bf16.msra.mxu0 %v22707_v39  ;;  %20085 = vmatprep.mubr.msk.f32.mxu0 %vm21791_vm1, %v23806_v54 }
0x2c8e   :  { %21237 = vmatprep.subr.bf16.mxu0 %v21790_v0 }
0x2c91   :  { %21239 = vmatpush3.bf16.msra.mxu0 %v22711_v44 }
0x2c94   :  { %20086 = vmatmul.mubr.f32.vlgmr.msra.gmra.mrb[28].mxu0 %v16433_v43 }
0x2d67   :  { %v16845_v47 = vpop.f32.mrb[28].mxu0 }
0x2d68   :  { %v21247_v40 = vadd.f32 %v23462_v50, %v16845_v47  ;;  %v20087_v45 = vpop.f32.mrb[29].mxu0 }
0x2d6a   :  { %16849 = vst [vmem:[%s23781_s7 + $0x38] sm:$0xff] %v21247_v40 }
0x2d6b   :  { %16854 = vsyncpa [#allocation3], 1 }

</bundles_post_ra>
